<compile_context>
chip_gen: v5e
topology: v5e:2x2
jax: 0.10.0
libtpu: 0.0.40
codegen_flags: <defaults>
</compile_context>

<pallas_src>
import math
from functools import partial

import jax
import jax.numpy as jnp
from jax import lax
from jax.experimental import pallas as pl
from jax.experimental.pallas import tpu as pltpu

BN_EPS = 1e-5
TILE_M_MAX = 256   # only the tiny stride-2 / 1x1x1 convs use the im2col path


# -----------------------------------------------------------------------------
# Pallas kernel 1: direct (no-im2col) stride-1 3x3x3 conv + BN (+residual)(+ReLU)
# -----------------------------------------------------------------------------
def _make_fused_conv_kernel(kd, kh, relu, has_res):
    def kernel(*refs):
        if has_res:
            x_ref, w_ref, s_ref, t_ref, r_ref, o_ref = refs
        else:
            x_ref, w_ref, s_ref, t_ref, o_ref = refs
        Ho = o_ref.shape[0]
        d = pl.program_id(1)
        acc = jnp.zeros(o_ref.shape, jnp.float32)
        for i in range(kd):                              # depth taps
            xsl = x_ref[d + i]                           # (Hp, Wp*C), bf16
            for j in range(kh):                          # height taps
                acc += jnp.dot(xsl[j:j + Ho, :], w_ref[i, j],
                               preferred_element_type=jnp.float32)
        acc = acc * s_ref[...] + t_ref[...]              # folded BatchNorm
        if has_res:
            acc = acc + r_ref[...].astype(jnp.float32)   # residual add
        if relu:
            acc = jnp.maximum(acc, 0.0)
        o_ref[...] = acc.astype(o_ref.dtype)
    return kernel


def fused_conv3x3_bn_act(x, wl, scale_t, shift_t, *, relu, residual=None):
    """stride-1 / pad-1 3x3x3 conv.  x:(N,D,H,W,C) bf16; wl:(3,3,(W+2)*C, W*O)
    lifted bf16 weights; scale_t/shift_t:(1, W*O) f32; residual:(N,D,H,W,O)."""
    N, D, H, W, C = x.shape
    kd, kh, WpC, WoO = wl.shape
    O = WoO // W
    assert WpC == (W + 2) * C and WoO == W * O
    Dp, Hp = D + 2, H + 2
    xp = jnp.pad(x, ((0, 0), (1, 1), (1, 1), (1, 1), (0, 0)))
    xp = xp.reshape(N, Dp, Hp, (W + 2) * C)

    in_specs = [
        pl.BlockSpec((None, Dp, Hp, WpC), lambda n, d: (n, 0, 0, 0)),   # whole sample
        pl.BlockSpec((kd, kh, WpC, WoO), lambda n, d: (0, 0, 0, 0)),    # resident weights
        pl.BlockSpec((1, WoO), lambda n, d: (0, 0)),
        pl.BlockSpec((1, WoO), lambda n, d: (0, 0)),
    ]
    args = [xp, wl, scale_t, shift_t]
    if residual is not None:
        in_specs.append(pl.BlockSpec((None, None, H, WoO), lambda n, d: (n, d, 0, 0)))
        args.append(residual.reshape(N, D, H, W * O))

    out = pl.pallas_call(
        _make_fused_conv_kernel(kd, kh, relu, residual is not None),
        out_shape=jax.ShapeDtypeStruct((N, D, H, WoO), jnp.bfloat16),
        grid=(N, D),
        in_specs=in_specs,
        out_specs=pl.BlockSpec((None, None, H, WoO), lambda n, d: (n, d, 0, 0)),
        compiler_params=pltpu.CompilerParams(
            dimension_semantics=("parallel", "parallel")),
    )(*args)
    return out.reshape(N, D, H, W, O)


# -----------------------------------------------------------------------------
# Pallas kernel 2: small im2col matmul + BN (+ReLU) for stride-2 / 1x1x1 convs
# (no residual stream — residuals are always fused into kernel 1)
# -----------------------------------------------------------------------------
def _mm_bn_kernel(a_ref, b_ref, s_ref, t_ref, o_ref, *, relu):
    acc = jnp.dot(a_ref[...], b_ref[...], preferred_element_type=jnp.float32)
    acc = acc * s_ref[...] + t_ref[...]
    if relu:
        acc = jnp.maximum(acc, 0.0)
    o_ref[...] = acc.astype(o_ref.dtype)


def matmul_bn_act(A, Bm, scale, shift, *, relu):
    """A:(M,K) bf16  Bm:(K,O) bf16  scale/shift:(1,O) f32 -> (M,O) bf16."""
    M, K = A.shape
    O = Bm.shape[1]
    tile_m = min(TILE_M_MAX, ((M + 7) // 8) * 8)       # clamp: no 16 -> 256 padding
    Mp = ((M + tile_m - 1) // tile_m) * tile_m
    if Mp != M:
        A = jnp.pad(A, ((0, Mp - M), (0, 0)))
    out = pl.pallas_call(
        partial(_mm_bn_kernel, relu=relu),
        out_shape=jax.ShapeDtypeStruct((Mp, O), jnp.bfloat16),
        grid=(Mp // tile_m,),
        in_specs=[
            pl.BlockSpec((tile_m, K), lambda i: (i, 0)),
            pl.BlockSpec((K, O), lambda i: (0, 0)),
            pl.BlockSpec((1, O), lambda i: (0, 0)),
            pl.BlockSpec((1, O), lambda i: (0, 0)),
        ],
        out_specs=pl.BlockSpec((tile_m, O), lambda i: (i, 0)),
        compiler_params=pltpu.CompilerParams(dimension_semantics=("parallel",)),
    )(A, Bm, scale, shift)
    return out[:M]


# -----------------------------------------------------------------------------
# Pallas kernel 3: MIL attention head (Attention_Layer + bag_classifier)
# -----------------------------------------------------------------------------
def _mil_head_kernel(x_ref, wt_ref, b_ref, preds_ref, outf_ref, alpha_ref, *, thresh):
    eps = 1e-12
    x = x_ref[...]                                                   # (I, F)
    wt = wt_ref[...]                                                 # (F, C8)
    bias = b_ref[...]                                                # (1, C8)
    out_f = jnp.dot(x, wt, preferred_element_type=jnp.float32) + bias
    outf_ref[...] = out_f[None]
    norms = jnp.sqrt(jnp.sum(out_f * out_f, axis=1, keepdims=True))  # (I, 1)
    a = norms / (jnp.sum(norms, axis=0, keepdims=True) + eps)        # eps guard
    a = jnp.maximum(a - thresh, 0.0)
    a = a / (jnp.sum(a, axis=0, keepdims=True) + eps)                # eps guard
    alpha_ref[...] = a[None]                                         # (1, I, 1)
    pooled = jnp.sum(a * x, axis=0, keepdims=True)                   # (1, F)
    preds = jnp.dot(pooled, wt, preferred_element_type=jnp.float32) + bias
    preds_ref[...] = preds[None]                                     # (1, 1, C8)


def mil_attention_bag(x, W, bias, gamma):
    """x:(B, I, F) f32 bag features; W:(C, F), bias:(C,) = bag_classifier params."""
    B, I, F_ = x.shape
    C = W.shape[0]
    C8 = ((C + 7) // 8) * 8                      # pad 7 -> 8 output lanes (review)
    Wt = jnp.zeros((F_, C8), jnp.float32).at[:, :C].set(W.T)
    b8 = jnp.zeros((1, C8), jnp.float32).at[:, :C].set(bias.reshape(1, C))
    preds, out_f, alpha = pl.pallas_call(
        partial(_mil_head_kernel, thresh=0.1 / float(gamma)),
        out_shape=(
            jax.ShapeDtypeStruct((B, 1, C8), jnp.float32),
            jax.ShapeDtypeStruct((B, I, C8), jnp.float32),
            jax.ShapeDtypeStruct((B, I, 1), jnp.float32),
        ),
        grid=(B,),
        in_specs=[
            pl.BlockSpec((None, I, F_), lambda b: (b, 0, 0)),
            pl.BlockSpec((F_, C8), lambda b: (0, 0)),
            pl.BlockSpec((1, C8), lambda b: (0, 0)),
        ],
        out_specs=(
            pl.BlockSpec((1, 1, C8), lambda b: (b, 0, 0)),
            pl.BlockSpec((1, I, C8), lambda b: (b, 0, 0)),
            pl.BlockSpec((1, I, 1), lambda b: (b, 0, 0)),
        ),
    )(x.astype(jnp.float32), Wt, b8)
    return preds[:, 0, :C], out_f.reshape(B * I, C8)[:, :C], alpha.reshape(B, I)


# -----------------------------------------------------------------------------
# Plain-JAX glue: im2col (tiny layers only), maxpool, patch rearrange
# -----------------------------------------------------------------------------
def im2col_3d(x, ksize, stride, padding):
    """x:(N, D, H, W, C) channels-last -> (N, Do, Ho, Wo, kd*kh*kw*C)."""
    N, D, H, W, C = x.shape
    kd, kh, kw = ksize
    sd, sh, sw = stride
    pd, ph, pw = padding
    xp = jnp.pad(x, ((0, 0), (pd, pd), (ph, ph), (pw, pw), (0, 0)))
    Do = (D + 2 * pd - kd) // sd + 1
    Ho = (H + 2 * ph - kh) // sh + 1
    Wo = (W + 2 * pw - kw) // sw + 1
    slabs = []
    for i in range(kd):
        for j in range(kh):
            for k in range(kw):
                slabs.append(
                    xp[:, i:i + (Do - 1) * sd + 1:sd,
                          j:j + (Ho - 1) * sh + 1:sh,
                          k:k + (Wo - 1) * sw + 1:sw, :])
    cols = jnp.stack(slabs, axis=4)                    # (N, Do, Ho, Wo, kk, C)
    return cols.reshape(N, Do, Ho, Wo, -1), (Do, Ho, Wo)


def im2col_conv_bn_act(x, Bm, scale, shift, *, ksize, stride, padding, relu):
    N, D, H, W, C = x.shape
    cols, (Do, Ho, Wo) = im2col_3d(x, ksize, stride, padding)
    M = N * Do * Ho * Wo
    A = cols.reshape(M, -1)
    out = matmul_bn_act(A, Bm, scale, shift, relu=relu)
    return out.reshape(N, Do, Ho, Wo, Bm.shape[1])


def maxpool3d_k3s2p1(x):
    """MaxPool3d(kernel=3, stride=2, padding=1) on channels-last (N, D, H, W, C)."""
    init = jnp.array(-jnp.inf, dtype=x.dtype)
    return lax.reduce_window(
        x, init, lax.max,
        window_dimensions=(1, 3, 3, 3, 1),
        window_strides=(1, 2, 2, 2, 1),
        padding=((0, 0), (1, 1), (1, 1), (1, 1), (0, 0)))


def rearrange_to_patches(x, ps):
    """einops 'b c (h p1) (w p2) d -> (b h w) c d p1 p2'."""
    b, c, H, W, d = x.shape
    h, w = H // ps, W // ps
    x = x.reshape(b, c, h, ps, w, ps, d)
    x = jnp.transpose(x, (0, 2, 4, 1, 6, 3, 5))        # b h w c d p1 p2
    return x.reshape(b * h * w, c, d, ps, ps)


# -----------------------------------------------------------------------------
# Parameter init (matches shapes/inits from __init__) and one-time packing
# -----------------------------------------------------------------------------
def bn_params(channels):
    scale = jnp.full((channels,), 1.0 / math.sqrt(1.0 + BN_EPS), jnp.float32)
    shift = jnp.zeros((channels,), jnp.float32)
    return scale, shift


def kaiming_normal_conv(key, shape):
    # shape = (O, C, kd, kh, kw); mode='fan_out', nonlinearity='relu'
    fan_out = shape[0] * shape[2] * shape[3] * shape[4]
    std = math.sqrt(2.0 / fan_out)
    return std * jax.random.normal(key, shape, jnp.float32)


def init_params(key, n_input_channels=8, block_inplanes=(8, 16, 32, 64),
                layers=(1, 1, 1, 1), n_classes=7):
    keys = iter(jax.random.split(key, 64))
    params = {}
    in_planes = block_inplanes[0]
    params['conv1_w'] = kaiming_normal_conv(next(keys), (in_planes, n_input_channels, 3, 3, 3))
    params['bn1'] = bn_params(in_planes)
    stages = []
    for li, (planes, nblocks) in enumerate(zip(block_inplanes, layers)):
        stage_stride = 1 if li == 0 else 2
        blocks = []
        for bi in range(nblocks):
            s = stage_stride if bi == 0 else 1
            blk = {'stride': s}
            blk['w1'] = kaiming_normal_conv(next(keys), (planes, in_planes, 3, 3, 3))
            blk['bn1'] = bn_params(planes)
            blk['w2'] = kaiming_normal_conv(next(keys), (planes, planes, 3, 3, 3))
            blk['bn2'] = bn_params(planes)
            if s != 1 or in_planes != planes:
                blk['down_w'] = kaiming_normal_conv(next(keys), (planes, in_planes, 1, 1, 1))
                blk['down_bn'] = bn_params(planes)
            else:
                blk['down_w'] = None
            blocks.append(blk)
            in_planes = planes
        stages.append(blocks)
    params['stages'] = stages
    # bag_classifier = nn.Linear(block_inplanes[3], n_classes)
    fan_in = block_inplanes[3]
    bound = 1.0 / math.sqrt(fan_in)
    params['bag_w'] = jax.random.uniform(next(keys), (n_classes, fan_in), jnp.float32, -bound, bound)
    params['bag_b'] = jax.random.uniform(next(keys), (n_classes,), jnp.float32, -bound, bound)
    return params


def pack_params(params, ps=32):
    """One-time weight packing: lifted banded bf16 weights for stride-1 3x3x3
    convs, (K,O) bf16 matrices for the tiny im2col convs, pre-tiled BN vectors."""

    def lift(w, width):                       # w:(O, C, 3, 3, 3) torch layout
        O, C, kd, kh, kw = w.shape
        Wo, Wp = width, width + 2
        wt = jnp.transpose(w, (2, 3, 4, 1, 0))           # (kd, kh, kw, C, O)
        P = jnp.zeros((kw, Wo, Wp), jnp.float32)
        pos = jnp.arange(Wo)
        for k in range(kw):
            P = P.at[k, pos, pos + k].set(1.0)
        L = jnp.einsum('kwp,ijkco->ijpcwo', P, wt)       # (kd,kh,Wp,C,Wo,O)
        return L.reshape(kd, kh, Wp * C, Wo * O).astype(jnp.bfloat16)

    def bn_tiled(bn, width):
        s, t = bn
        return jnp.tile(s, width).reshape(1, -1), jnp.tile(t, width).reshape(1, -1)

    def flat(w):
        O = w.shape[0]
        return jnp.transpose(w, (2, 3, 4, 1, 0)).reshape(-1, O).astype(jnp.bfloat16)

    def bn_flat(bn):
        s, t = bn
        return s.reshape(1, -1), t.reshape(1, -1)

    packed = {'stem': {'wl': lift(params['conv1_w'], ps),
                       'bn': bn_tiled(params['bn1'], ps)}}
    blocks_p = []
    for li, blocks in enumerate(params['stages']):
        width = ps >> (li + 1)                # instance width inside this stage
        for blk in blocks:
            s = blk['stride']
            pb = {'stride': s}
            if s == 1:
                pb['c1'] = {'wl': lift(blk['w1'], width), 'bn': bn_tiled(blk['bn1'], width)}
            else:
                pb['c1'] = {'B': flat(blk['w1']), 'bn': bn_flat(blk['bn1'])}
            pb['c2'] = {'wl': lift(blk['w2'], width), 'bn': bn_tiled(blk['bn2'], width)}
            if blk['down_w'] is not None:
                pb['down'] = {'B': flat(blk['down_w']), 'bn': bn_flat(blk['down_bn'])}
            blocks_p.append(pb)
    packed['blocks'] = blocks_p
    packed['bag_w'] = params['bag_w']
    packed['bag_b'] = params['bag_b']
    return packed


# -----------------------------------------------------------------------------
# Forward pass (RR3d_MIL.forward)
# -----------------------------------------------------------------------------
def rr3d_mil_forward(packed, xs, ps=32):
    """xs: tuple of 8 modality tensors, each (b, c, H, W, d) in torch layout."""
    b, c, H, W, d = xs[4].shape            # x_pvp drives the shape bookkeeping
    n_inst = (H * W) // (ps * ps)          # gamma = int(h*w/ps/ps)
    patches = [rearrange_to_patches(x, ps) for x in xs]
    x = jnp.concatenate(patches, axis=1)               # (N, 8c, d, ps, ps) NCDHW
    x = jnp.transpose(x, (0, 2, 3, 4, 1)).astype(jnp.bfloat16)   # -> NDHWC bf16

    # stem: conv1(3x3x3, s=1, p=1) + BN + ReLU, then maxpool(3, s=2, p=1)
    x = fused_conv3x3_bn_act(x, packed['stem']['wl'], *packed['stem']['bn'], relu=True)
    x = maxpool3d_k3s2p1(x)

    # residual stages layer1..layer4 (BasicBlock)
    for pb in packed['blocks']:
        s = pb['stride']
        if 'down' in pb:
            identity = im2col_conv_bn_act(x, pb['down']['B'], *pb['down']['bn'],
                                          ksize=(1, 1, 1), stride=(s, s, s),
                                          padding=(0, 0, 0), relu=False)
        else:
            identity = x
        if s == 1:
            y = fused_conv3x3_bn_act(x, pb['c1']['wl'], *pb['c1']['bn'], relu=True)
        else:
            y = im2col_conv_bn_act(x, pb['c1']['B'], *pb['c1']['bn'],
                                   ksize=(3, 3, 3), stride=(s, s, s),
                                   padding=(1, 1, 1), relu=True)
        # conv2 + BN + residual add + ReLU fully fused in the direct-conv kernel
        x = fused_conv3x3_bn_act(y, pb['c2']['wl'], *pb['c2']['bn'],
                                 relu=True, residual=identity)

    # AdaptiveAvgPool3d((1,1,1)) + view(b, n_inst, -1)
    feat = jnp.mean(x.astype(jnp.float32), axis=(1, 2, 3))        # (N, feat)
    feat = feat.reshape(b, n_inst, -1)

    # Attention_Layer + transpose/sum + bag_classifier — one Pallas kernel
    return mil_attention_bag(feat, packed['bag_w'], packed['bag_b'], n_inst)


# -----------------------------------------------------------------------------
if __name__ == "__main__":
    key = jax.random.PRNGKey(0)
    pkey, *xkeys = jax.random.split(key, 10)

    block_inplanes = (8, 16, 32, 64)     # small, widen_factor=1.0
    layers = (1, 1, 1, 1)
    n_classes = 7
    raw_params = init_params(pkey, n_input_channels=8,
                             block_inplanes=block_inplanes, layers=layers,
                             n_classes=n_classes)
    params = pack_params(raw_params, ps=32)

    # 8 modalities, each (b, c, H, W, d); n_input_channels = 8 * c = 8
    b, c, H, W, d = 1, 1, 64, 64, 8
    xs = tuple(jax.random.normal(k, (b, c, H, W, d), jnp.float32) for k in xkeys[:8])

    bag_preds, out_f, alpha = rr3d_mil_forward(params, xs, ps=32)
    jax.block_until_ready((bag_preds, out_f, alpha))

    n_inst = (H * W) // (32 * 32)
    assert bag_preds.shape == (b, n_classes)
    assert out_f.shape == (b * n_inst, n_classes)
    assert alpha.shape == (b, n_inst)
    assert bool(jnp.all(jnp.isfinite(bag_preds)))
    assert bool(jnp.all(jnp.isfinite(out_f)))
    assert bool(jnp.all(jnp.isfinite(alpha)))
    print("KERNEL_OK")
</pallas_src>

<mosaic_0001>
module attributes {stable_mosaic.version = 11 : i64} {
  func.func @kernel(%arg0: i32, %arg1: i32, %arg2: memref<1x10x34x272xbf16, #tpu.memory_space<vmem>>, %arg3: memref<3x3x272x256xbf16, #tpu.memory_space<vmem>>, %arg4: memref<1x256xf32, #tpu.memory_space<vmem>>, %arg5: memref<1x256xf32, #tpu.memory_space<vmem>>, %arg6: memref<1x1x32x256xbf16, #tpu.memory_space<vmem>>) attributes {dimension_semantics = [#tpu.dimension_semantics<parallel>, #tpu.dimension_semantics<parallel>], iteration_bounds = array<i64: 4, 8>, scalar_prefetch = 0 : i64, scratch_operands = 0 : i64, tpu.core_type = #tpu.core_type<tc>, window_params = [{transform_indices = @transform_0, window_bounds = array<i64: 1, 10, 34, 272>}, {pipeline_mode = #tpu.pipeline_mode<synchronous>, transform_indices = @transform_1, window_bounds = array<i64: 3, 3, 272, 256>}, {pipeline_mode = #tpu.pipeline_mode<synchronous>, transform_indices = @transform_2, window_bounds = array<i64: 1, 256>}, {pipeline_mode = #tpu.pipeline_mode<synchronous>, transform_indices = @transform_3, window_bounds = array<i64: 1, 256>}, {transform_indices = @transform_4, window_bounds = array<i64: 1, 1, 32, 256>}]} {
    %cst = arith.constant 0.000000e+00 : f32
    %0 = vector.broadcast %cst : f32 to vector<32x256xf32>
    %c0_i32 = arith.constant 0 : i32
    %1 = arith.addi %arg1, %c0_i32 : i32
    %c0 = arith.constant 0 : index
    %2 = arith.index_cast %1 : i32 to index
    %c0_0 = arith.constant 0 : index
    %c0_1 = arith.constant 0 : index
    %3 = vector.load %arg2[%c0, %2, %c0_0, %c0_1] : memref<1x10x34x272xbf16, #tpu.memory_space<vmem>>, vector<1x1x34x272xbf16>
    %4 = vector.shape_cast %3 : vector<1x1x34x272xbf16> to vector<34x272xbf16>
    %5 = vector.extract_strided_slice %4 {offsets = [0, 0], sizes = [32, 272], strides = [1, 1]} : vector<34x272xbf16> to vector<32x272xbf16>
    %c0_2 = arith.constant 0 : index
    %c0_3 = arith.constant 0 : index
    %c0_4 = arith.constant 0 : index
    %c0_5 = arith.constant 0 : index
    %6 = vector.load %arg3[%c0_2, %c0_3, %c0_4, %c0_5] : memref<3x3x272x256xbf16, #tpu.memory_space<vmem>>, vector<1x1x272x256xbf16>
    %7 = vector.shape_cast %6 : vector<1x1x272x256xbf16> to vector<272x256xbf16>
    %cst_6 = arith.constant dense<0.000000e+00> : vector<32x256xf32>
    %8 = tpu.matmul %5, %7, %cst_6 {dimension_numbers = #tpu.dot_dimension_numbers<[1], [0], [0], [1], [0, 0, 1, 1], [], []>} : vector<32x272xbf16>, vector<272x256xbf16>, vector<32x256xf32> -> vector<32x256xf32>
    %9 = arith.addf %0, %8 : vector<32x256xf32>
    %10 = vector.extract_strided_slice %4 {offsets = [1, 0], sizes = [32, 272], strides = [1, 1]} : vector<34x272xbf16> to vector<32x272xbf16>
    %c0_7 = arith.constant 0 : index
    %c1 = arith.constant 1 : index
    %c0_8 = arith.constant 0 : index
    %c0_9 = arith.constant 0 : index
    %11 = vector.load %arg3[%c0_7, %c1, %c0_8, %c0_9] : memref<3x3x272x256xbf16, #tpu.memory_space<vmem>>, vector<1x1x272x256xbf16>
    %12 = vector.shape_cast %11 : vector<1x1x272x256xbf16> to vector<272x256xbf16>
    %cst_10 = arith.constant dense<0.000000e+00> : vector<32x256xf32>
    %13 = tpu.matmul %10, %12, %cst_10 {dimension_numbers = #tpu.dot_dimension_numbers<[1], [0], [0], [1], [0, 0, 1, 1], [], []>} : vector<32x272xbf16>, vector<272x256xbf16>, vector<32x256xf32> -> vector<32x256xf32>
    %14 = arith.addf %9, %13 : vector<32x256xf32>
    %15 = vector.extract_strided_slice %4 {offsets = [2, 0], sizes = [32, 272], strides = [1, 1]} : vector<34x272xbf16> to vector<32x272xbf16>
    %c0_11 = arith.constant 0 : index
    %c2 = arith.constant 2 : index
    %c0_12 = arith.constant 0 : index
    %c0_13 = arith.constant 0 : index
    %16 = vector.load %arg3[%c0_11, %c2, %c0_12, %c0_13] : memref<3x3x272x256xbf16, #tpu.memory_space<vmem>>, vector<1x1x272x256xbf16>
    %17 = vector.shape_cast %16 : vector<1x1x272x256xbf16> to vector<272x256xbf16>
    %cst_14 = arith.constant dense<0.000000e+00> : vector<32x256xf32>
    %18 = tpu.matmul %15, %17, %cst_14 {dimension_numbers = #tpu.dot_dimension_numbers<[1], [0], [0], [1], [0, 0, 1, 1], [], []>} : vector<32x272xbf16>, vector<272x256xbf16>, vector<32x256xf32> -> vector<32x256xf32>
    %19 = arith.addf %14, %18 : vector<32x256xf32>
    %c1_i32 = arith.constant 1 : i32
    %20 = arith.addi %arg1, %c1_i32 : i32
    %c0_15 = arith.constant 0 : index
    %21 = arith.index_cast %20 : i32 to index
    %c0_16 = arith.constant 0 : index
    %c0_17 = arith.constant 0 : index
    %22 = vector.load %arg2[%c0_15, %21, %c0_16, %c0_17] : memref<1x10x34x272xbf16, #tpu.memory_space<vmem>>, vector<1x1x34x272xbf16>
    %23 = vector.shape_cast %22 : vector<1x1x34x272xbf16> to vector<34x272xbf16>
    %24 = vector.extract_strided_slice %23 {offsets = [0, 0], sizes = [32, 272], strides = [1, 1]} : vector<34x272xbf16> to vector<32x272xbf16>
    %c1_18 = arith.constant 1 : index
    %c0_19 = arith.constant 0 : index
    %c0_20 = arith.constant 0 : index
    %c0_21 = arith.constant 0 : index
    %25 = vector.load %arg3[%c1_18, %c0_19, %c0_20, %c0_21] : memref<3x3x272x256xbf16, #tpu.memory_space<vmem>>, vector<1x1x272x256xbf16>
    %26 = vector.shape_cast %25 : vector<1x1x272x256xbf16> to vector<272x256xbf16>
    %cst_22 = arith.constant dense<0.000000e+00> : vector<32x256xf32>
    %27 = tpu.matmul %24, %26, %cst_22 {dimension_numbers = #tpu.dot_dimension_numbers<[1], [0], [0], [1], [0, 0, 1, 1], [], []>} : vector<32x272xbf16>, vector<272x256xbf16>, vector<32x256xf32> -> vector<32x256xf32>
    %28 = arith.addf %19, %27 : vector<32x256xf32>
    %29 = vector.extract_strided_slice %23 {offsets = [1, 0], sizes = [32, 272], strides = [1, 1]} : vector<34x272xbf16> to vector<32x272xbf16>
    %c1_23 = arith.constant 1 : index
    %c1_24 = arith.constant 1 : index
    %c0_25 = arith.constant 0 : index
    %c0_26 = arith.constant 0 : index
    %30 = vector.load %arg3[%c1_23, %c1_24, %c0_25, %c0_26] : memref<3x3x272x256xbf16, #tpu.memory_space<vmem>>, vector<1x1x272x256xbf16>
    %31 = vector.shape_cast %30 : vector<1x1x272x256xbf16> to vector<272x256xbf16>
    %cst_27 = arith.constant dense<0.000000e+00> : vector<32x256xf32>
    %32 = tpu.matmul %29, %31, %cst_27 {dimension_numbers = #tpu.dot_dimension_numbers<[1], [0], [0], [1], [0, 0, 1, 1], [], []>} : vector<32x272xbf16>, vector<272x256xbf16>, vector<32x256xf32> -> vector<32x256xf32>
    %33 = arith.addf %28, %32 : vector<32x256xf32>
    %34 = vector.extract_strided_slice %23 {offsets = [2, 0], sizes = [32, 272], strides = [1, 1]} : vector<34x272xbf16> to vector<32x272xbf16>
    %c1_28 = arith.constant 1 : index
    %c2_29 = arith.constant 2 : index
    %c0_30 = arith.constant 0 : index
    %c0_31 = arith.constant 0 : index
    %35 = vector.load %arg3[%c1_28, %c2_29, %c0_30, %c0_31] : memref<3x3x272x256xbf16, #tpu.memory_space<vmem>>, vector<1x1x272x256xbf16>
    %36 = vector.shape_cast %35 : vector<1x1x272x256xbf16> to vector<272x256xbf16>
    %cst_32 = arith.constant dense<0.000000e+00> : vector<32x256xf32>
    %37 = tpu.matmul %34, %36, %cst_32 {dimension_numbers = #tpu.dot_dimension_numbers<[1], [0], [0], [1], [0, 0, 1, 1], [], []>} : vector<32x272xbf16>, vector<272x256xbf16>, vector<32x256xf32> -> vector<32x256xf32>
    %38 = arith.addf %33, %37 : vector<32x256xf32>
    %c2_i32 = arith.constant 2 : i32
    %39 = arith.addi %arg1, %c2_i32 : i32
    %c0_33 = arith.constant 0 : index
    %40 = arith.index_cast %39 : i32 to index
    %c0_34 = arith.constant 0 : index
    %c0_35 = arith.constant 0 : index
    %41 = vector.load %arg2[%c0_33, %40, %c0_34, %c0_35] : memref<1x10x34x272xbf16, #tpu.memory_space<vmem>>, vector<1x1x34x272xbf16>
    %42 = vector.shape_cast %41 : vector<1x1x34x272xbf16> to vector<34x272xbf16>
    %43 = vector.extract_strided_slice %42 {offsets = [0, 0], sizes = [32, 272], strides = [1, 1]} : vector<34x272xbf16> to vector<32x272xbf16>
    %c2_36 = arith.constant 2 : index
    %c0_37 = arith.constant 0 : index
    %c0_38 = arith.constant 0 : index
    %c0_39 = arith.constant 0 : index
    %44 = vector.load %arg3[%c2_36, %c0_37, %c0_38, %c0_39] : memref<3x3x272x256xbf16, #tpu.memory_space<vmem>>, vector<1x1x272x256xbf16>
    %45 = vector.shape_cast %44 : vector<1x1x272x256xbf16> to vector<272x256xbf16>
    %cst_40 = arith.constant dense<0.000000e+00> : vector<32x256xf32>
    %46 = tpu.matmul %43, %45, %cst_40 {dimension_numbers = #tpu.dot_dimension_numbers<[1], [0], [0], [1], [0, 0, 1, 1], [], []>} : vector<32x272xbf16>, vector<272x256xbf16>, vector<32x256xf32> -> vector<32x256xf32>
    %47 = arith.addf %38, %46 : vector<32x256xf32>
    %48 = vector.extract_strided_slice %42 {offsets = [1, 0], sizes = [32, 272], strides = [1, 1]} : vector<34x272xbf16> to vector<32x272xbf16>
    %c2_41 = arith.constant 2 : index
    %c1_42 = arith.constant 1 : index
    %c0_43 = arith.constant 0 : index
    %c0_44 = arith.constant 0 : index
    %49 = vector.load %arg3[%c2_41, %c1_42, %c0_43, %c0_44] : memref<3x3x272x256xbf16, #tpu.memory_space<vmem>>, vector<1x1x272x256xbf16>
    %50 = vector.shape_cast %49 : vector<1x1x272x256xbf16> to vector<272x256xbf16>
    %cst_45 = arith.constant dense<0.000000e+00> : vector<32x256xf32>
    %51 = tpu.matmul %48, %50, %cst_45 {dimension_numbers = #tpu.dot_dimension_numbers<[1], [0], [0], [1], [0, 0, 1, 1], [], []>} : vector<32x272xbf16>, vector<272x256xbf16>, vector<32x256xf32> -> vector<32x256xf32>
    %52 = arith.addf %47, %51 : vector<32x256xf32>
    %53 = vector.extract_strided_slice %42 {offsets = [2, 0], sizes = [32, 272], strides = [1, 1]} : vector<34x272xbf16> to vector<32x272xbf16>
    %c2_46 = arith.constant 2 : index
    %c2_47 = arith.constant 2 : index
    %c0_48 = arith.constant 0 : index
    %c0_49 = arith.constant 0 : index
    %54 = vector.load %arg3[%c2_46, %c2_47, %c0_48, %c0_49] : memref<3x3x272x256xbf16, #tpu.memory_space<vmem>>, vector<1x1x272x256xbf16>
    %55 = vector.shape_cast %54 : vector<1x1x272x256xbf16> to vector<272x256xbf16>
    %cst_50 = arith.constant dense<0.000000e+00> : vector<32x256xf32>
    %56 = tpu.matmul %53, %55, %cst_50 {dimension_numbers = #tpu.dot_dimension_numbers<[1], [0], [0], [1], [0, 0, 1, 1], [], []>} : vector<32x272xbf16>, vector<272x256xbf16>, vector<32x256xf32> -> vector<32x256xf32>
    %57 = arith.addf %52, %56 : vector<32x256xf32>
    %c0_51 = arith.constant 0 : index
    %c0_52 = arith.constant 0 : index
    %58 = vector.load %arg4[%c0_51, %c0_52] : memref<1x256xf32, #tpu.memory_space<vmem>>, vector<1x256xf32>
    %59 = vector.broadcast %58 : vector<1x256xf32> to vector<32x256xf32>
    %60 = arith.mulf %57, %59 : vector<32x256xf32>
    %c0_53 = arith.constant 0 : index
    %c0_54 = arith.constant 0 : index
    %61 = vector.load %arg5[%c0_53, %c0_54] : memref<1x256xf32, #tpu.memory_space<vmem>>, vector<1x256xf32>
    %62 = vector.broadcast %61 : vector<1x256xf32> to vector<32x256xf32>
    %63 = arith.addf %60, %62 : vector<32x256xf32>
    %cst_55 = arith.constant 0.000000e+00 : f32
    %64 = vector.broadcast %cst_55 : f32 to vector<32x256xf32>
    %65 = arith.maximumf %63, %64 : vector<32x256xf32>
    %66 = arith.truncf %65 : vector<32x256xf32> to vector<32x256xbf16>
    %c0_56 = arith.constant 0 : index
    %c0_57 = arith.constant 0 : index
    %c0_58 = arith.constant 0 : index
    %c0_59 = arith.constant 0 : index
    %67 = vector.load %arg6[%c0_56, %c0_57, %c0_58, %c0_59] : memref<1x1x32x256xbf16, #tpu.memory_space<vmem>>, vector<1x1x32x256xbf16>
    %68 = vector.shape_cast %67 : vector<1x1x32x256xbf16> to vector<32x256xbf16>
    %69 = vector.shape_cast %66 : vector<32x256xbf16> to vector<1x1x32x256xbf16>
    tpu.vector_store %arg6[%c0_56, %c0_57, %c0_58, %c0_59], %69 {strides = array<i32>} : memref<1x1x32x256xbf16, #tpu.memory_space<vmem>>, vector<1x1x32x256xbf16>,
    return
  }
  func.func @transform_0(%arg0: i32, %arg1: i32) -> (i32, i32, i32, i32) {
    %c0_i32 = arith.constant 0 : i32
    %c0_i32_0 = arith.constant 0 : i32
    %c0_i32_1 = arith.constant 0 : i32
    %c0_i32_2 = arith.constant 0 : i32
    return %arg0, %c0_i32, %c0_i32_0, %c0_i32_1 : i32, i32, i32, i32
  }
  func.func @transform_1(%arg0: i32, %arg1: i32) -> (i32, i32, i32, i32) {
    %c0_i32 = arith.constant 0 : i32
    %c0_i32_0 = arith.constant 0 : i32
    %c0_i32_1 = arith.constant 0 : i32
    %c0_i32_2 = arith.constant 0 : i32
    %c0_i32_3 = arith.constant 0 : i32
    return %c0_i32, %c0_i32_0, %c0_i32_1, %c0_i32_2 : i32, i32, i32, i32
  }
  func.func @transform_2(%arg0: i32, %arg1: i32) -> (i32, i32) {
    %c0_i32 = arith.constant 0 : i32
    %c0_i32_0 = arith.constant 0 : i32
    %c0_i32_1 = arith.constant 0 : i32
    return %c0_i32, %c0_i32_0 : i32, i32
  }
  func.func @transform_3(%arg0: i32, %arg1: i32) -> (i32, i32) {
    %c0_i32 = arith.constant 0 : i32
    %c0_i32_0 = arith.constant 0 : i32
    %c0_i32_1 = arith.constant 0 : i32
    return %c0_i32, %c0_i32_0 : i32, i32
  }
  func.func @transform_4(%arg0: i32, %arg1: i32) -> (i32, i32, i32, i32) {
    %c0_i32 = arith.constant 0 : i32
    %c0_i32_0 = arith.constant 0 : i32
    %c0_i32_1 = arith.constant 0 : i32
    return %arg0, %arg1, %c0_i32, %c0_i32_0 : i32, i32, i32, i32
  }
}

</mosaic_0001>

<bundles_post_ra>
// kernel: tpu_custom_call.1
= control target key start
LH: loop header
LB: loop body
LE: loop exit
PB: predicated region body
PF: predicated region fallthrough
CT: control target
= control target key end

     0   :  { %9 = vsyncpa [#allocation3], 0  ;;  %s8608_s0 = inlined_call_operand.vmem [shape: bf16[4,10,34,272], index: 0, kind: input, shape index: {}]   ;;  %s8609_s1 = inlined_call_operand.vmem [shape: bf16[3,3,272,256], index: 1, kind: input, shape index: {}]   ;;  %s8610_s2 = inlined_call_operand.vmem [shape: f32[1,256], index: 2, kind: input, shape index: {}]   ;;  %s8611_s3 = inlined_call_operand.vmem [shape: f32[1,256], index: 3, kind: input, shape index: {}]   ;;  %s8612_s4 = inlined_call_operand.hbm [shape: bf16[4,8,32,256], index: 4, kind: output, shape index: {}]  }
   0x1   :  { %11 = vsyncpa [#allocation3 + $0x1], 0  ;;  %s5906_s15 = smov 0   ;;  %s5908_s16 = smov 0  }
   0x2   :  { %s5910_s17 = smov 0   ;;  %s5912_s18 = smov 0  }
   0x3   :  { %s5914_s19 = smov 0   ;;  %s5916_s20 = smov 0  }
   0x4   :  { %s5918_s21 = smov 0   ;;  %s5920_s22 = smov 0  }
   0x5 LB: > { %s3738_s23 = sadd.s32 4294967295, %s5877_s22   ;;  %s3739_s24 = sadd.s32 4294967294, %s5877_s22   ;;  %s5877_s22 = sphi %s5920_s22, %s17_s22   ;;  %s5873_s21 = sphi %s5918_s21, %s8624_s21   ;;  %s5869_s20 = sphi %s5916_s20, %s8623_s20   ;;  %s5865_s19 = sphi %s5914_s19, %s8622_s19   ;;  %s5861_s18 = sphi %s5912_s18, %s8621_s18   ;;  %s5857_s17 = sphi %s5910_s17, %s8620_s17   ;;  %s5853_s16 = sphi %s5908_s16, %s8619_s16   ;;  %s5849_s15 = sphi %s5906_s15, %s8618_s15  }
   0x6   : > { %s26_s25 = sadd.s32 1, %s5869_s20  ;;  %s29_s26 = sadd.s32 1, %s5873_s21 }
   0x7   : > { %p27_p0 = scmp.ge.s32.totalorder %s26_s25, 8  ;;  %p137_p1 = scmp.ne.s32.totalorder %s5857_s17, %s5853_s16 }
   0x8   : > { %p138_p2 = scmp.eq.s32.totalorder %s3738_s23, 31  ;;  %p143_p5 = scmp.ne.s32.totalorder %s5853_s16, %s5849_s15 }
   0x9   : > { %s8626_s25 = smov (%p27_p0, %s26_s25), 0  ;;  %s8628_s26 = smov (!%p27_p0, %s29_s26), %s5873_s21 }
   0xa   : > { %s123_s27 = ssub.s32 %s5869_s20, %s8626_s25  ;;  %p5957_p3 = por %p138_p2, %p137_p1 }
   0xb   : > { %p31_p4 = scmp.ge.s32.totalorder %s8628_s26, 4  ;;  %p144_p6 = scmp.eq.s32.totalorder %s3739_s24, 31 }
   0xc   : > { %p3742_p7 = scmp.ge.s32.totalorder %s5877_s22, 1  ;;  %p179_p9 = scmp.lt.s32.totalorder %s5877_s22, 33 }
   0xd   : > { %s8630_s26 = smov (%p31_p4, %s8628_s26), 0  ;;  %p5966_p8 = por %p144_p6, %p143_p5 }
   0xe   : > { %8615 = sst [smem:[#allocation5_spill]] %s8630_s26  ;;  %s122_s30 = ssub.s32 %s5873_s21, %s8630_s26 }
   0xf   : > { %s127_s5 = sadd.s32 1, %s5857_s17  ;;  %s124_s6 = sor.u32 %s123_s27, %s122_s30 }
  0x10   : > { %p180_p10 = pnand %p3742_p7, %p179_p9  ;;  %p125_p11 = scmp.eq.s32.totalorder %s124_s6, 0 }
  0x11   : > { %p205_p12 = scmp.lt.s32.totalorder (!%p180_p10), %s5865_s19, 3  ;;  %s5376_s8 = smul.u32 (!%p180_p10), 60, %s5861_s18 }
  0x12   : > { %s5975_s7 = scalar_select %p125_p11, %s5857_s17, %s127_s5  }
  0x13   : > { %183 = sbr.rel (%p180_p10) target bundleno = 639 (0x27f), region = 36  ;;  %s5372_s26 = sshll.u32 (!%p180_p10), %s5865_s19, 6 }
  0x18   : > { %v3862_v0 = vld [vmem:[%s8609_s1 + $0x180] sm:$0xf]  ;;  %v5432_v1 = vld [vmem:[%s8609_s1 + $0x184] sm:$0xf0]  ;;  %v5431_v5 = vld [vmem:[%s8609_s1 + $0x184] sm:$0xf] }
  0x19   : > { %v3926_v2 = vld [vmem:[%s8609_s1 + $0x200] sm:$0xf]  ;;  %v3863_v3 = vor.u32 %v5432_v1, %v3862_v0  ;;  %v5448_v4 = vld [vmem:[%s8609_s1 + $0x204] sm:$0xf0]  ;;  %v3864_v6 = vld [vmem:[%s8609_s1 + $0x188] sm:$0xf0] }
  0x1a   : > { %v3927_v7 = vor.u32 %v5448_v4, %v3926_v2  ;;  %v3867_v8 = vor.u32 %v5431_v5, %v3864_v6  ;;  %v3854_v9 = vld [vmem:[%s8609_s1 + $0x170] sm:$0xf]  ;;  %v5430_v10 = vld [vmem:[%s8609_s1 + $0x174] sm:$0xf0]  ;;  %v5429_v14 = vld [vmem:[%s8609_s1 + $0x174] sm:$0xf] }
  0x1b   : > { %v3918_v11 = vld [vmem:[%s8609_s1 + $0x1f0] sm:$0xf]  ;;  %569 = vmatpush.bf16.msra.mxu0 %v3863_v3  ;;  %v3855_v12 = vor.u32 %v5430_v10, %v3854_v9  ;;  %v5446_v13 = vld [vmem:[%s8609_s1 + $0x1f4] sm:$0xf0]  ;;  %v3856_v15 = vld [vmem:[%s8609_s1 + $0x178] sm:$0xf0] }
  0x1c   : > { %588 = vmatpush.bf16.msra.mxu1 %v3927_v7  ;;  %626 = vmatpush.bf16.msra.mxu3 %v3867_v8  ;;  %v3919_v16 = vor.u32 %v5446_v13, %v3918_v11  ;;  %v3859_v17 = vor.u32 %v5429_v14, %v3856_v15  ;;  %v3846_v18 = vld [vmem:[%s8609_s1 + $0x160] sm:$0xf]  ;;  %v5428_v19 = vld [vmem:[%s8609_s1 + $0x164] sm:$0xf0]  ;;  %v5427_v22 = vld [vmem:[%s8609_s1 + $0x164] sm:$0xf] }
  0x1d   : > { %v3910_v20 = vld [vmem:[%s8609_s1 + $0x1e0] sm:$0xf]  ;;  %v5444_v21 = vld [vmem:[%s8609_s1 + $0x1e4] sm:$0xf0]  ;;  %v3848_v23 = vld [vmem:[%s8609_s1 + $0x168] sm:$0xf0]  ;;  %v3847_v26 = vor.u32 %v5428_v19, %v3846_v18 }
  0x1e   : > { %v3838_v24 = vld [vmem:[%s8609_s1 + $0x150] sm:$0xf]  ;;  %v5426_v25 = vld [vmem:[%s8609_s1 + $0x154] sm:$0xf0]  ;;  %v3911_v30 = vor.u32 %v5444_v21, %v3910_v20  ;;  %v3851_v31 = vor.u32 %v5427_v22, %v3848_v23  ;;  %v5425_v34 = vld [vmem:[%s8609_s1 + $0x154] sm:$0xf] }
  0x1f   : > { %570 = vmatpush.bf16.msra.mxu0 %v3855_v12  ;;  %v3902_v27 = vld [vmem:[%s8609_s1 + $0x1d0] sm:$0xf]  ;;  %v5450_v29 = vld [vmem:[%s8609_s1 + $0x214] sm:$0xf0]  ;;  %v3840_v35 = vld [vmem:[%s8609_s1 + $0x158] sm:$0xf0]  ;;  %v3839_v38 = vor.u32 %v5426_v25, %v3838_v24 }
  0x20   : > { %v3934_v28 = vld [vmem:[%s8609_s1 + $0x210] sm:$0xf]  ;;  %589 = vmatpush.bf16.msra.mxu1 %v3919_v16  ;;  %627 = vmatpush.bf16.msra.mxu3 %v3859_v17  ;;  %v5442_v32 = vld [vmem:[%s8609_s1 + $0x1d4] sm:$0xf0]  ;;  %v5447_v36 = vld [vmem:[%s8609_s1 + $0x204] sm:$0xf]  ;;  %v3843_v44 = vor.u32 %v5425_v34, %v3840_v35 }
  0x21   : > { %v3935_v33 = vor.u32 %v5450_v29, %v3934_v28  ;;  %s206_s11 = scalar_select %p205_p12, %s5865_s19, 3  ;;  %v3928_v37 = vld [vmem:[%s8609_s1 + $0x208] sm:$0xf0]  ;;  %v3830_v40 = vld [vmem:[%s8609_s1 + $0x140] sm:$0xf]  ;;  %v3903_v43 = vor.u32 %v5442_v32, %v3902_v27  ;;  %vm562_vm1 = vcmask 130048  }
  0x22   : > { %v3931_v39 = vor.u32 %v5447_v36, %v3928_v37  ;;  %v5424_v41 = vld [vmem:[%s8609_s1 + $0x144] sm:$0xf0]  ;;  %v3894_v42 = vld [vmem:[%s8609_s1 + $0x1c0] sm:$0xf]  ;;  %v5423_v46 = vld [vmem:[%s8609_s1 + $0x144] sm:$0xf] }
  0x23   : > { %614 = vmatpush.bf16.msra.mxu2 %v3935_v33  ;;  %571 = vmatpush.bf16.msra.mxu0 %v3847_v26  ;;  %s5709_s6 = smul.u32 600, %s206_s11  ;;  %v5440_v45 = vld [vmem:[%s8609_s1 + $0x1c4] sm:$0xf0]  ;;  %v3832_v47 = vld [vmem:[%s8609_s1 + $0x148] sm:$0xf0]  ;;  %v3831_v53 = vor.u32 %v5424_v41, %v3830_v40  ;;  %vm1010_vm2 = vcmask 1046528  }
  0x24   : > { %590 = vmatpush.bf16.msra.mxu1 %v3911_v30  ;;  %628 = vmatpush.bf16.msra.mxu3 %v3851_v31  ;;  %v5445_v48 = vld [vmem:[%s8609_s1 + $0x1f4] sm:$0xf]  ;;  %v3920_v49 = vld [vmem:[%s8609_s1 + $0x1f8] sm:$0xf0]  ;;  %v3822_v51 = vld [vmem:[%s8609_s1 + $0x130] sm:$0xf]  ;;  %v3895_v61 = vor.u32 %v5440_v45, %v3894_v42  ;;  %v3835_v62 = vor.u32 %v5423_v46, %v3832_v47 }
  0x25   : > { %s209_s10 = scalar_lea.vmem %s8608_s0, %s5709_s6  ;;  %v3923_v50 = vor.u32 %v5445_v48, %v3920_v49  ;;  %v5422_v52 = vld [vmem:[%s8609_s1 + $0x134] sm:$0xf0]  ;;  %v3886_v54 = vld [vmem:[%s8609_s1 + $0x1b0] sm:$0xf]  ;;  %v5421_v56 = vld [vmem:[%s8609_s1 + $0x134] sm:$0xf] }
  0x26   : > { %s6097_s23 = scalar_lea.vmem %s209_s10, %s5376_s8  ;;  %v5438_v55 = vld [vmem:[%s8609_s1 + $0x1b4] sm:$0xf0]  ;;  %v5443_v57 = vld [vmem:[%s8609_s1 + $0x1e4] sm:$0xf]  ;;  %v3824_v1 = vld [vmem:[%s8609_s1 + $0x138] sm:$0xf0]  ;;  %v3823_v9 = vor.u32 %v5422_v52, %v3822_v51 }
  0x27   : > { %645 = vmatpush.bf16.msrb.mxu2 %v3931_v39  ;;  %572 = vmatpush.bf16.msra.mxu0 %v3839_v38  ;;  %v3790_v58 = vld [vmem:[%s6097_s23 + $0x8] sm:$0xf]  ;;  %v5379_v59 = vld [vmem:[%s6097_s23 + $0x10] sm:$0xf0]  ;;  %v3802_v60 = vld [vmem:[%s6097_s23 + $0x20] sm:$0xf]  ;;  %v3887_v15 = vor.u32 %v5438_v55, %v3886_v54  ;;  %v3827_v16 = vor.u32 %v5421_v56, %v3824_v1 }
  0x28   : > { %591 = vmatpush.bf16.msra.mxu1 %v3903_v43  ;;  %629 = vmatpush.bf16.msra.mxu3 %v3843_v44  ;;  %v5382_v63 = vld [vmem:[%s6097_s23 + $0x28] sm:$0xf0]  ;;  %v6115_v0 = vor.u32 %v5379_v59, %v3790_v58  ;;  %vm327_vm0 = vsmask.f32 7424  ;;  %v3814_v5 = vld [vmem:[%s8609_s1 + $0x120] sm:$0xf] }
  0x29   : > { %v3912_v2 = vld [vmem:[%s8609_s1 + $0x1e8] sm:$0xf0]  ;;  %v6123_v3 = vor.u32 %v5382_v63, %v3802_v60  ;;  %v5420_v6 = vld [vmem:[%s8609_s1 + $0x124] sm:$0xf0]  ;;  %v3878_v10 = vld [vmem:[%s8609_s1 + $0x1a0] sm:$0xf] }
  0x2a   : > { %v3915_v4 = vor.u32 %v5443_v57, %v3912_v2  ;;  %v353_v7 = vshrl.u32 %v6115_v0, 16  ;;  %v355_v8 = vshll.u32 %v6115_v0, 16  ;;  %v5436_v11 = vld [vmem:[%s8609_s1 + $0x1a4] sm:$0xf0]  ;;  %v5419_v12 = vld [vmem:[%s8609_s1 + $0x124] sm:$0xf]  ;;  %v3815_v27 = vor.u32 %v5420_v6, %v3814_v5 }
  0x2b   : > { %646 = vmatpush.bf16.msrb.mxu2 %v3923_v50  ;;  %573 = vmatpush.bf16.msra.mxu0 %v3831_v53  ;;  %v3816_v13 = vld [vmem:[%s8609_s1 + $0x128] sm:$0xf0]  ;;  %v360_v14 = vshll.u32 %v6123_v3, 16  ;;  %v5441_v17 = vld [vmem:[%s8609_s1 + $0x1d4] sm:$0xf]  ;;  %v3879_v31 = vor.u32 %v5436_v11, %v3878_v10  ;;  %s202_s6 = sand.u32 1, %s5853_s16  }
  0x2c   : > { %592 = vmatpush.bf16.msra.mxu1 %v3895_v61  ;;  %630 = vmatpush.bf16.msra.mxu3 %v3835_v62  ;;  %v3904_v18 = vld [vmem:[%s8609_s1 + $0x1d8] sm:$0xf0]  ;;  %v357_v19 = vrot.slane %v355_v8, 1  ;;  %v3806_v21 = vld [vmem:[%s8609_s1 + $0x110] sm:$0xf]  ;;  %v3819_v32 = vor.u32 %v5419_v12, %v3816_v13  ;;  %s3743_s30 = sshll.u32 %s202_s6, 5 }
  0x2d   : > { %v3907_v20 = vor.u32 %v5441_v17, %v3904_v18  ;;  %v5418_v22 = vld [vmem:[%s8609_s1 + $0x114] sm:$0xf0]  ;;  %v6158_v23 = vrot.slane %v360_v14, 1  ;;  %v3870_v24 = vld [vmem:[%s8609_s1 + $0x190] sm:$0xf]  ;;  %s8539_s5 = scalar_lea.vmem [#allocation2], %s3743_s30 }
  0x2e   : > { %v5434_v25 = vld [vmem:[%s8609_s1 + $0x194] sm:$0xf0]  ;;  %v358_v26 = vor.u32 %v357_v19, %v353_v7  ;;  %v5417_v28 = vld [vmem:[%s8609_s1 + $0x114] sm:$0xf]  ;;  %v3808_v29 = vld [vmem:[%s8609_s1 + $0x118] sm:$0xf0]  ;;  %v3807_v42 = vor.u32 %v5418_v22, %v3806_v21 }
  0x2f   : > { %647 = vmatpush.bf16.msrb.mxu2 %v3915_v4  ;;  %574 = vmatpush.bf16.msra.mxu0 %v3823_v9  ;;  %v3782_v30 = vld [vmem:[%s6097_s23] sm:$0xf]  ;;  %v5378_v33 = vld [vmem:[%s6097_s23 + $0x8] sm:$0xf0]  ;;  %v3794_v34 = vld [vmem:[%s6097_s23 + $0x18] sm:$0xf]  ;;  %v3871_v43 = vor.u32 %v5434_v25, %v3870_v24  ;;  %v3811_v44 = vor.u32 %v5417_v28, %v3808_v29 }
  0x30   : > { %593 = vmatpush.bf16.msra.mxu1 %v3887_v15  ;;  %631 = vmatpush.bf16.msra.mxu3 %v3827_v16  ;;  %v5381_v35 = vld [vmem:[%s6097_s23 + $0x20] sm:$0xf0]  ;;  %v6178_v36 = vsel %vm327_vm0, %v358_v26, %v6158_v23  ;;  %v6180_v37 = vor.u32 %v5378_v33, %v3782_v30  ;;  %v3784_v40 = vld [vmem:[%s6097_s23 + $0xc] sm:$0xf0]  ;;  %v5380_v41 = vld [vmem:[%s6097_s23 + $0x1c] sm:$0xf] }
  0x31   : > { %v6182_v38 = vor.u32 %v5381_v35, %v3794_v34  ;;  %v5377_v39 = vld [vmem:[%s6097_s23 + $0x4] sm:$0xf]  ;;  %3940 = vmatmul.msk.bf16.vlgmr.msra.gmra.mxu2 %vm562_vm1, %v6178_v36  ;;  %v3796_v45 = vld [vmem:[%s6097_s23 + $0x24] sm:$0xf0]  ;;  %v223_v47 = vld [vmem:[%s6097_s23 + $0x38] sm:$0x1] }
  0x32   : > { %v6190_v46 = vor.u32 %v5377_v39, %v3784_v40  ;;  %v5439_v48 = vld [vmem:[%s8609_s1 + $0x1c4] sm:$0xf]  ;;  %v329_v49 = vshrl.u32 %v6180_v37, 16  ;;  %v331_v50 = vshll.u32 %v6180_v37, 16  ;;  %v6199_v52 = vor.u32 %v5380_v41, %v3796_v45  ;;  %v3896_v53 = vld [vmem:[%s8609_s1 + $0x1c8] sm:$0xf0] }
  0x33   : > { %648 = vmatpush.bf16.msrb.mxu2 %v3907_v20  ;;  %575 = vmatpush.bf16.msra.mxu0 %v3815_v27  ;;  %v336_v51 = vshll.u32 %v6182_v38, 16  ;;  %v317_v56 = vunpack.c.l.b16 %v223_v47  ;;  %v3899_v57 = vor.u32 %v5439_v48, %v3896_v53  ;;  %v4002_v58 = vld [vmem:[%s8609_s1 + $0x70] sm:$0xf]  ;;  %v5398_v59 = vld [vmem:[%s8609_s1 + $0x74] sm:$0xf0]  ;;  %v380_v9 = vshrl.u32 %v6123_v3, 16 }
  0x34   : > { %594 = vmatpush.bf16.msra.mxu1 %v3879_v31  ;;  %632 = vmatpush.bf16.msra.mxu3 %v3819_v32  ;;  %v341_v54 = vshrl.u32 %v6190_v46, 16  ;;  %v343_v55 = vshll.u32 %v6190_v46, 16  ;;  %v333_v60 = vrot.slane %v331_v50, 1  ;;  %v348_v62 = vshll.u32 %v6199_v52, 16  ;;  %v4066_v1 = vld [vmem:[%s8609_s1 + $0xf0] sm:$0xf] }
  0x35   : > { %v6212_v61 = vrot.slane %v336_v51, 1  ;;  %v4003_v63 = vor.u32 %v5398_v59, %v4002_v58  ;;  %v6218_v4 = vpack.c.b16 %v317_v56, %v317_v56  ;;  %v5414_v5 = vld [vmem:[%s8609_s1 + $0xf4] sm:$0xf0]  ;;  %v5437_v6 = vld [vmem:[%s8609_s1 + $0x1b4] sm:$0xf]  ;;  %v364_v18 = vshrl.u32 %v6182_v38, 16 }
  0x36   : > { %v345_v2 = vrot.slane %v343_v55, 1  ;;  %v334_v7 = vor.u32 %v333_v60, %v329_v49  ;;  %v6226_v8 = vrot.slane %v348_v62, 1  ;;  %v4067_v10 = vor.u32 %v5414_v5, %v4066_v1  ;;  %v3888_v11 = vld [vmem:[%s8609_s1 + $0x1b8] sm:$0xf0]  ;;  %v3994_v12 = vld [vmem:[%s8609_s1 + $0x60] sm:$0xf] }
  0x37   : > { %649 = vmatpush.bf16.msrb.mxu2 %v3899_v57  ;;  %576 = vmatpush.bf16.msra.mxu0 %v3807_v42  ;;  %v384_v14 = vshll.u32 %v6218_v4, 16  ;;  %v3891_v15 = vor.u32 %v5437_v6, %v3888_v11  ;;  %v5396_v16 = vld [vmem:[%s8609_s1 + $0x64] sm:$0xf0]  ;;  %v4058_v17 = vld [vmem:[%s8609_s1 + $0xe0] sm:$0xf]  ;;  %v382_v31 = vor.u32 %v380_v9, %v6158_v23  ;;  %v372_v57 = vshrl.u32 %v6199_v52, 16 }
  0x38   : > { %595 = vmatpush.bf16.msra.mxu1 %v3871_v43  ;;  %633 = vmatpush.bf16.msra.mxu3 %v3811_v44  ;;  %v346_v13 = vor.u32 %v345_v2, %v341_v54  ;;  %v339_v19 = vsel %vm327_vm0, %v334_v7, %v6212_v61  ;;  %v3995_v20 = vor.u32 %v5396_v16, %v3994_v12  ;;  %v5412_v21 = vld [vmem:[%s8609_s1 + $0xe4] sm:$0xf0]  ;;  %v5435_v22 = vld [vmem:[%s8609_s1 + $0x1a4] sm:$0xf]  ;;  %v3880_v24 = vld [vmem:[%s8609_s1 + $0x1a8] sm:$0xf0] }
  0x39   : > { %v386_v26 = vrot.slane %v384_v14, 1  ;;  %v4059_v27 = vor.u32 %v5412_v21, %v4058_v17  ;;  %v3883_v28 = vor.u32 %v5435_v22, %v3880_v24  ;;  %v5449_v29 = vld [vmem:[%s8609_s1 + $0x214] sm:$0xf]  ;;  %v3936_v30 = vld [vmem:[%s8609_s1 + $0x218] sm:$0xf0]  ;;  %v366_v6 = vor.u32 %v364_v18, %v6212_v61  ;;  %s5371_s11 = sshll.u32 %s5861_s18, 3 }
  0x3a   : > { %577 = vmatmul.bf16.vlgmr.msra.gmra.mxu0 %v339_v19  ;;  %v6256_v25 = vsel %vm327_vm0, %v346_v13, %v6226_v8  ;;  %v3939_v32 = vor.u32 %v5449_v29, %v3936_v30  ;;  %v3986_v33 = vld [vmem:[%s8609_s1 + $0x50] sm:$0xf]  ;;  %v5394_v34 = vld [vmem:[%s8609_s1 + $0x54] sm:$0xf0]  ;;  %v5433_v23 = vld [vmem:[%s8609_s1 + $0x194] sm:$0xf]  ;;  %s3648_s8 = sadd.s32 %s5372_s26, %s5371_s11 }
  0x3b   : > { %650 = vmatpush.bf16.msrb.mxu2 %v3891_v15  ;;  %596 = vmatmul.bf16.vlgmr.msra.gmra.mxu1 %v6256_v25  ;;  %v4050_v35 = vld [vmem:[%s8609_s1 + $0xd0] sm:$0xf]  ;;  %v5410_v39 = vld [vmem:[%s8609_s1 + $0xd4] sm:$0xf0]  ;;  %v3872_v40 = vld [vmem:[%s8609_s1 + $0x198] sm:$0xf0]  ;;  %v3987_v41 = vor.u32 %v5394_v34, %v3986_v33  ;;  %v6301_v50 = vsel %vm327_vm0, %v382_v31, %v386_v26 }
  0x3c   : > { %861 = vmatpush.bf16.msrb.mxu1 %v4003_v63  ;;  %880 = vmatpush.bf16.msrb.mxu3 %v4067_v10  ;;  %v4051_v42 = vor.u32 %v5410_v39, %v4050_v35  ;;  %v3978_v43 = vld [vmem:[%s8609_s1 + $0x40] sm:$0xf]  ;;  %v5392_v44 = vld [vmem:[%s8609_s1 + $0x44] sm:$0xf0]  ;;  %v222_v48 = vld [vmem:[%s6097_s23 + $0x30] sm:$0x11]  ;;  %v3875_v51 = vor.u32 %v5433_v23, %v3872_v40  ;;  %v374_v10 = vor.u32 %v372_v57, %v6226_v8 }
  0x3d   : > { %634 = vmatmul.bf16.vlgmr.msra.gmra.mxu3 %v339_v19  ;;  %v4042_v45 = vld [vmem:[%s8609_s1 + $0xc0] sm:$0xf]  ;;  %671 = vmatpush.bf16.msrb.mxu0 %v3939_v32  ;;  %v5408_v47 = vld [vmem:[%s8609_s1 + $0xc4] sm:$0xf0]  ;;  %v315_v53 = vunpack.c.l.b16 %v222_v48  ;;  %v316_v54 = vunpack.c.h.b16 %v222_v48  ;;  %v3979_v56 = vor.u32 %v5392_v44, %v3978_v43  ;;  %v3970_v63 = vld [vmem:[%s8609_s1 + $0x30] sm:$0xf] }
  0x3e   : > { %v4074_v49 = vld [vmem:[%s8609_s1 + $0x100] sm:$0xf]  ;;  %v5416_v55 = vld [vmem:[%s8609_s1 + $0x104] sm:$0xf0]  ;;  %v4043_v59 = vor.u32 %v5408_v47, %v4042_v45  ;;  %v5390_v1 = vld [vmem:[%s8609_s1 + $0x34] sm:$0xf0] }
  0x3f   : > { %651 = vmatpush.bf16.msrb.mxu2 %v3883_v28  ;;  %v4075_v58 = vor.u32 %v5416_v55, %v4074_v49  ;;  %v6307_v60 = vpack.c.b16 %v315_v53, %v315_v53  ;;  %v6309_v62 = vpack.c.b16 %v316_v54, %v316_v54  ;;  %v4034_v2 = vld [vmem:[%s8609_s1 + $0xb0] sm:$0xf]  ;;  %v5406_v5 = vld [vmem:[%s8609_s1 + $0xb4] sm:$0xf0]  ;;  %v3962_v11 = vld [vmem:[%s8609_s1 + $0x20] sm:$0xf]  ;;  %v3971_v61 = vor.u32 %v5390_v1, %v3970_v63 }
  0x40   : > { %862 = vmatpush.bf16.msrb.mxu1 %v3995_v20  ;;  %881 = vmatpush.bf16.msrb.mxu3 %v4059_v27  ;;  %v5388_v12 = vld [vmem:[%s8609_s1 + $0x24] sm:$0xf0]  ;;  %v4035_v15 = vor.u32 %v5406_v5, %v4034_v2  ;;  %v5397_v16 = vld [vmem:[%s8609_s1 + $0x74] sm:$0xf]  ;;  %v4004_v8 = vld [vmem:[%s8609_s1 + $0x78] sm:$0xf0] }
  0x41   : > { %3941 = vmatmul.msk.bf16.gmra.mxu2 %vm562_vm1, %v6301_v50  ;;  %v368_v7 = vshll.u32 %v6307_v60, 16  ;;  %v376_v9 = vshll.u32 %v6309_v62, 16  ;;  %v4026_v17 = vld [vmem:[%s8609_s1 + $0xa0] sm:$0xf]  ;;  %v5404_v18 = vld [vmem:[%s8609_s1 + $0xa4] sm:$0xf0]  ;;  %v4007_v19 = vor.u32 %v5397_v16, %v4004_v8  ;;  %v3963_v27 = vor.u32 %v5388_v12, %v3962_v11 }
  0x42   : > { %v5395_v20 = vld [vmem:[%s8609_s1 + $0x64] sm:$0xf]  ;;  %v3996_v22 = vld [vmem:[%s8609_s1 + $0x68] sm:$0xf0]  ;;  %v4027_v28 = vor.u32 %v5404_v18, %v4026_v17  ;;  %v3954_v29 = vld [vmem:[%s8609_s1 + $0x10] sm:$0xf] }
  0x43   : > { %652 = vmatpush.bf16.msrb.mxu2 %v3875_v51  ;;  %v370_v13 = vrot.slane %v368_v7, 1  ;;  %v378_v14 = vrot.slane %v376_v9, 1  ;;  %918 = vmatpush.bf16.msra.mxu0 %v4007_v19  ;;  %v3999_v26 = vor.u32 %v5395_v20, %v3996_v22  ;;  %v5393_v30 = vld [vmem:[%s8609_s1 + $0x54] sm:$0xf]  ;;  %v3988_v31 = vld [vmem:[%s8609_s1 + $0x58] sm:$0xf0] }
  0x44   : > { %863 = vmatpush.bf16.msrb.mxu1 %v3987_v41  ;;  %882 = vmatpush.bf16.msrb.mxu3 %v4051_v42  ;;  %v5386_v32 = vld [vmem:[%s8609_s1 + $0x14] sm:$0xf0]  ;;  %v4018_v33 = vld [vmem:[%s8609_s1 + $0x90] sm:$0xf]  ;;  %v3991_v35 = vor.u32 %v5393_v30, %v3988_v31  ;;  %v3946_v40 = vld [vmem:[%s8609_s1] sm:$0xf] }
  0x45   : > { %v371_v21 = vsel %vm327_vm0, %v366_v6, %v370_v13  ;;  %v6355_v24 = vsel %vm327_vm0, %v374_v10, %v378_v14  ;;  %v5402_v34 = vld [vmem:[%s8609_s1 + $0x94] sm:$0xf0]  ;;  %v3955_v39 = vor.u32 %v5386_v32, %v3954_v29  ;;  %v5391_v41 = vld [vmem:[%s8609_s1 + $0x44] sm:$0xf]  ;;  %v3980_v42 = vld [vmem:[%s8609_s1 + $0x48] sm:$0xf0] }
  0x46   : > { %v4019_v23 = vor.u32 %v5402_v34, %v4018_v33  ;;  %v5384_v43 = vld [vmem:[%s8609_s1 + $0x4] sm:$0xf0]  ;;  %v4010_v44 = vld [vmem:[%s8609_s1 + $0x80] sm:$0xf]  ;;  %v5413_v47 = vld [vmem:[%s8609_s1 + $0xf4] sm:$0xf]  ;;  %v3983_v49 = vor.u32 %v5391_v41, %v3980_v42 }
  0x47   : > { %906 = vmatpush.bf16.msra.mxu2 %v4075_v58  ;;  %919 = vmatpush.bf16.msra.mxu0 %v3999_v26  ;;  %v5400_v45 = vld [vmem:[%s8609_s1 + $0x84] sm:$0xf0]  ;;  %v4068_v48 = vld [vmem:[%s8609_s1 + $0xf8] sm:$0xf0]  ;;  %v4176_v51 = vld [vmem:[%s8609_s1 + $0x290] sm:$0xf]  ;;  %v3947_v54 = vor.u32 %v5384_v43, %v3946_v40 }
  0x48   : > { %864 = vmatpush.bf16.msrb.mxu1 %v3979_v56  ;;  %883 = vmatpush.bf16.msrb.mxu3 %v4043_v59  ;;  %v5466_v53 = vld [vmem:[%s8609_s1 + $0x294] sm:$0xf0]  ;;  %v4011_v55 = vor.u32 %v5400_v45, %v4010_v44  ;;  %v5389_v57 = vld [vmem:[%s8609_s1 + $0x34] sm:$0xf]  ;;  %v3972_v58 = vld [vmem:[%s8609_s1 + $0x38] sm:$0xf0]  ;;  %v4071_v59 = vor.u32 %v5413_v47, %v4068_v48 }
  0x49   : > { %v4177_v56 = vor.u32 %v5466_v53, %v4176_v51  ;;  %v5415_v63 = vld [vmem:[%s8609_s1 + $0x104] sm:$0xf]  ;;  %v4076_v1 = vld [vmem:[%s8609_s1 + $0x108] sm:$0xf0]  ;;  %v4168_v2 = vld [vmem:[%s8609_s1 + $0x280] sm:$0xf]  ;;  %v3975_v9 = vor.u32 %v5389_v57, %v3972_v58 }
  0x4a   : > { %582 = vmatmul.bf16.gmra.mxu0 %v371_v21  ;;  %v5411_v5 = vld [vmem:[%s8609_s1 + $0xe4] sm:$0xf]  ;;  %v4079_v6 = vor.u32 %v5415_v63, %v4076_v1  ;;  %v5464_v7 = vld [vmem:[%s8609_s1 + $0x284] sm:$0xf0]  ;;  %v3964_v12 = vld [vmem:[%s8609_s1 + $0x28] sm:$0xf0] }
  0x4b   : > { %601 = vmatmul.bf16.gmra.mxu1 %v6355_v24  ;;  %920 = vmatpush.bf16.msra.mxu0 %v3991_v35  ;;  %v4169_v10 = vor.u32 %v5464_v7, %v4168_v2  ;;  %v5387_v11 = vld [vmem:[%s8609_s1 + $0x24] sm:$0xf]  ;;  %v4160_v13 = vld [vmem:[%s8609_s1 + $0x270] sm:$0xf]  ;;  %v5462_v14 = vld [vmem:[%s8609_s1 + $0x274] sm:$0xf0] }
  0x4c   : > { %865 = vmatpush.bf16.msrb.mxu1 %v3971_v61  ;;  %884 = vmatpush.bf16.msrb.mxu3 %v4035_v15  ;;  %v5409_v15 = vld [vmem:[%s8609_s1 + $0xd4] sm:$0xf]  ;;  %v4052_v16 = vld [vmem:[%s8609_s1 + $0xd8] sm:$0xf0]  ;;  %v3967_v8 = vor.u32 %v5387_v11, %v3964_v12  ;;  %v4161_v17 = vor.u32 %v5462_v14, %v4160_v13  ;;  %v4152_v20 = vld [vmem:[%s8609_s1 + $0x260] sm:$0xf] }
  0x4d   : > { %639 = vmatmul.bf16.gmra.mxu3 %v371_v21  ;;  %v5385_v18 = vld [vmem:[%s8609_s1 + $0x14] sm:$0xf]  ;;  %v3956_v19 = vld [vmem:[%s8609_s1 + $0x18] sm:$0xf0]  ;;  %v5460_v21 = vld [vmem:[%s8609_s1 + $0x264] sm:$0xf0]  ;;  %v4055_v22 = vor.u32 %v5409_v15, %v4052_v16 }
  0x4e   : > { %v5407_v26 = vld [vmem:[%s8609_s1 + $0xc4] sm:$0xf]  ;;  %v4153_v29 = vor.u32 %v5460_v21, %v4152_v20  ;;  %v3948_v30 = vld [vmem:[%s8609_s1 + $0x8] sm:$0xf0]  ;;  %v5405_v32 = vld [vmem:[%s8609_s1 + $0xb4] sm:$0xf] }
  0x4f   : > { %921 = vmatpush.bf16.msra.mxu0 %v3983_v49  ;;  %v4036_v33 = vld [vmem:[%s8609_s1 + $0xb8] sm:$0xf0]  ;;  %v4144_v35 = vld [vmem:[%s8609_s1 + $0x250] sm:$0xf]  ;;  %v5482_v41 = vld [vmem:[%s8609_s1 + $0x314] sm:$0xf0] }
  0x50   : > { %866 = vmatpush.bf16.msrb.mxu1 %v3963_v27  ;;  %885 = vmatpush.bf16.msrb.mxu3 %v4027_v28  ;;  %v4044_v27 = vld [vmem:[%s8609_s1 + $0xc8] sm:$0xf0]  ;;  %v3959_v28 = vor.u32 %v5385_v18, %v3956_v19  ;;  %v4039_v42 = vor.u32 %v5405_v32, %v4036_v33  ;;  %v4136_v44 = vld [vmem:[%s8609_s1 + $0x240] sm:$0xf]  ;;  %v5456_v45 = vld [vmem:[%s8609_s1 + $0x244] sm:$0xf0] }
  0x51   : > { %653 = vmatmul.bf16.vlgmr.msrb.gmra.mxu2 %v6256_v25  ;;  %v4060_v25 = vld [vmem:[%s8609_s1 + $0xe8] sm:$0xf0]  ;;  %v4047_v31 = vor.u32 %v5407_v26, %v4044_v27  ;;  %v4232_v47 = vld [vmem:[%s8609_s1 + $0x300] sm:$0xf]  ;;  %v5480_v49 = vld [vmem:[%s8609_s1 + $0x304] sm:$0xf0]  ;;  %v4137_v51 = vor.u32 %v5456_v45, %v4136_v44 }
  0x52   : > { %1206 = vmatpush.bf16.msrb.mxu2 %v4177_v56  ;;  %v4063_v61 = vor.u32 %v5411_v5, %v4060_v25  ;;  %v4028_v48 = vld [vmem:[%s8609_s1 + $0xa8] sm:$0xf0]  ;;  %v5465_v53 = vld [vmem:[%s8609_s1 + $0x294] sm:$0xf]  ;;  %v5454_v56 = vld [vmem:[%s8609_s1 + $0x234] sm:$0xf0] }
  0x53   : > { %922 = vmatpush.bf16.msra.mxu0 %v3975_v9  ;;  %v4178_v57 = vld [vmem:[%s8609_s1 + $0x298] sm:$0xf0]  ;;  %v5478_v63 = vld [vmem:[%s8609_s1 + $0x2f4] sm:$0xf0]  ;;  %v5463_v2 = vld [vmem:[%s8609_s1 + $0x284] sm:$0xf] }
  0x54   : > { %867 = vmatpush.bf16.msrb.mxu1 %v3955_v39  ;;  %886 = vmatpush.bf16.msrb.mxu3 %v4019_v23  ;;  %v5458_v39 = vld [vmem:[%s8609_s1 + $0x254] sm:$0xf0]  ;;  %v4240_v23 = vld [vmem:[%s8609_s1 + $0x310] sm:$0xf]  ;;  %v4181_v1 = vor.u32 %v5465_v53, %v4178_v57  ;;  %v5401_v5 = vld [vmem:[%s8609_s1 + $0x94] sm:$0xf] }
  0x55   : > { %v4145_v40 = vor.u32 %v5458_v39, %v4144_v35  ;;  %v6496_v43 = vor.u32 %v5482_v41, %v4240_v23  ;;  %v4020_v25 = vld [vmem:[%s8609_s1 + $0x98] sm:$0xf0]  ;;  %v4120_v11 = vld [vmem:[%s8609_s1 + $0x220] sm:$0xf]  ;;  %v5452_v12 = vld [vmem:[%s8609_s1 + $0x224] sm:$0xf0] }
  0x56   : > { %1207 = vmatpush.bf16.msrb.mxu2 %v4169_v10  ;;  %v4023_v13 = vor.u32 %v5401_v5, %v4020_v25  ;;  %v4216_v14 = vld [vmem:[%s8609_s1 + $0x2e0] sm:$0xf]  ;;  %v5399_v15 = vld [vmem:[%s8609_s1 + $0x84] sm:$0xf]  ;;  %v4121_v16 = vor.u32 %v5452_v12, %v4120_v11  ;;  %v5481_v18 = vld [vmem:[%s8609_s1 + $0x314] sm:$0xf] }
  0x57   : > { %923 = vmatpush.bf16.msra.mxu0 %v3967_v8  ;;  %v4242_v19 = vld [vmem:[%s8609_s1 + $0x318] sm:$0xf0]  ;;  %v4208_v20 = vld [vmem:[%s8609_s1 + $0x2d0] sm:$0xf]  ;;  %v5461_v26 = vld [vmem:[%s8609_s1 + $0x274] sm:$0xf] }
  0x58   : > { %868 = vmatpush.bf16.msrb.mxu1 %v3947_v54  ;;  %887 = vmatpush.bf16.msrb.mxu3 %v4011_v55  ;;  %v6520_v54 = vor.u32 %v5480_v49, %v4232_v47  ;;  %v4128_v55 = vld [vmem:[%s8609_s1 + $0x230] sm:$0xf]  ;;  %v4245_v21 = vor.u32 %v5481_v18, %v4242_v19  ;;  %v4162_v27 = vld [vmem:[%s8609_s1 + $0x278] sm:$0xf0]  ;;  %v5472_v33 = vld [vmem:[%s8609_s1 + $0x2c4] sm:$0xf0] }
  0x59   : > { %v4129_v7 = vor.u32 %v5454_v56, %v4128_v55  ;;  %v4154_v35 = vld [vmem:[%s8609_s1 + $0x268] sm:$0xf0]  ;;  %v4226_v41 = vld [vmem:[%s8609_s1 + $0x2f8] sm:$0xf0]  ;;  %v5457_v44 = vld [vmem:[%s8609_s1 + $0x254] sm:$0xf] }
  0x5a   : > { %3942 = vmatmul.msk.bf16.vlgmr.msrb.gmra.mxu0 %vm562_vm1, %v6178_v36  ;;  %1208 = vmatpush.bf16.msrb.mxu2 %v4161_v17  ;;  %v5383_v36 = vld [vmem:[%s8609_s1 + $0x4] sm:$0xf]  ;;  %v4146_v45 = vld [vmem:[%s8609_s1 + $0x258] sm:$0xf0]  ;;  %v4184_v53 = vld [vmem:[%s8609_s1 + $0x2a0] sm:$0xf] }
  0x5b   : > { %869 = vmatmul.bf16.vlgmr.msrb.gmra.mxu1 %v6180_v37  ;;  %924 = vmatpush.bf16.msra.mxu0 %v3959_v28  ;;  %v3951_v34 = vor.u32 %v5383_v36, %v3948_v30  ;;  %v5479_v36 = vld [vmem:[%s8609_s1 + $0x304] sm:$0xf]  ;;  %v4234_v30 = vld [vmem:[%s8609_s1 + $0x308] sm:$0xf0]  ;;  %v4130_v25 = vld [vmem:[%s8609_s1 + $0x238] sm:$0xf0] }
  0x5c   : > { %937 = vmatpush.bf16.msra.mxu1 %v4071_v59  ;;  %963 = vmatpush.bf16.msra.mxu3 %v4079_v6  ;;  %v4224_v59 = vld [vmem:[%s8609_s1 + $0x2f0] sm:$0xf]  ;;  %v4170_v6 = vld [vmem:[%s8609_s1 + $0x288] sm:$0xf0]  ;;  %v4237_v32 = vor.u32 %v5479_v36, %v4234_v30  ;;  %v5475_v49 = vld [vmem:[%s8609_s1 + $0x2e4] sm:$0xf] }
  0x5d   : > { %888 = vmatmul.bf16.vlgmr.msrb.gmra.mxu3 %v6190_v46  ;;  %v4173_v9 = vor.u32 %v5463_v2, %v4170_v6  ;;  %v6550_v10 = vor.u32 %v5478_v63, %v4224_v59  ;;  %v5455_v55 = vld [vmem:[%s8609_s1 + $0x244] sm:$0xf]  ;;  %v4138_v56 = vld [vmem:[%s8609_s1 + $0x248] sm:$0xf0]  ;;  %v5473_v63 = vld [vmem:[%s8609_s1 + $0x2d4] sm:$0xf] }
  0x5e   : > { %1209 = vmatpush.bf16.msrb.mxu2 %v4153_v29  ;;  %v4165_v29 = vor.u32 %v5461_v26, %v4162_v27  ;;  %v4141_v59 = vor.u32 %v5455_v55, %v4138_v56  ;;  %v5453_v2 = vld [vmem:[%s8609_s1 + $0x234] sm:$0xf]  ;;  %v4122_v11 = vld [vmem:[%s8609_s1 + $0x228] sm:$0xf0]  ;;  %v4440_v19 = vld [vmem:[%s8609_s1 + $0x410] sm:$0xf] }
  0x5f   : > { %925 = vmatpush.bf16.msra.mxu0 %v3951_v34  ;;  %v5459_v34 = vld [vmem:[%s8609_s1 + $0x264] sm:$0xf]  ;;  %v4133_v6 = vor.u32 %v5453_v2, %v4130_v25  ;;  %v4186_v26 = vld [vmem:[%s8609_s1 + $0x2a8] sm:$0xf0]  ;;  %v4248_v27 = vld [vmem:[%s8609_s1 + $0x320] sm:$0xf] }
  0x60   : > { %938 = vmatpush.bf16.msra.mxu1 %v4063_v61  ;;  %1263 = vmatpush.bf16.msrb.mxu3 %v4181_v1  ;;  %v5476_v61 = vld [vmem:[%s8609_s1 + $0x2e4] sm:$0xf0]  ;;  %v4157_v39 = vor.u32 %v5459_v34, %v4154_v35  ;;  %v4210_v1 = vld [vmem:[%s8609_s1 + $0x2d8] sm:$0xf0]  ;;  %v1011_v36 = vrot.slane %v6180_v37, 1  ;;  %v1012_v30 = vrot.slane %v6182_v38, 1 }
  0x61   : > { %658 = vmatmul.bf16.gmra.mxu2 %v6355_v24  ;;  %v5403_v24 = vld [vmem:[%s8609_s1 + $0xa4] sm:$0xf]  ;;  %v4217_v8 = vor.u32 %v5476_v61, %v4216_v14  ;;  %v4213_v5 = vor.u32 %v5473_v63, %v4210_v1  ;;  %v4194_v14 = vld [vmem:[%s8609_s1 + $0x2b8] sm:$0xf0]  ;;  %v4432_v34 = vld [vmem:[%s8609_s1 + $0x400] sm:$0xf] }
  0x62   : > { %1210 = vmatpush.bf16.msrb.mxu2 %v4145_v40  ;;  %v4031_v58 = vor.u32 %v5403_v24, %v4028_v48  ;;  %v5477_v40 = vld [vmem:[%s8609_s1 + $0x2f4] sm:$0xf]  ;;  %v4149_v48 = vor.u32 %v5457_v44, %v4146_v45  ;;  %v5483_v61 = vld [vmem:[%s8609_s1 + $0x324] sm:$0xf]  ;;  %v5524_v35 = vld [vmem:[%s8609_s1 + $0x434] sm:$0xf0] }
  0x63   : > { %1225 = vmatpush.bf16.msrb.mxu0 %v6496_v43  ;;  %v4229_v47 = vor.u32 %v5477_v40, %v4226_v41  ;;  %v1015_v40 = vrot.slane %v6199_v52, 1  ;;  %v1022_v41 = vrot.slane %v6309_v62, 1  ;;  %v5506_v44 = vld [vmem:[%s8609_s1 + $0x3a4] sm:$0xf0]  ;;  %v4424_v45 = vld [vmem:[%s8609_s1 + $0x3f0] sm:$0xf] }
  0x64   : > { %939 = vmatpush.bf16.msra.mxu1 %v4055_v22  ;;  %1264 = vmatpush.bf16.msrb.mxu3 %v4173_v9  ;;  %v5474_v22 = vld [vmem:[%s8609_s1 + $0x2d4] sm:$0xf0]  ;;  %v4202_v9 = vld [vmem:[%s8609_s1 + $0x2c8] sm:$0xf0]  ;;  %v4376_v55 = vld [vmem:[%s8609_s1 + $0x390] sm:$0xf] }
  0x65   : > { %v4209_v28 = vor.u32 %v5474_v22, %v4208_v20  ;;  %v5520_v20 = vld [vmem:[%s8609_s1 + $0x414] sm:$0xf0]  ;;  %v5467_v22 = vld [vmem:[%s8609_s1 + $0x2a4] sm:$0xf]  ;;  %v1020_v63 = vrot.slane %v6307_v60, 1  ;;  %s5373_s18 = sshll.u32 %s3648_s8, 2 }
  0x66   : > { %1211 = vmatpush.bf16.msrb.mxu2 %v4137_v51  ;;  %v4218_v51 = vld [vmem:[%s8609_s1 + $0x2e8] sm:$0xf0]  ;;  %v5516_v62 = vld [vmem:[%s8609_s1 + $0x3f4] sm:$0xf0]  ;;  %v5502_v25 = vld [vmem:[%s8609_s1 + $0x384] sm:$0xf0]  ;;  %s3650_s9 = scalar_lea.hbm %s8612_s4, %s5373_s18 }
  0x67   : > { %1226 = vmatpush.bf16.msrb.mxu0 %v6520_v54  ;;  %v4221_v57 = vor.u32 %v5475_v49, %v4218_v51  ;;  %v5514_v49 = vld [vmem:[%s8609_s1 + $0x3e4] sm:$0xf0]  ;;  %v6772_v51 = vsel %vm1010_vm2, %v1015_v40, %v1022_v41  ;;  %v5504_v56 = vld [vmem:[%s8609_s1 + $0x394] sm:$0xf0]  ;;  %v5501_v60 = vld [vmem:[%s8609_s1 + $0x384] sm:$0xf] }
  0x68   : > { %940 = vmatpush.bf16.msra.mxu1 %v4047_v31  ;;  %v4200_v31 = vld [vmem:[%s8609_s1 + $0x2c0] sm:$0xf]  ;;  %1265 = vmatpush.bf16.msrb.mxu3 %v4165_v29  ;;  %v4441_v29 = vor.u32 %v5520_v20, %v4440_v19  ;;  %v4377_v1 = vor.u32 %v5504_v56, %v4376_v55  ;;  %v1018_v19 = vrot.slane %v6123_v3, 1  ;;  %v5493_v41 = vld [vmem:[%s8609_s1 + $0x344] sm:$0xf]  ;;  %s3651_s10 = sshll.u32 %s8539_s5, 4  ;;  %s3652_s10 = int_to_ptr.vmem [resolvable:$true] %s3651_s10 }
  0x69   : > { %v4201_v23 = vor.u32 %v5472_v33, %v4200_v31  ;;  %v4189_v31 = vor.u32 %v5467_v22, %v4186_v26  ;;  %v1013_v33 = vsel %vm1010_vm2, %v1011_v36, %v1012_v30  ;;  %v4352_v22 = vld [vmem:[%s8609_s1 + $0x360] sm:$0xf]  ;;  %v5498_v26 = vld [vmem:[%s8609_s1 + $0x364] sm:$0xf0]  ;;  %v4622_v55 = vld [vmem:[%s8609_s1 + $0x530] sm:$0xf] }
  0x6a   : > { %3943 = vmatmul.msk.bf16.gmra.mxu0 %vm562_vm1, %v6301_v50  ;;  %v4012_v50 = vld [vmem:[%s8609_s1 + $0x88] sm:$0xf0]  ;;  %1212 = vmatpush.bf16.msrb.mxu2 %v4129_v7  ;;  %v5471_v7 = vld [vmem:[%s8609_s1 + $0x2c4] sm:$0xf]  ;;  %v5523_v56 = vld [vmem:[%s8609_s1 + $0x434] sm:$0xf] }
  0x6b   : > { %874 = vmatmul.bf16.gmra.mxu1 %v6182_v38  ;;  %1227 = vmatpush.bf16.msrb.mxu0 %v6550_v10  ;;  %v4015_v17 = vor.u32 %v5399_v15, %v4012_v50  ;;  %v4205_v12 = vor.u32 %v5471_v7, %v4202_v9  ;;  %v4250_v50 = vld [vmem:[%s8609_s1 + $0x328] sm:$0xf0]  ;;  %v5512_v9 = vld [vmem:[%s8609_s1 + $0x3d4] sm:$0xf0]  ;;  %s3653_s12 = sshll.u32 %s3650_s9, 4  ;;  %s3637_s13 = scalar_lea.sflag [#allocation3], %s202_s6  ;;  %s3654_s12 = int_to_ptr.hbm [resolvable:$true] %s3653_s12 }
  0x6c   : > { %941 = vmatpush.bf16.msra.mxu1 %v4039_v42  ;;  %v4192_v42 = vld [vmem:[%s8609_s1 + $0x2b0] sm:$0xf]  ;;  %1266 = vmatpush.bf16.msrb.mxu3 %v4157_v39  ;;  %v4370_v7 = vld [vmem:[%s8609_s1 + $0x388] sm:$0xf0]  ;;  %s5797_s14 = sshra.s32 %s3654_s12, 4  ;;  %s5803_s11 = scalar_lea.hbm %s8612_s4, 1024  ;;  %s5798_s14 = int_to_ptr.hbm [resolvable:$true] %s5797_s14 }
  0x6d   : > { %893 = vmatmul.bf16.gmra.mxu3 %v6199_v52  ;;  %s5799_s24 = scalar_lea.hbm %s5798_s14, 32  ;;  %p5804_p2 = scmp.lt.s32.totalorder %s5798_s14, %s8612_s4 }
  0x6e   : > { %1213 = vmatpush.bf16.msrb.mxu2 %v4121_v16  ;;  %v4448_v16 = vld [vmem:[%s8609_s1 + $0x420] sm:$0xf]  ;;  %p5800_p13 = scmp.ne.s32.totalorder %s5798_s14, %s5799_s24  ;;  %p5805_p4 = scmp.lt.s32.totalorder %s5803_s11, %s5799_s24 }
  0x6f   : > { %1228 = vmatpush.bf16.msrb.mxu0 %v4217_v8 }
  0x70   : > { %942 = vmatpush.bf16.msra.mxu1 %v4031_v58  ;;  %1267 = vmatpush.bf16.msrb.mxu3 %v4149_v48  ;;  %p5801_p0 = pnand %p5800_p13, %p5957_p3  ;;  %p5806_p5 = por %p5805_p4, %p5804_p2 }
  0x71   : > { %4080 = vmatmul.msk.bf16.vlgmr.msra.gmra.mxu2 %vm562_vm1, %v6115_v0 }
  0x72   : > { %1282 = vmatpush.bf16.msra.mxu2 %v4245_v21  ;;  %p5802_p1 = pneg %p5801_p0 }
  0x73   : > { %1229 = vmatpush.bf16.msrb.mxu0 %v4209_v28 }
  0x74   : > { %943 = vmatpush.bf16.msra.mxu1 %v4023_v13  ;;  %1268 = vmatpush.bf16.msrb.mxu3 %v4141_v59  ;;  %v5469_v13 = vld [vmem:[%s8609_s1 + $0x2b4] sm:$0xf]  ;;  %p5807_p6 = pnand %p5806_p5, %p5802_p1 }
  0x75   : > { %v4197_v21 = vor.u32 %v5469_v13, %v4194_v14  ;;  %v4373_v13 = vor.u32 %v5501_v60, %v4370_v7  ;;  %v4360_v14 = vld [vmem:[%s8609_s1 + $0x370] sm:$0xf] }
  0x76   : > { %1283 = vmatpush.bf16.msra.mxu2 %v4237_v32 }
  0x77   : > { %1230 = vmatpush.bf16.msrb.mxu0 %v4201_v23 }
  0x78   : > { %944 = vmatpush.bf16.msra.mxu1 %v4015_v17  ;;  %1269 = vmatpush.bf16.msrb.mxu3 %v4133_v6  ;;  %v4253_v17 = vor.u32 %v5483_v61, %v4250_v50  ;;  %v4408_v6 = vld [vmem:[%s8609_s1 + $0x3d0] sm:$0xf]  ;;  %v5500_v61 = vld [vmem:[%s8609_s1 + $0x374] sm:$0xf0]  ;;  %v5499_v50 = vld [vmem:[%s8609_s1 + $0x374] sm:$0xf] }
  0x79   : > { %v4361_v20 = vor.u32 %v5500_v61, %v4360_v14  ;;  %v4542_v14 = vld [vmem:[%s8609_s1 + $0x490] sm:$0xf] }
  0x7a   : > { %926 = vmatmul.bf16.vlgmr.msra.gmra.mxu0 %v6180_v37  ;;  %1284 = vmatpush.bf16.msra.mxu2 %v4229_v47  ;;  %v5518_v37 = vld [vmem:[%s8609_s1 + $0x404] sm:$0xf0]  ;;  %v4425_v47 = vor.u32 %v5516_v62, %v4424_v45  ;;  %v5491_v45 = vld [vmem:[%s8609_s1 + $0x334] sm:$0xf]  ;;  %v4330_v62 = vld [vmem:[%s8609_s1 + $0x338] sm:$0xf0] }
  0x7b   : > { %945 = vmatmul.bf16.vlgmr.msra.gmra.mxu1 %v6190_v46  ;;  %v4433_v39 = vor.u32 %v5518_v37, %v4432_v34  ;;  %v5496_v34 = vld [vmem:[%s8609_s1 + $0x354] sm:$0xf0]  ;;  %v5495_v37 = vld [vmem:[%s8609_s1 + $0x354] sm:$0xf] }
  0x7c   : > { %5701 = vmatpush.bf16.msrb.mxu1 %v6496_v43  ;;  %v5470_v43 = vld [vmem:[%s8609_s1 + $0x2b4] sm:$0xf0] }
  0x7d   : > { %v6633_v24 = vor.u32 %v5470_v43, %v4192_v42  ;;  %4082 = vmatmul.msk.bf16.vlgmr.msra.gmra.mxu3 %vm562_vm1, %v6115_v0  ;;  %v4384_v43 = vld [vmem:[%s8609_s1 + $0x3a0] sm:$0xf] }
  0x7e   : > { %1285 = vmatpush.bf16.msra.mxu2 %v4221_v57  ;;  %v5503_v57 = vld [vmem:[%s8609_s1 + $0x394] sm:$0xf] }
  0x7f   : > { %1231 = vmatpush.bf16.msrb.mxu0 %v6633_v24 }
  0x80   : > { %5702 = vmatpush.bf16.msrb.mxu1 %v6520_v54  ;;  %v5468_v54 = vld [vmem:[%s8609_s1 + $0x2a4] sm:$0xf0] }
  0x81   : > { %v4185_v58 = vor.u32 %v5468_v54, %v4184_v53  ;;  %4081 = vmatmul.msk.bf16.gmra.mxu2 %vm562_vm1, %v6123_v3  ;;  %v4385_v53 = vor.u32 %v5506_v44, %v4384_v43  ;;  %v4328_v43 = vld [vmem:[%s8609_s1 + $0x330] sm:$0xf]  ;;  %v5492_v44 = vld [vmem:[%s8609_s1 + $0x334] sm:$0xf0] }
  0x82   : > { %1286 = vmatpush.bf16.msra.mxu2 %v4213_v5  ;;  %v4368_v5 = vld [vmem:[%s8609_s1 + $0x380] sm:$0xf] }
  0x83   : > { %1232 = vmatpush.bf16.msrb.mxu0 %v4185_v58 }
  0x84   : > { %5703 = vmatpush.bf16.msrb.mxu1 %v6550_v10  ;;  %v5451_v10 = vld [vmem:[%s8609_s1 + $0x224] sm:$0xf] }
  0x85   : > { %v4125_v15 = vor.u32 %v5451_v10, %v4122_v11  ;;  %v4409_v10 = vor.u32 %v5512_v9, %v4408_v6  ;;  %v1021_v11 = vsel %vm1010_vm2, %v1012_v30, %v1020_v63  ;;  %v5485_v63 = vld [vmem:[%s6097_s23 + $0x40] sm:$0xf]  ;;  %v5538_v6 = vld [vmem:[%s8609_s1 + $0x4a4] sm:$0xf0] }
  0x86   : > { %1287 = vmatpush.bf16.msra.mxu2 %v4205_v12  ;;  %v4369_v12 = vor.u32 %v5502_v25, %v4368_v5  ;;  %v4333_v5 = vor.u32 %v5491_v45, %v4330_v62  ;;  %v4550_v25 = vld [vmem:[%s8609_s1 + $0x4a0] sm:$0xf]  ;;  %v5513_v45 = vld [vmem:[%s8609_s1 + $0x3e4] sm:$0xf]  ;;  %v5548_v62 = vld [vmem:[%s8609_s1 + $0x4f4] sm:$0xf0] }
  0x87   : > { %1270 = vmatpush.bf16.msrb.mxu3 %v4125_v15  ;;  %1308 = vmatpush.bf16.msra.mxu0 %v4253_v17  ;;  %v4400_v15 = vld [vmem:[%s8609_s1 + $0x3c0] sm:$0xf]  ;;  %v4551_v9 = vor.u32 %v5538_v6, %v4550_v25  ;;  %v5546_v25 = vld [vmem:[%s8609_s1 + $0x4e4] sm:$0xf0]  ;;  %v4510_v6 = vld [vmem:[%s8609_s1 + $0x450] sm:$0xf] }
  0x88   : > { %5704 = vmatpush.bf16.msrb.mxu1 %v4217_v8  ;;  %v5522_v8 = vld [vmem:[%s8609_s1 + $0x424] sm:$0xf0] }
  0x89   : > { %v4449_v18 = vor.u32 %v5522_v8, %v4448_v16  ;;  %v4362_v16 = vld [vmem:[%s8609_s1 + $0x378] sm:$0xf0]  ;;  %v5510_v8 = vld [vmem:[%s8609_s1 + $0x3c4] sm:$0xf0] }
  0x8a   : > { %931 = vmatmul.bf16.gmra.mxu0 %v6182_v38  ;;  %1288 = vmatpush.bf16.msra.mxu2 %v4197_v21  ;;  %v4456_v38 = vld [vmem:[%s8609_s1 + $0x430] sm:$0xf]  ;;  %v4401_v17 = vor.u32 %v5510_v8, %v4400_v15  ;;  %v4365_v21 = vor.u32 %v5499_v50, %v4362_v16  ;;  %v5536_v16 = vld [vmem:[%s8609_s1 + $0x494] sm:$0xf0] }
  0x8b   : > { %1602 = vmatpush.bf16.msra.mxu3 %v4449_v18  ;;  %950 = vmatmul.bf16.gmra.mxu1 %v6199_v52  ;;  %v4457_v42 = vor.u32 %v5524_v35, %v4456_v38  ;;  %v4386_v52 = vld [vmem:[%s8609_s1 + $0x3a8] sm:$0xf0]  ;;  %v1017_v18 = vrot.slane %v6115_v0, 1  ;;  %v5497_v0 = vld [vmem:[%s8609_s1 + $0x364] sm:$0xf] }
  0x8c   : > { %5705 = vmatpush.bf16.msrb.mxu1 %v4209_v28  ;;  %v5484_v28 = vld [vmem:[%s8609_s1 + $0x324] sm:$0xf0]  ;;  %v4346_v38 = vld [vmem:[%s8609_s1 + $0x358] sm:$0xf0] }
  0x8d   : > { %4083 = vmatmul.msk.bf16.gmra.mxu3 %vm562_vm1, %v6123_v3  ;;  %v4249_v32 = vor.u32 %v5484_v28, %v4248_v27  ;;  %v4392_v27 = vld [vmem:[%s8609_s1 + $0x3b0] sm:$0xf]  ;;  %v4354_v28 = vld [vmem:[%s8609_s1 + $0x368] sm:$0xf0]  ;;  %v1019_v30 = vsel %vm1010_vm2, %v1017_v18, %v1018_v19  ;;  %v5517_v3 = vld [vmem:[%s8609_s1 + $0x404] sm:$0xf] }
  0x8e   : > { %1289 = vmatpush.bf16.msra.mxu2 %v4189_v31  ;;  %v4353_v31 = vor.u32 %v5498_v26, %v4352_v22  ;;  %v4606_v22 = vld [vmem:[%s8609_s1 + $0x510] sm:$0xf]  ;;  %v5552_v26 = vld [vmem:[%s8609_s1 + $0x514] sm:$0xf0] }
  0x8f   : > { %1603 = vmatpush.bf16.msra.mxu3 %v4441_v29  ;;  %v5508_v29 = vld [vmem:[%s8609_s1 + $0x3b4] sm:$0xf0] }
  0x90   : > { %5706 = vmatpush.bf16.msrb.mxu1 %v4201_v23  ;;  %v1014_v23 = vrot.slane %v6190_v46, 1  ;;  %v5505_v46 = vld [vmem:[%s8609_s1 + $0x3a4] sm:$0xf]  ;;  %v4393_v36 = vor.u32 %v5508_v29, %v4392_v27 }
  0x91   : > { %1214 = vmatmul.bf16.vlgmr.msrb.gmra.mxu2 %v1013_v33  ;;  %v4389_v54 = vor.u32 %v5505_v46, %v4386_v52 }
  0x92   : > { %1628 = vmatpush.bf16.msrb.mxu2 %v4457_v42  ;;  %v6766_v48 = vsel %vm1010_vm2, %v1014_v23, %v1015_v40  ;;  %v4336_v23 = vld [vmem:[%s8609_s1 + $0x340] sm:$0xf]  ;;  %v5494_v40 = vld [vmem:[%s8609_s1 + $0x344] sm:$0xf0]  ;;  %v4338_v42 = vld [vmem:[%s8609_s1 + $0x348] sm:$0xf0] }
  0x93   : > { %1604 = vmatpush.bf16.msra.mxu3 %v4433_v39  ;;  %v4349_v39 = vor.u32 %v5495_v37, %v4346_v38  ;;  %v4337_v46 = vor.u32 %v5494_v40, %v4336_v23  ;;  %v4341_v52 = vor.u32 %v5493_v41, %v4338_v42  ;;  %v4598_v37 = vld [vmem:[%s8609_s1 + $0x500] sm:$0xf]  ;;  %v5550_v38 = vld [vmem:[%s8609_s1 + $0x504] sm:$0xf0]  ;;  %v4526_v40 = vld [vmem:[%s8609_s1 + $0x470] sm:$0xf] }
  0x94   : > { %5707 = vmatpush.bf16.msrb.mxu1 %v6633_v24  ;;  %v4416_v24 = vld [vmem:[%s8609_s1 + $0x3e0] sm:$0xf]  ;;  %v5532_v41 = vld [vmem:[%s8609_s1 + $0x474] sm:$0xf0] }
  0x95   : > { %v4417_v59 = vor.u32 %v5514_v49, %v4416_v24  ;;  %v5540_v24 = vld [vmem:[%s8609_s1 + $0x4b4] sm:$0xf0] }
  0x97   : > { %1605 = vmatpush.bf16.msra.mxu3 %v4425_v47  ;;  %v4558_v47 = vld [vmem:[%s8609_s1 + $0x4b0] sm:$0xf] }
  0x98   : > { %5708 = vmatpush.bf16.msrb.mxu1 %v4185_v58  ;;  %v4378_v58 = vld [vmem:[%s8609_s1 + $0x398] sm:$0xf0]  ;;  %v4559_v49 = vor.u32 %v5540_v24, %v4558_v47  ;;  %v5486_v24 = vld [vmem:[%s6097_s23 + $0x44] sm:$0xf0] }
  0x99   : > { %v4381_v2 = vor.u32 %v5503_v57, %v4378_v58  ;;  %v4458_v57 = vld [vmem:[%s8609_s1 + $0x438] sm:$0xf0]  ;;  %v5556_v58 = vld [vmem:[%s8609_s1 + $0x534] sm:$0xf0] }
  0x9a   : > { %1233 = vmatmul.bf16.vlgmr.msrb.gmra.mxu0 %v6766_v48  ;;  %v4304_v47 = vld [vmem:[%s6097_s23 + $0x3c] sm:$0xf] }
  0x9b   : > { %1238 = vmatmul.bf16.vlgmr.msrb.gmra.mxu1 %v6772_v51  ;;  %1640 = vmatpush.bf16.msrb.mxu0 %v4389_v54  ;;  %v4450_v54 = vld [vmem:[%s8609_s1 + $0x428] sm:$0xf0] }
  0x9c   : > { %1251 = vmatpush.bf16.msra.mxu1 %v4249_v32  ;;  %1606 = vmatpush.bf16.msra.mxu3 %v4417_v59  ;;  %v4357_v32 = vor.u32 %v5497_v0, %v4354_v28  ;;  %v1024_v59 = vrot.slane %v6218_v4, 1  ;;  %v4623_v4 = vor.u32 %v5556_v58, %v4622_v55  ;;  %v4534_v0 = vld [vmem:[%s8609_s1 + $0x480] sm:$0xf]  ;;  %v5534_v28 = vld [vmem:[%s8609_s1 + $0x484] sm:$0xf0] }
  0x9d   : > { %1271 = vmatmul.bf16.vlgmr.msrb.gmra.mxu3 %v1013_v33  ;;  %v4344_v33 = vld [vmem:[%s8609_s1 + $0x350] sm:$0xf]  ;;  %v5530_v55 = vld [vmem:[%s8609_s1 + $0x464] sm:$0xf0] }
  0x9e   : > { %v4345_v35 = vor.u32 %v5496_v34, %v4344_v33  ;;  %v1025_v15 = vsel %vm1010_vm2, %v1018_v19, %v1024_v59  ;;  %v4434_v19 = vld [vmem:[%s8609_s1 + $0x408] sm:$0xf0]  ;;  %v4426_v33 = vld [vmem:[%s8609_s1 + $0x3f8] sm:$0xf0] }
  0x9f   : > { %1641 = vmatpush.bf16.msrb.mxu0 %v4381_v2  ;;  %v4306_v2 = vld [vmem:[%s6097_s23 + $0x48] sm:$0xf0] }
  0xa0   : > { %1583 = vmatpush.bf16.msrb.mxu1 %v4385_v53  ;;  %1607 = vmatpush.bf16.msra.mxu3 %v4409_v10  ;;  %v5521_v53 = vld [vmem:[%s8609_s1 + $0x424] sm:$0xf]  ;;  %v5519_v10 = vld [vmem:[%s8609_s1 + $0x414] sm:$0xf]  ;;  %v6939_v50 = vor.u32 %v5485_v63, %v4306_v2  ;;  %v4582_v2 = vld [vmem:[%s8609_s1 + $0x4e0] sm:$0xf] }
  0xa1   : > { %1219 = vmatmul.bf16.gmra.mxu2 %v1021_v11  ;;  %v4453_v7 = vor.u32 %v5521_v53, %v4450_v54  ;;  %v4318_v54 = vld [vmem:[%s6097_s23 + $0x60] sm:$0xf0]  ;;  %v5511_v63 = vld [vmem:[%s8609_s1 + $0x3d4] sm:$0xf] }
  0xa3   : > { %1642 = vmatpush.bf16.msrb.mxu0 %v4373_v13  ;;  %v5554_v13 = vld [vmem:[%s8609_s1 + $0x524] sm:$0xf0] }
  0xa4   : > { %1584 = vmatpush.bf16.msrb.mxu1 %v4377_v1  ;;  %1608 = vmatpush.bf16.msra.mxu3 %v4401_v17  ;;  %v4461_v1 = vor.u32 %v5523_v56, %v4458_v57  ;;  %v4543_v17 = vor.u32 %v5536_v16, %v4542_v14 }
  0xa7   : > { %1643 = vmatpush.bf16.msrb.mxu0 %v4365_v21 }
  0xa8   : > { %1585 = vmatpush.bf16.msrb.mxu1 %v4369_v12  ;;  %1609 = vmatpush.bf16.msra.mxu3 %v4393_v36  ;;  %v4614_v12 = vld [vmem:[%s8609_s1 + $0x520] sm:$0xf]  ;;  %v4437_v36 = vor.u32 %v5517_v3, %v4434_v19 }
  0xa9   : > { %v4615_v21 = vor.u32 %v5554_v13, %v4614_v12  ;;  %v5539_v12 = vld [vmem:[%s8609_s1 + $0x4b4] sm:$0xf]  ;;  %v4560_v13 = vld [vmem:[%s8609_s1 + $0x4b8] sm:$0xf0]  ;;  %v4502_v19 = vld [vmem:[%s8609_s1 + $0x440] sm:$0xf] }
  0xaa   : > { %4256 = vmatmul.msk.bf16.vlgmr.msra.gmra.mxu0 %vm562_vm1, %v1019_v30  ;;  %v4563_v16 = vor.u32 %v5539_v12, %v4560_v13  ;;  %v4632_v12 = vld [vmem:[%s8609_s1 + $0x548] sm:$0xf0] }
  0xab   : > { %4254 = vmatmul.msk.bf16.vlgmr.msra.gmra.mxu1 %vm562_vm1, %v1019_v30  ;;  %1644 = vmatpush.bf16.msrb.mxu0 %v4357_v32  ;;  %v4607_v30 = vor.u32 %v5552_v26, %v4606_v22  ;;  %v5515_v32 = vld [vmem:[%s8609_s1 + $0x3f4] sm:$0xf]  ;;  %v5526_v22 = vld [vmem:[%s8609_s1 + $0x444] sm:$0xf0] }
  0xac   : > { %1586 = vmatpush.bf16.msrb.mxu1 %v4361_v20  ;;  %1685 = vmatpush.bf16.msrb.mxu3 %v4461_v1  ;;  %v4429_v23 = vor.u32 %v5515_v32, %v4426_v33  ;;  %v4410_v1 = vld [vmem:[%s8609_s1 + $0x3d8] sm:$0xf0] }
  0xad   : > { %1276 = vmatmul.bf16.gmra.mxu3 %v1021_v11  ;;  %v4442_v11 = vld [vmem:[%s8609_s1 + $0x418] sm:$0xf0] }
  0xae   : > { %v4445_v20 = vor.u32 %v5519_v10, %v4442_v11  ;;  %v4413_v10 = vor.u32 %v5511_v63, %v4410_v1 }
  0xaf   : > { %1645 = vmatpush.bf16.msrb.mxu0 %v4349_v39 }
  0xb0   : > { %1587 = vmatpush.bf16.msrb.mxu1 %v4353_v31  ;;  %v4535_v31 = vor.u32 %v5534_v28, %v4534_v0 }
  0xb1   : > { %1290 = vmatmul.bf16.vlgmr.msra.gmra.mxu2 %v6766_v48  ;;  %v4329_v48 = vor.u32 %v5492_v44, %v4328_v43  ;;  %v4599_v43 = vor.u32 %v5550_v38, %v4598_v37  ;;  %v4527_v44 = vor.u32 %v5532_v41, %v4526_v40  ;;  %v5542_v37 = vld [vmem:[%s8609_s1 + $0x4c4] sm:$0xf0]  ;;  %v5537_v38 = vld [vmem:[%s8609_s1 + $0x4a4] sm:$0xf] }
  0xb2   : > { %1986 = vmatpush.bf16.msra.mxu2 %v4559_v49  ;;  %v5488_v49 = vld [vmem:[%s6097_s23 + $0x58] sm:$0xf] }
  0xb3   : > { %1646 = vmatpush.bf16.msrb.mxu0 %v4341_v52  ;;  %v4590_v52 = vld [vmem:[%s8609_s1 + $0x4f0] sm:$0xf] }
  0xb4   : > { %1588 = vmatpush.bf16.msrb.mxu1 %v4345_v35  ;;  %v616_v60 = vpop.f32.mrf.mxu2  ;;  %v4591_v58 = vor.u32 %v5548_v62, %v4590_v52  ;;  %v5535_v52 = vld [vmem:[%s8609_s1 + $0x494] sm:$0xf]  ;;  %v4544_v62 = vld [vmem:[%s8609_s1 + $0x498] sm:$0xf0] }
  0xb6   : > { %1987 = vmatpush.bf16.msra.mxu2 %v4551_v9 }
  0xb7   : > { %v578_v61 = vpop.f32.mrf.mxu0  ;;  %1647 = vmatpush.bf16.msrb.mxu0 %v4333_v5  ;;  %v7023_v5 = vor.u32 %v5486_v24, %v4304_v47  ;;  %v4547_v47 = vor.u32 %v5535_v52, %v4544_v62  ;;  %v4316_v24 = vld [vmem:[%s6097_s23 + $0x54] sm:$0xf]  ;;  %v4512_v62 = vld [vmem:[%s8609_s1 + $0x458] sm:$0xf0] }
  0xb8   : > { %1589 = vmatpush.bf16.msrb.mxu1 %v4337_v46  ;;  %v597_v8 = vpop.f32.mrf.mxu1  ;;  %v4418_v46 = vld [vmem:[%s8609_s1 + $0x3e8] sm:$0xf0]  ;;  %v5527_v52 = vld [vmem:[%s8609_s1 + $0x454] sm:$0xf] }
  0xb9   : > { %v598_v18 = vadd.f32 %v597_v8, %v578_v61  ;;  %v4421_v57 = vor.u32 %v5513_v45, %v4418_v46  ;;  %v4583_v61 = vor.u32 %v5546_v25, %v4582_v2  ;;  %v4402_v8 = vld [vmem:[%s8609_s1 + $0x3c8] sm:$0xf0] }
  0xba   : > { %4257 = vmatmul.msk.bf16.gmra.mxu0 %vm562_vm1, %v1025_v15  ;;  %1988 = vmatpush.bf16.msra.mxu2 %v4543_v17  ;;  %v4574_v17 = vld [vmem:[%s8609_s1 + $0x4d0] sm:$0xf] }
  0xbb   : > { %2005 = vmatpush.bf16.msra.mxu0 %v4623_v4  ;;  %4255 = vmatmul.msk.bf16.gmra.mxu1 %vm562_vm1, %v1025_v15  ;;  %v6959_v27 = vadd.f32 %v616_v60, %v598_v18  ;;  %v5528_v60 = vld [vmem:[%s8609_s1 + $0x454] sm:$0xf0]  ;;  %v7034_v4 = vor.u32 %v5488_v49, %v4318_v54  ;;  %v5509_v15 = vld [vmem:[%s8609_s1 + $0x3c4] sm:$0xf]  ;;  %v5489_v49 = vld [vmem:[%s6097_s23 + $0x5c] sm:$0xf0] }
  0xbc   : > { %1590 = vmatpush.bf16.msrb.mxu1 %v4329_v48  ;;  %v618_v29 = vpop.f32.mrf.mxu2  ;;  %v4511_v11 = vor.u32 %v5528_v60, %v4510_v6  ;;  %v5544_v18 = vld [vmem:[%s8609_s1 + $0x4d4] sm:$0xf0]  ;;  %v4405_v0 = vor.u32 %v5509_v15, %v4402_v8  ;;  %v7122_v2 = vor.u32 %v5489_v49, %v4316_v24  ;;  %v4630_v6 = vld [vmem:[%s8609_s1 + $0x540] sm:$0xf]  ;;  %v5558_v60 = vld [vmem:[%s8609_s1 + $0x544] sm:$0xf0] }
  0xbd   : > { %1610 = vmatmul.bf16.vlgmr.msra.gmra.mxu3 %v6939_v50  ;;  %v4575_v28 = vor.u32 %v5544_v18, %v4574_v17  ;;  %v4528_v8 = vld [vmem:[%s8609_s1 + $0x478] sm:$0xf0] }
  0xbe   : > { %1989 = vmatpush.bf16.msra.mxu2 %v4535_v31  ;;  %2043 = vmatpush.bf16.msra.mxu3 %v4563_v16  ;;  %v4566_v31 = vld [vmem:[%s8609_s1 + $0x4c0] sm:$0xf]  ;;  %v5531_v16 = vld [vmem:[%s8609_s1 + $0x474] sm:$0xf] }
  0xbf   : > { %2006 = vmatpush.bf16.msra.mxu0 %v4615_v21  ;;  %v580_v35 = vpop.f32.mrf.mxu0  ;;  %v5487_v21 = vld [vmem:[%s6097_s23 + $0x4c] sm:$0xf0]  ;;  %v4567_v45 = vor.u32 %v5542_v37, %v4566_v31  ;;  %v4531_v18 = vor.u32 %v5531_v16, %v4528_v8 }
  0xc0   : > { %1659 = vmatpush.bf16.msra.mxu1 %v4453_v7  ;;  %v6973_v34 = vpop.f32.mrf.mxu3  ;;  %v599_v39 = vpop.f32.mrf.mxu1 }
  0xc1   : > { %v600_v42 = vadd.f32 %v599_v39, %v580_v35  ;;  %1295 = vmatmul.bf16.gmra.mxu2 %v6772_v51  ;;  %v4518_v51 = vld [vmem:[%s8609_s1 + $0x460] sm:$0xf]  ;;  %v4552_v35 = vld [vmem:[%s8609_s1 + $0x4a8] sm:$0xf0] }
  0xc2   : > { %1990 = vmatpush.bf16.msra.mxu2 %v4527_v44  ;;  %v4519_v59 = vor.u32 %v5530_v55, %v4518_v51  ;;  %v5553_v51 = vld [vmem:[%s8609_s1 + $0x524] sm:$0xf]  ;;  %v4616_v55 = vld [vmem:[%s8609_s1 + $0x528] sm:$0xf0] }
  0xc3   : > { %2007 = vmatpush.bf16.msra.mxu0 %v4607_v30  ;;  %v7003_v53 = vadd.f32 %v618_v29, %v600_v42  ;;  %v4503_v29 = vor.u32 %v5526_v22, %v4502_v19  ;;  %v4394_v30 = vld [vmem:[%s8609_s1 + $0x3b8] sm:$0xf0]  ;;  %v5555_v42 = vld [vmem:[%s8609_s1 + $0x534] sm:$0xf]  ;;  %v1763_v19 = vshll.u32 %v6939_v50, 16 }
  0xc4   : > { %1660 = vmatpush.bf16.msra.mxu1 %v4445_v20  ;;  %v621_v56 = vpop.f32.mrf.mxu2  ;;  %v4312_v20 = vld [vmem:[%s6097_s23 + $0x44] sm:$0xf]  ;;  %v4600_v22 = vld [vmem:[%s8609_s1 + $0x508] sm:$0xf0] }
  0xc5   : > { %v7076_v32 = vor.u32 %v5487_v21, %v4312_v20  ;;  %v4324_v20 = vld [vmem:[%s6097_s23 + $0x5c] sm:$0xf]  ;;  %v5490_v21 = vld [vmem:[%s6097_s23 + $0x64] sm:$0xf0] }
  0xc6   : > { %1991 = vmatpush.bf16.msra.mxu2 %v4519_v59  ;;  %v4536_v59 = vld [vmem:[%s8609_s1 + $0x488] sm:$0xf0] }
  0xc7   : > { %2008 = vmatpush.bf16.msra.mxu0 %v4599_v43  ;;  %v583_v7 = vpop.f32.mrf.mxu0  ;;  %v4624_v43 = vld [vmem:[%s8609_s1 + $0x538] sm:$0xf0] }
  0xc8   : > { %1661 = vmatpush.bf16.msra.mxu1 %v4437_v36  ;;  %v7021_v48 = vpop.f32.mrf.mxu3  ;;  %v602_v9 = vpop.f32.mrf.mxu1  ;;  %v5507_v36 = vld [vmem:[%s8609_s1 + $0x3b4] sm:$0xf]  ;;  %v4627_v46 = vor.u32 %v5555_v42, %v4624_v43  ;;  %v4592_v43 = vld [vmem:[%s8609_s1 + $0x4f8] sm:$0xf0] }
  0xc9   : > { %v603_v14 = vadd.f32 %v602_v9, %v583_v7  ;;  %v4397_v41 = vor.u32 %v5507_v36, %v4394_v30  ;;  %v5551_v7 = vld [vmem:[%s8609_s1 + $0x514] sm:$0xf]  ;;  %v7171_v30 = vor.u32 %v5490_v21, %v4324_v20 }
  0xca   : > { %1648 = vmatmul.bf16.vlgmr.msrb.gmra.mxu0 %v7023_v5  ;;  %1992 = vmatpush.bf16.msra.mxu2 %v4511_v11  ;;  %v5557_v11 = vld [vmem:[%s8609_s1 + $0x544] sm:$0xf] }
  0xcb   : > { %2009 = vmatpush.bf16.msra.mxu0 %v4591_v58  ;;  %1591 = vmatmul.bf16.vlgmr.msrb.gmra.mxu1 %v7023_v5  ;;  %v7059_v3 = vadd.f32 %v621_v56, %v603_v14  ;;  %v5533_v56 = vld [vmem:[%s8609_s1 + $0x484] sm:$0xf]  ;;  %v4619_v58 = vor.u32 %v5553_v51, %v4616_v55  ;;  %v4635_v15 = vor.u32 %v5557_v11, %v4632_v12  ;;  %v4584_v55 = vld [vmem:[%s8609_s1 + $0x4e8] sm:$0xf0]  ;;  %v4796_v11 = vld [vmem:[%s8609_s1 + $0x640] sm:$0xf] }
  0xcc   : > { %1662 = vmatpush.bf16.msra.mxu1 %v4429_v23  ;;  %v623_v26 = vpop.f32.mrf.mxu2  ;;  %v4555_v23 = vor.u32 %v5537_v38, %v4552_v35  ;;  %v4539_v25 = vor.u32 %v5533_v56, %v4536_v59  ;;  %v5545_v51 = vld [vmem:[%s8609_s1 + $0x4e4] sm:$0xf] }
  0xcd   : > { %1615 = vmatmul.bf16.gmra.mxu3 %v7034_v4  ;;  %v5525_v56 = vld [vmem:[%s8609_s1 + $0x444] sm:$0xf] }
  0xce   : > { %1993 = vmatpush.bf16.msra.mxu2 %v4503_v29  ;;  %2044 = vmatpush.bf16.msra.mxu3 %v4555_v23  ;;  %v4520_v29 = vld [vmem:[%s8609_s1 + $0x468] sm:$0xf0]  ;;  %v1765_v23 = vrot.slane %v1763_v19, 1 }
  0xcf   : > { %2010 = vmatpush.bf16.msra.mxu0 %v4583_v61  ;;  %v585_v39 = vpop.f32.mrf.mxu0 }
  0xd0   : > { %1663 = vmatpush.bf16.msra.mxu1 %v4421_v57  ;;  %v7078_v33 = vpop.f32.mrf.mxu3  ;;  %v604_v40 = vpop.f32.mrf.mxu1 }
  0xd1   : > { %v605_v44 = vadd.f32 %v604_v40, %v585_v39  ;;  %4462 = vmatmul.msk.bf16.vlgmr.msrb.gmra.mxu2 %vm562_vm1, %v7076_v32  ;;  %v1761_v39 = vshrl.u32 %v6939_v50, 16  ;;  %v1768_v40 = vshll.u32 %v7034_v4, 16 }
  0xd2   : > { %2062 = vmatpush.bf16.msrb.mxu2 %v4627_v46  ;;  %2045 = vmatpush.bf16.msra.mxu3 %v4547_v47  ;;  %v4515_v47 = vor.u32 %v5527_v52, %v4512_v62  ;;  %v4780_v52 = vld [vmem:[%s8609_s1 + $0x620] sm:$0xf] }
  0xd3   : > { %2011 = vmatpush.bf16.msra.mxu0 %v4575_v28  ;;  %v7105_v54 = vadd.f32 %v623_v26, %v605_v44  ;;  %v5529_v26 = vld [vmem:[%s8609_s1 + $0x464] sm:$0xf]  ;;  %v1766_v24 = vor.u32 %v1765_v23, %v1761_v39  ;;  %v7195_v49 = vrot.slane %v1768_v40, 1 }
  0xd4   : > { %1664 = vmatpush.bf16.msra.mxu1 %v4413_v10  ;;  %v654_v57 = vpop.f32.mrf.mxu2  ;;  %v4608_v10 = vld [vmem:[%s8609_s1 + $0x518] sm:$0xf0]  ;;  %v4523_v37 = vor.u32 %v5529_v26, %v4520_v29  ;;  %v4568_v26 = vld [vmem:[%s8609_s1 + $0x4c8] sm:$0xf0] }
  0xd5   : > { %v655_v63 = vadd.f32 %v654_v57, %v6973_v34  ;;  %v4631_v34 = vor.u32 %v5558_v60, %v4630_v6  ;;  %v4611_v61 = vor.u32 %v5551_v7, %v4608_v10  ;;  %v4504_v6 = vld [vmem:[%s8609_s1 + $0x448] sm:$0xf0]  ;;  %v4576_v10 = vld [vmem:[%s8609_s1 + $0x4d8] sm:$0xf0] }
  0xd6   : > { %2063 = vmatpush.bf16.msrb.mxu2 %v4619_v58  ;;  %2046 = vmatpush.bf16.msra.mxu3 %v4539_v25  ;;  %v1749_v58 = vshrl.u32 %v7023_v5, 16  ;;  %v4587_v25 = vor.u32 %v5545_v51, %v4584_v55  ;;  %v4734_v51 = vld [vmem:[%s8609_s1 + $0x5c8] sm:$0xf0]  ;;  %v1782_v55 = vshrl.u32 %v7122_v2, 16 }
  0xd7   : > { %2012 = vmatpush.bf16.msra.mxu0 %v4567_v45  ;;  %v673_v9 = vpop.f32.mrf.mxu0  ;;  %v1751_v45 = vshll.u32 %v7023_v5, 16 }
  0xd8   : > { %1665 = vmatpush.bf16.msra.mxu1 %v4405_v0  ;;  %v7120_v1 = vpop.f32.mrf.mxu3  ;;  %v7142_v13 = vadd.f32 %v673_v9, %v655_v63  ;;  %v870_v14 = vpop.f32.mrf.mxu1  ;;  %v1756_v63 = vshll.u32 %v7122_v2, 16  ;;  %v4507_v9 = vor.u32 %v5525_v56, %v4504_v6  ;;  %v5592_v56 = vld [vmem:[%s8609_s1 + $0x654] sm:$0xf0] }
  0xd9   : > { %v871_v17 = vadd.f32 %v870_v14, %v6959_v27  ;;  %v5549_v27 = vld [vmem:[%s8609_s1 + $0x504] sm:$0xf]  ;;  %v1753_v59 = vrot.slane %v1751_v45, 1 }
  0xda   : > { %1653 = vmatmul.bf16.gmra.mxu0 %v7122_v2  ;;  %2064 = vmatpush.bf16.msrb.mxu2 %v4611_v61  ;;  %v4603_v28 = vor.u32 %v5549_v27, %v4600_v22  ;;  %v7234_v19 = vrot.slane %v1756_v63, 1 }
  0xdb   : > { %1596 = vmatmul.bf16.gmra.mxu1 %v7122_v2  ;;  %2088 = vmatpush.bf16.msrb.mxu0 %v4635_v15  ;;  %v5590_v15 = vld [vmem:[%s8609_s1 + $0x644] sm:$0xf0]  ;;  %v1754_v21 = vor.u32 %v1753_v59, %v1749_v58 }
  0xdc   : > { %1666 = vmatpush.bf16.msra.mxu1 %v4397_v41  ;;  %v656_v0 = vpop.f32.mrf.mxu2  ;;  %2047 = vmatpush.bf16.msra.mxu3 %v4531_v18  ;;  %v4797_v18 = vor.u32 %v5590_v15, %v4796_v11  ;;  %v5571_v11 = vld [vmem:[%s8609_s1 + $0x5b4] sm:$0xf] }
  0xdd   : > { %4464 = vmatmul.msk.bf16.vlgmr.msrb.gmra.mxu3 %vm562_vm1, %v7076_v32  ;;  %v657_v36 = vadd.f32 %v656_v0, %v7021_v48  ;;  %v5547_v48 = vld [vmem:[%s8609_s1 + $0x4f4] sm:$0xf]  ;;  %v4788_v0 = vld [vmem:[%s8609_s1 + $0x630] sm:$0xf] }
  0xde   : > { %2065 = vmatpush.bf16.msrb.mxu2 %v4603_v28  ;;  %v4595_v46 = vor.u32 %v5547_v48, %v4592_v43  ;;  %v1790_v48 = vshrl.u32 %v7034_v4, 16 }
  0xdf   : > { %v675_v35 = vpop.f32.mrf.mxu0 }
  0xe0   : > { %2031 = vmatpush.bf16.msrb.mxu1 %v4631_v34  ;;  %v889_v31 = vpop.f32.mrf.mxu3  ;;  %v7177_v41 = vadd.f32 %v675_v35, %v657_v36  ;;  %v872_v42 = vpop.f32.mrf.mxu1  ;;  %2048 = vmatpush.bf16.msra.mxu3 %v4523_v37  ;;  %v5543_v34 = vld [vmem:[%s8609_s1 + $0x4d4] sm:$0xf]  ;;  %v5588_v36 = vld [vmem:[%s8609_s1 + $0x634] sm:$0xf0]  ;;  %v7257_v37 = vsel %vm327_vm0, %v1754_v21, %v7234_v19  ;;  %v1792_v63 = vor.u32 %v1790_v48, %v7195_v49  ;;  %v4764_v21 = vld [vmem:[%s8609_s1 + $0x600] sm:$0xf] }
  0xe1   : > { %v7173_v38 = vadd.f32 %v889_v31, %v871_v17  ;;  %v873_v44 = vadd.f32 %v872_v42, %v7003_v53  ;;  %4463 = vmatmul.msk.bf16.gmra.mxu2 %vm562_vm1, %v7171_v30  ;;  %v4266_v53 = vld [vmem:[%s6097_s23 + $0x6c] sm:$0x11]  ;;  %v4579_v17 = vor.u32 %v5543_v34, %v4576_v10  ;;  %v4789_v39 = vor.u32 %v5588_v36, %v4788_v0  ;;  %v5584_v10 = vld [vmem:[%s8609_s1 + $0x614] sm:$0xf0]  ;;  %v5569_v0 = vld [vmem:[%s8609_s1 + $0x5a4] sm:$0xf] }
  0xe2   : > { %2066 = vmatpush.bf16.msrb.mxu2 %v4595_v46  ;;  %v1743_v61 = vunpack.c.h.b16 %v4266_v53  ;;  %v1742_v27 = vunpack.c.l.b16 %v4266_v53  ;;  %v5574_v46 = vld [vmem:[%s8609_s1 + $0x5c4] sm:$0xf0]  ;;  %v5573_v53 = vld [vmem:[%s8609_s1 + $0x5c4] sm:$0xf]  ;;  %v1784_v48 = vor.u32 %v1782_v55, %v7234_v19  ;;  %v4756_v19 = vld [vmem:[%s8609_s1 + $0x5f0] sm:$0xf] }
  0xe3   : > { %v4737_v58 = vor.u32 %v5573_v53, %v4734_v51 }
  0xe4   : > { %v659_v57 = vpop.f32.mrf.mxu2  ;;  %2049 = vmatpush.bf16.msra.mxu3 %v4515_v47  ;;  %v7240_v22 = vpack.c.b16 %v1743_v61, %v1743_v61  ;;  %v7261_v42 = vpack.c.b16 %v1742_v27, %v1742_v27 }
  0xe5   : > { %v660_v60 = vadd.f32 %v659_v57, %v7078_v33  ;;  %v7226_v33 = vsel %vm327_vm0, %v1766_v24, %v7195_v49  ;;  %v5586_v24 = vld [vmem:[%s8609_s1 + $0x624] sm:$0xf0] }
  0xe6   : > { %2067 = vmatpush.bf16.msrb.mxu2 %v4587_v25  ;;  %v1794_v43 = vshll.u32 %v7240_v22, 16  ;;  %v4781_v57 = vor.u32 %v5586_v24, %v4780_v52  ;;  %v1786_v59 = vshll.u32 %v7261_v42, 16 }
  0xe7   : > { %v678_v14 = vpop.f32.mrf.mxu0 }
  0xe8   : > { %v891_v7 = vpop.f32.mrf.mxu3  ;;  %v7231_v16 = vadd.f32 %v678_v14, %v660_v60  ;;  %v875_v8 = vpop.f32.mrf.mxu1  ;;  %2050 = vmatpush.bf16.msra.mxu3 %v4507_v9  ;;  %v1796_v25 = vrot.slane %v1794_v43, 1  ;;  %v4724_v60 = vld [vmem:[%s8609_s1 + $0x5b0] sm:$0xf]  ;;  %v4726_v14 = vld [vmem:[%s8609_s1 + $0x5b8] sm:$0xf0]  ;;  %v1788_v43 = vrot.slane %v1786_v59, 1 }
  0xe9   : > { %v7222_v12 = vadd.f32 %v891_v7, %v873_v44  ;;  %v876_v20 = vadd.f32 %v875_v8, %v7059_v3  ;;  %v5541_v3 = vld [vmem:[%s8609_s1 + $0x4c4] sm:$0xf]  ;;  %v5572_v7 = vld [vmem:[%s8609_s1 + $0x5b4] sm:$0xf0]  ;;  %v4772_v9 = vld [vmem:[%s8609_s1 + $0x610] sm:$0xf] }
  0xea   : > { %2013 = vmatmul.bf16.vlgmr.msra.gmra.mxu0 %v7226_v33  ;;  %2068 = vmatpush.bf16.msrb.mxu2 %v4579_v17  ;;  %v4571_v29 = vor.u32 %v5541_v3, %v4568_v26  ;;  %v4725_v49 = vor.u32 %v5572_v7, %v4724_v60  ;;  %v4773_v8 = vor.u32 %v5584_v10, %v4772_v9  ;;  %v5582_v26 = vld [vmem:[%s8609_s1 + $0x604] sm:$0xf0]  ;;  %v4748_v7 = vld [vmem:[%s8609_s1 + $0x5e0] sm:$0xf] }
  0xeb   : > { %1667 = vmatmul.bf16.vlgmr.msra.gmra.mxu1 %v6939_v50  ;;  %2395 = vmatpush.bf16.msra.mxu0 %v4737_v58  ;;  %v4729_v17 = vor.u32 %v5571_v11, %v4726_v14  ;;  %v1789_v53 = vsel %vm327_vm0, %v1784_v48, %v1788_v43  ;;  %v1772_v58 = vshrl.u32 %v7076_v32, 16  ;;  %v5566_v60 = vld [vmem:[%s8609_s1 + $0x584] sm:$0xf0]  ;;  %v4702_v11 = vld [vmem:[%s8609_s1 + $0x588] sm:$0xf0] }
  0xec   : > { %2357 = vmatpush.bf16.msrb.mxu3 %v4797_v18  ;;  %v661_v28 = vpop.f32.mrf.mxu2  ;;  %v4716_v18 = vld [vmem:[%s8609_s1 + $0x5a0] sm:$0xf]  ;;  %v5562_v48 = vld [vmem:[%s8609_s1 + $0x564] sm:$0xf0] }
  0xed   : > { %4465 = vmatmul.msk.bf16.gmra.mxu3 %vm562_vm1, %v7171_v30  ;;  %v662_v31 = vadd.f32 %v661_v28, %v7120_v1  ;;  %v4732_v1 = vld [vmem:[%s8609_s1 + $0x5c0] sm:$0xf]  ;;  %v4718_v28 = vld [vmem:[%s8609_s1 + $0x5a8] sm:$0xf0] }
  0xee   : > { %2069 = vmatpush.bf16.msrb.mxu2 %v4571_v29  ;;  %v4733_v47 = vor.u32 %v5574_v46, %v4732_v1  ;;  %v5568_v1 = vld [vmem:[%s8609_s1 + $0x594] sm:$0xf0] }
  0xef   : > { %v680_v40 = vpop.f32.mrf.mxu0  ;;  %2396 = vmatpush.bf16.msra.mxu0 %v4729_v17 }
  0xf0   : > { %v894_v35 = vpop.f32.mrf.mxu3  ;;  %v7265_v44 = vadd.f32 %v680_v40, %v662_v31  ;;  %v877_v45 = vpop.f32.mrf.mxu1  ;;  %2358 = vmatpush.bf16.msrb.mxu3 %v4789_v39  ;;  %2338 = vmatpush.bf16.msra.mxu1 %v4733_v47  ;;  %v4721_v39 = vor.u32 %v5569_v0, %v4718_v28  ;;  %v4710_v47 = vld [vmem:[%s8609_s1 + $0x598] sm:$0xf0]  ;;  %v5576_v0 = vld [vmem:[%s8609_s1 + $0x5d4] sm:$0xf0]  ;;  %v5563_v28 = vld [vmem:[%s8609_s1 + $0x574] sm:$0xf] }
  0xf1   : > { %v7259_v23 = vadd.f32 %v894_v35, %v876_v20  ;;  %v878_v62 = vadd.f32 %v877_v45, %v7105_v54  ;;  %1994 = vmatmul.bf16.vlgmr.msra.gmra.mxu2 %v7257_v37  ;;  %v4804_v54 = vld [vmem:[%s8609_s1 + $0x650] sm:$0xf]  ;;  %v5570_v20 = vld [vmem:[%s8609_s1 + $0x5a4] sm:$0xf0]  ;;  %v4765_v35 = vor.u32 %v5582_v26, %v4764_v21  ;;  %v1774_v45 = vshll.u32 %v7076_v32, 16 }
  0xf2   : > { %v4805_v6 = vor.u32 %v5592_v56, %v4804_v54  ;;  %v4717_v31 = vor.u32 %v5570_v20, %v4716_v18  ;;  %v4692_v18 = vld [vmem:[%s8609_s1 + $0x570] sm:$0xf]  ;;  %v5564_v20 = vld [vmem:[%s8609_s1 + $0x574] sm:$0xf0] }
  0xf3   : > { %2397 = vmatpush.bf16.msra.mxu0 %v4721_v39  ;;  %v1776_v59 = vrot.slane %v1774_v45, 1  ;;  %v4740_v21 = vld [vmem:[%s8609_s1 + $0x5d0] sm:$0xf]  ;;  %v4693_v26 = vor.u32 %v5564_v20, %v4692_v18 }
  0xf4   : > { %2359 = vmatpush.bf16.msrb.mxu3 %v4781_v57  ;;  %v908_v34 = vpop.f32.mrf.mxu2  ;;  %2383 = vmatpush.bf16.msra.mxu2 %v4805_v6 }
  0xf5   : > { %v7315_v61 = vadd.f32 %v908_v34, %v7173_v38  ;;  %v7329_v38 = vsel %vm327_vm0, %v1792_v63, %v1796_v25  ;;  %2339 = vmatpush.bf16.msra.mxu1 %v4725_v49  ;;  %v1778_v63 = vshll.u32 %v7171_v30, 16  ;;  %v5565_v34 = vld [vmem:[%s8609_s1 + $0x584] sm:$0xf]  ;;  %v1777_v14 = vor.u32 %v1776_v59, %v1772_v58 }
  0xf6   : > { %v4705_v17 = vor.u32 %v5565_v34, %v4702_v11  ;;  %v5589_v11 = vld [vmem:[%s8609_s1 + $0x644] sm:$0xf] }
  0xf7   : > { %v927_v3 = vpop.f32.mrf.mxu0 }
  0xf8   : > { %v896_v15 = vpop.f32.mrf.mxu3  ;;  %v928_v29 = vadd.f32 %v927_v3, %v7142_v13  ;;  %v946_v36 = vpop.f32.mrf.mxu1  ;;  %2360 = vmatpush.bf16.msrb.mxu3 %v4773_v8  ;;  %v4708_v13 = vld [vmem:[%s8609_s1 + $0x590] sm:$0xf]  ;;  %v4267_v8 = vld [vmem:[%s6097_s23 + $0x74] sm:$0x1] }
  0xf9   : > { %v7326_v27 = vadd.f32 %v896_v15, %v878_v62  ;;  %2340 = vmatpush.bf16.msra.mxu1 %v4717_v31  ;;  %v4709_v52 = vor.u32 %v5568_v1, %v4708_v13  ;;  %v5567_v62 = vld [vmem:[%s8609_s1 + $0x594] sm:$0xf]  ;;  %v7391_v15 = vrot.slane %v1778_v63, 1  ;;  %v1744_v1 = vunpack.c.l.b16 %v4267_v8  ;;  %v5004_v8 = vld [vmem:[%s8609_s1 + $0x750] sm:$0xf] }
  0xfa   : > { %v947_v40 = vadd.f32 %v946_v36, %v928_v29  ;;  %2018 = vmatmul.bf16.gmra.mxu0 %v7329_v38  ;;  %v4713_v54 = vor.u32 %v5567_v62, %v4710_v47  ;;  %v4694_v29 = vld [vmem:[%s8609_s1 + $0x578] sm:$0xf0] }
  0xfb   : > { %1672 = vmatmul.bf16.gmra.mxu1 %v7034_v4  ;;  %v4697_v39 = vor.u32 %v5563_v28, %v4694_v29  ;;  %v1781_v13 = vsel %vm327_vm0, %v1777_v14, %v7391_v15  ;;  %v4798_v14 = vld [vmem:[%s8609_s1 + $0x648] sm:$0xf0]  ;;  %v2146_v29 = vrot.slane %v6939_v50, 1 }
  0xfc   : > { %2361 = vmatpush.bf16.msrb.mxu3 %v4765_v35  ;;  %v910_v46 = vpop.f32.mrf.mxu2  ;;  %2398 = vmatpush.bf16.msra.mxu0 %v4713_v54  ;;  %v4741_v35 = vor.u32 %v5576_v0, %v4740_v21  ;;  %v5559_v54 = vld [vmem:[%s8609_s1 + $0x554] sm:$0xf] }
  0xfd   : > { %2051 = vmatmul.bf16.vlgmr.msra.gmra.mxu3 %v7257_v37  ;;  %v5580_v37 = vld [vmem:[%s8609_s1 + $0x5f4] sm:$0xf0]  ;;  %v7365_v24 = vadd.f32 %v910_v46, %v7222_v12  ;;  %2341 = vmatpush.bf16.msra.mxu1 %v4709_v52  ;;  %v4700_v12 = vld [vmem:[%s8609_s1 + $0x580] sm:$0xf]  ;;  %v5591_v21 = vld [vmem:[%s8609_s1 + $0x654] sm:$0xf] }
  0xfe   : > { %v4757_v55 = vor.u32 %v5580_v37, %v4756_v19  ;;  %v4701_v9 = vor.u32 %v5566_v60, %v4700_v12  ;;  %v4686_v19 = vld [vmem:[%s8609_s1 + $0x568] sm:$0xf0] }
  0xff   : > { %v929_v57 = vpop.f32.mrf.mxu0 }
 0x100   : > { %v965_v51 = vpop.f32.mrf.mxu3  ;;  %v930_v25 = vadd.f32 %v929_v57, %v7177_v41  ;;  %v948_v6 = vpop.f32.mrf.mxu1  ;;  %2362 = vmatpush.bf16.msrb.mxu3 %v4757_v55  ;;  %v5578_v41 = vld [vmem:[%s8609_s1 + $0x5e4] sm:$0xf0]  ;;  %2399 = vmatpush.bf16.msra.mxu0 %v4705_v17  ;;  %v4676_v55 = vld [vmem:[%s8609_s1 + $0x550] sm:$0xf]  ;;  %v5630_v17 = vld [vmem:[%s8609_s1 + $0x754] sm:$0xf0] }
 0x101   : > { %v7368_v56 = vadd.f32 %v965_v51, %v947_v40  ;;  %1999 = vmatmul.bf16.gmra.mxu2 %v1789_v53  ;;  %v4749_v10 = vor.u32 %v5578_v41, %v4748_v7  ;;  %2342 = vmatpush.bf16.msra.mxu1 %v4701_v9  ;;  %v4684_v40 = vld [vmem:[%s8609_s1 + $0x560] sm:$0xf]  ;;  %v7434_v51 = vpack.c.b16 %v1744_v1, %v1744_v1  ;;  %v2149_v9 = vrot.slane %v7076_v32, 1 }
 0x102   : > { %v949_v49 = vadd.f32 %v948_v6, %v930_v25  ;;  %v4685_v37 = vor.u32 %v5562_v48, %v4684_v40  ;;  %v1798_v25 = vshrl.u32 %v7171_v30, 16  ;;  %v2150_v41 = vrot.slane %v7171_v30, 1  ;;  %v4790_v48 = vld [vmem:[%s8609_s1 + $0x638] sm:$0xf0] }
 0x103   : > { %v1802_v7 = vshll.u32 %v7434_v51, 16  ;;  %v5005_v0 = vor.u32 %v5630_v17, %v5004_v8 }
 0x104   : > { %2363 = vmatpush.bf16.msrb.mxu3 %v4749_v10  ;;  %v913_v3 = vpop.f32.mrf.mxu2  ;;  %2400 = vmatpush.bf16.msra.mxu0 %v4697_v39  ;;  %v5614_v10 = vld [vmem:[%s8609_s1 + $0x6d4] sm:$0xf0]  ;;  %v7470_v32 = vsel %vm1010_vm2, %v2149_v9, %v2150_v41  ;;  %v1800_v20 = vor.u32 %v1798_v25, %v7391_v15  ;;  %v5612_v15 = vld [vmem:[%s8609_s1 + $0x6c4] sm:$0xf0]  ;;  %v5587_v39 = vld [vmem:[%s8609_s1 + $0x634] sm:$0xf] }
 0x105   : > { %v7413_v36 = vadd.f32 %v913_v3, %v7259_v23  ;;  %v5561_v23 = vld [vmem:[%s8609_s1 + $0x564] sm:$0xf]  ;;  %2343 = vmatpush.bf16.msra.mxu1 %v4693_v26  ;;  %v4806_v3 = vld [vmem:[%s8609_s1 + $0x658] sm:$0xf0]  ;;  %v4801_v26 = vor.u32 %v5589_v11, %v4798_v14  ;;  %v1804_v28 = vrot.slane %v1802_v7, 1 }
 0x106   : > { %v4689_v62 = vor.u32 %v5561_v23, %v4686_v19  ;;  %v4793_v23 = vor.u32 %v5587_v39, %v4790_v48  ;;  %v5626_v25 = vld [vmem:[%s8609_s1 + $0x734] sm:$0xf0]  ;;  %v4916_v7 = vld [vmem:[%s8609_s1 + $0x6a0] sm:$0xf]  ;;  %v5608_v9 = vld [vmem:[%s8609_s1 + $0x6a4] sm:$0xf0] }
 0x107   : > { %v932_v45 = vpop.f32.mrf.mxu0  ;;  %v4980_v11 = vld [vmem:[%s8609_s1 + $0x720] sm:$0xf]  ;;  %v2154_v48 = vrot.slane %v7240_v22, 1  ;;  %v4758_v22 = vld [vmem:[%s8609_s1 + $0x5f8] sm:$0xf0] }
 0x108   : > { %v967_v31 = vpop.f32.mrf.mxu3  ;;  %v933_v46 = vadd.f32 %v932_v45, %v7231_v16  ;;  %v951_v52 = vpop.f32.mrf.mxu1  ;;  %2364 = vmatpush.bf16.msrb.mxu3 %v4741_v35  ;;  %v5560_v16 = vld [vmem:[%s8609_s1 + $0x554] sm:$0xf0]  ;;  %2401 = vmatpush.bf16.msra.mxu0 %v4689_v62  ;;  %v4809_v35 = vor.u32 %v5591_v21, %v4806_v3  ;;  %v4996_v45 = vld [vmem:[%s8609_s1 + $0x740] sm:$0xf]  ;;  %v4908_v3 = vld [vmem:[%s8609_s1 + $0x690] sm:$0xf] }
 0x109   : > { %v7421_v43 = vadd.f32 %v967_v31, %v949_v49  ;;  %2344 = vmatpush.bf16.msra.mxu1 %v4685_v37  ;;  %v4677_v58 = vor.u32 %v5560_v16, %v4676_v55  ;;  %v2147_v31 = vrot.slane %v7034_v4, 1  ;;  %v1805_v37 = vsel %vm327_vm0, %v1800_v20, %v1804_v28  ;;  %v4924_v16 = vld [vmem:[%s8609_s1 + $0x6b0] sm:$0xf] }
 0x10a   : > { %v952_v47 = vadd.f32 %v951_v52, %v933_v46  ;;  %4638 = vmatmul.msk.bf16.vlgmr.msrb.gmra.mxu0 %vm562_vm1, %v1781_v13 }
 0x10b   : > { %4636 = vmatmul.msk.bf16.vlgmr.msrb.gmra.mxu1 %vm562_vm1, %v1781_v13  ;;  %v5628_v13 = vld [vmem:[%s8609_s1 + $0x744] sm:$0xf0]  ;;  %v7517_v55 = vsel %vm1010_vm2, %v2146_v29, %v2147_v31  ;;  %v4766_v29 = vld [vmem:[%s8609_s1 + $0x608] sm:$0xf0] }
 0x10c   : > { %v915_v57 = vpop.f32.mrf.mxu2  ;;  %2440 = vmatpush.bf16.msra.mxu3 %v4809_v35  ;;  %v4997_v19 = vor.u32 %v5628_v13, %v4996_v45  ;;  %v4972_v35 = vld [vmem:[%s8609_s1 + $0x710] sm:$0xf]  ;;  %v4900_v45 = vld [vmem:[%s8609_s1 + $0x680] sm:$0xf]  ;;  %v5604_v13 = vld [vmem:[%s8609_s1 + $0x684] sm:$0xf0] }
 0x10d   : > { %2056 = vmatmul.bf16.gmra.mxu3 %v1789_v53  ;;  %v4678_v53 = vld [vmem:[%s8609_s1 + $0x558] sm:$0xf0]  ;;  %v7449_v59 = vadd.f32 %v915_v57, %v7326_v27  ;;  %2345 = vmatpush.bf16.msra.mxu1 %v4677_v58  ;;  %v4940_v27 = vld [vmem:[%s8609_s1 + $0x6d0] sm:$0xf]  ;;  %v5585_v57 = vld [vmem:[%s8609_s1 + $0x624] sm:$0xf] }
 0x10e   : > { %v4681_v6 = vor.u32 %v5559_v54, %v4678_v53  ;;  %v5610_v54 = vld [vmem:[%s8609_s1 + $0x6b4] sm:$0xf0]  ;;  %v4782_v53 = vld [vmem:[%s8609_s1 + $0x628] sm:$0xf0] }
 0x10f   : > { %v934_v60 = vpop.f32.mrf.mxu0  ;;  %v4925_v58 = vor.u32 %v5610_v54, %v4924_v16 }
 0x110   : > { %v970_v63 = vpop.f32.mrf.mxu3  ;;  %v935_v34 = vadd.f32 %v934_v60, %v7265_v44  ;;  %v953_v49 = vpop.f32.mrf.mxu1  ;;  %2402 = vmatpush.bf16.msra.mxu0 %v4681_v6  ;;  %v4941_v44 = vor.u32 %v5614_v10, %v4940_v27  ;;  %v4785_v6 = vor.u32 %v5585_v57, %v4782_v53  ;;  %v4917_v27 = vor.u32 %v5608_v9, %v4916_v7  ;;  %v4774_v10 = vld [vmem:[%s8609_s1 + $0x618] sm:$0xf0]  ;;  %v4956_v7 = vld [vmem:[%s8609_s1 + $0x6f0] sm:$0xf]  ;;  %v5618_v9 = vld [vmem:[%s8609_s1 + $0x6f4] sm:$0xf0] }
 0x111   : > { %v7452_v12 = vadd.f32 %v970_v63, %v952_v47  ;;  %2070 = vmatmul.bf16.vlgmr.msrb.gmra.mxu2 %v7226_v33  ;;  %2414 = vmatpush.bf16.msrb.mxu1 %v4801_v26  ;;  %v4932_v33 = vld [vmem:[%s8609_s1 + $0x6c0] sm:$0xf]  ;;  %v4988_v63 = vld [vmem:[%s8609_s1 + $0x730] sm:$0xf]  ;;  %v5606_v26 = vld [vmem:[%s8609_s1 + $0x694] sm:$0xf0] }
 0x112   : > { %v954_v18 = vadd.f32 %v953_v49, %v935_v34  ;;  %2715 = vmatpush.bf16.msrb.mxu2 %v4941_v44  ;;  %v4933_v50 = vor.u32 %v5612_v15, %v4932_v33  ;;  %v4989_v60 = vor.u32 %v5626_v25, %v4988_v63  ;;  %v5583_v34 = vld [vmem:[%s8609_s1 + $0x614] sm:$0xf]  ;;  %v5624_v44 = vld [vmem:[%s8609_s1 + $0x724] sm:$0xf0]  ;;  %v4909_v28 = vor.u32 %v5606_v26, %v4908_v3  ;;  %v5622_v33 = vld [vmem:[%s8609_s1 + $0x714] sm:$0xf0] }
 0x113   : > { %v4777_v8 = vor.u32 %v5583_v34, %v4774_v10  ;;  %v4981_v17 = vor.u32 %v5624_v44, %v4980_v11  ;;  %v4973_v39 = vor.u32 %v5622_v33, %v4972_v35  ;;  %v7616_v63 = vsel %vm1010_vm2, %v2147_v31, %v2154_v48  ;;  %v5602_v25 = vld [vmem:[%s8609_s1 + $0x674] sm:$0xf0]  ;;  %v4750_v31 = vld [vmem:[%s8609_s1 + $0x5e8] sm:$0xf0]  ;;  %v4884_v44 = vld [vmem:[%s8609_s1 + $0x660] sm:$0xf] }
 0x114   : > { %2734 = vmatpush.bf16.msrb.mxu0 %v5005_v0  ;;  %v1215_v40 = vpop.f32.mrf.mxu2  ;;  %v5581_v0 = vld [vmem:[%s8609_s1 + $0x604] sm:$0xf]  ;;  %v4742_v3 = vld [vmem:[%s8609_s1 + $0x5d8] sm:$0xf0]  ;;  %v4948_v26 = vld [vmem:[%s8609_s1 + $0x6e0] sm:$0xf] }
 0x115   : > { %2415 = vmatpush.bf16.msrb.mxu1 %v4793_v23  ;;  %v4769_v15 = vor.u32 %v5581_v0, %v4766_v29  ;;  %v4964_v23 = vld [vmem:[%s8609_s1 + $0x700] sm:$0xf]  ;;  %v5616_v0 = vld [vmem:[%s8609_s1 + $0x6e4] sm:$0xf0] }
 0x116   : > { %2716 = vmatpush.bf16.msrb.mxu2 %v4933_v50  ;;  %v2144_v50 = vrot.slane %v7122_v2, 1  ;;  %v4949_v33 = vor.u32 %v5616_v0, %v4948_v26 }
 0x117   : > { %v1234_v52 = vpop.f32.mrf.mxu0 }
 0x118   : > { %v972_v1 = vpop.f32.mrf.mxu3  ;;  %v7512_v62 = vadd.f32 %v1234_v52, %v1215_v40  ;;  %v1239_v47 = vpop.f32.mrf.mxu1  ;;  %2735 = vmatpush.bf16.msrb.mxu0 %v4997_v19  ;;  %v2143_v40 = vrot.slane %v7023_v5, 1  ;;  %v4901_v5 = vor.u32 %v5604_v13, %v4900_v45  ;;  %v5620_v19 = vld [vmem:[%s8609_s1 + $0x704] sm:$0xf0]  ;;  %v5006_v13 = vld [vmem:[%s8609_s1 + $0x758] sm:$0xf0] }
 0x119   : > { %v7509_v46 = vadd.f32 %v972_v1, %v954_v18  ;;  %2416 = vmatpush.bf16.msrb.mxu1 %v4785_v6  ;;  %v4965_v54 = vor.u32 %v5620_v19, %v4964_v23  ;;  %v5577_v6 = vld [vmem:[%s8609_s1 + $0x5e4] sm:$0xf] }
 0x11a   : > { %4639 = vmatmul.msk.bf16.gmra.mxu0 %vm562_vm1, %v1805_v37  ;;  %2717 = vmatpush.bf16.msrb.mxu2 %v4925_v58  ;;  %v2145_v58 = vsel %vm1010_vm2, %v2143_v40, %v2144_v50  ;;  %v4753_v34 = vor.u32 %v5577_v6, %v4750_v31 }
 0x11b   : > { %4637 = vmatmul.msk.bf16.gmra.mxu1 %vm562_vm1, %v1805_v37 }
 0x11c   : > { %v1217_v49 = vpop.f32.mrf.mxu2  ;;  %2736 = vmatpush.bf16.msrb.mxu0 %v4989_v60 }
 0x11d   : > { %2365 = vmatmul.bf16.vlgmr.msrb.gmra.mxu3 %v7517_v55  ;;  %2417 = vmatpush.bf16.msrb.mxu1 %v4777_v8  ;;  %v5600_v8 = vld [vmem:[%s8609_s1 + $0x664] sm:$0xf0] }
 0x11e   : > { %2718 = vmatpush.bf16.msrb.mxu2 %v4917_v27  ;;  %v4942_v27 = vld [vmem:[%s8609_s1 + $0x6d8] sm:$0xf0] }
 0x11f   : > { %v1236_v18 = vpop.f32.mrf.mxu0 }
 0x120   : > { %v7558_v14 = vpop.f32.mrf.mxu3  ;;  %v7560_v20 = vadd.f32 %v1236_v18, %v1217_v49  ;;  %v7562_v21 = vpop.f32.mrf.mxu1  ;;  %2737 = vmatpush.bf16.msrb.mxu0 %v4981_v17  ;;  %v4957_v49 = vor.u32 %v5618_v9, %v4956_v7  ;;  %v5575_v17 = vld [vmem:[%s8609_s1 + $0x5d4] sm:$0xf]  ;;  %v4885_v18 = vor.u32 %v5600_v8, %v4884_v44  ;;  %v5012_v9 = vld [vmem:[%s8609_s1 + $0x760] sm:$0xf]  ;;  %v4910_v8 = vld [vmem:[%s8609_s1 + $0x698] sm:$0xf0] }
 0x121   : > { %2075 = vmatmul.bf16.gmra.mxu2 %v7329_v38  ;;  %2418 = vmatpush.bf16.msrb.mxu1 %v4769_v15  ;;  %v5579_v38 = vld [vmem:[%s8609_s1 + $0x5f4] sm:$0xf]  ;;  %v4745_v35 = vor.u32 %v5575_v17, %v4742_v3  ;;  %v5611_v15 = vld [vmem:[%s8609_s1 + $0x6c4] sm:$0xf]  ;;  %v4982_v3 = vld [vmem:[%s8609_s1 + $0x728] sm:$0xf0] }
 0x122   : > { %2719 = vmatpush.bf16.msrb.mxu2 %v4909_v28  ;;  %v4761_v16 = vor.u32 %v5579_v38, %v4758_v22  ;;  %v4926_v22 = vld [vmem:[%s8609_s1 + $0x6b8] sm:$0xf0]  ;;  %v5605_v44 = vld [vmem:[%s8609_s1 + $0x694] sm:$0xf] }
 0x124   : > { %v1220_v1 = vpop.f32.mrf.mxu2  ;;  %2738 = vmatpush.bf16.msrb.mxu0 %v4973_v39  ;;  %v4934_v39 = vld [vmem:[%s8609_s1 + $0x6c8] sm:$0xf0] }
 0x125   : > { %v7604_v52 = vadd.f32 %v1239_v47, %v1220_v1  ;;  %2419 = vmatpush.bf16.msrb.mxu1 %v4761_v16  ;;  %v4892_v47 = vld [vmem:[%s8609_s1 + $0x670] sm:$0xf]  ;;  %v4937_v48 = vor.u32 %v5611_v15, %v4934_v39  ;;  %v5627_v16 = vld [vmem:[%s8609_s1 + $0x744] sm:$0xf] }
 0x126   : > { %2720 = vmatpush.bf16.msrb.mxu2 %v4901_v5  ;;  %v4893_v4 = vor.u32 %v5602_v25, %v4892_v47  ;;  %v5609_v5 = vld [vmem:[%s8609_s1 + $0x6b4] sm:$0xf] }
 0x127   : > { %v7608_v57 = vpop.f32.mrf.mxu0  ;;  %v4929_v23 = vor.u32 %v5609_v5, %v4926_v22  ;;  %v4862_v22 = vld [vmem:[%s6097_s23 + $0x84] sm:$0xf0] }
 0x128   : > { %v7606_v37 = vpop.f32.mrf.mxu3  ;;  %v1253_v53 = vpop.f32.mrf.mxu1  ;;  %2739 = vmatpush.bf16.msrb.mxu0 %v4965_v54  ;;  %v4998_v54 = vld [vmem:[%s8609_s1 + $0x748] sm:$0xf0] }
 0x129   : > { %v1254_v60 = vadd.f32 %v1253_v53, %v7512_v62  ;;  %v5613_v62 = vld [vmem:[%s8609_s1 + $0x6d4] sm:$0xf]  ;;  %2420 = vmatpush.bf16.msrb.mxu1 %v4753_v34  ;;  %v5001_v47 = vor.u32 %v5627_v16, %v4998_v54 }
 0x12a   : > { %2403 = vmatmul.bf16.vlgmr.msra.gmra.mxu0 %v2145_v58  ;;  %v4945_v11 = vor.u32 %v5613_v62, %v4942_v27  ;;  %2721 = vmatpush.bf16.msrb.mxu2 %v4893_v4  ;;  %v5625_v34 = vld [vmem:[%s8609_s1 + $0x734] sm:$0xf]  ;;  %v5014_v62 = vld [vmem:[%s8609_s1 + $0x768] sm:$0xf0] }
 0x12b   : > { %v7644_v10 = vadd.f32 %v1254_v60, %v7315_v61  ;;  %2346 = vmatmul.bf16.vlgmr.msra.gmra.mxu1 %v2145_v58  ;;  %v5607_v58 = vld [vmem:[%s8609_s1 + $0x6a4] sm:$0xf] }
 0x12c   : > { %v1222_v61 = vpop.f32.mrf.mxu2  ;;  %2740 = vmatpush.bf16.msrb.mxu0 %v4957_v49  ;;  %2772 = vmatpush.bf16.msrb.mxu3 %v4945_v11  ;;  %v5631_v49 = vld [vmem:[%s8609_s1 + $0x764] sm:$0xf] }
 0x12d   : > { %2370 = vmatmul.bf16.gmra.mxu3 %v7616_v63  ;;  %v7666_v28 = vadd.f32 %v7562_v21, %v1222_v61  ;;  %2421 = vmatpush.bf16.msrb.mxu1 %v4745_v35  ;;  %v5629_v21 = vld [vmem:[%s8609_s1 + $0x754] sm:$0xf]  ;;  %v2156_v61 = vrot.slane %v7434_v51, 1 }
 0x12e   : > { %2722 = vmatpush.bf16.msrb.mxu2 %v4885_v18  ;;  %v5009_v1 = vor.u32 %v5629_v21, %v5006_v13  ;;  %v5623_v18 = vld [vmem:[%s8609_s1 + $0x724] sm:$0xf]  ;;  %v5621_v21 = vld [vmem:[%s8609_s1 + $0x714] sm:$0xf] }
 0x12f   : > { %v7676_v40 = vpop.f32.mrf.mxu0  ;;  %v4985_v51 = vor.u32 %v5623_v18, %v4982_v3  ;;  %v2157_v15 = vsel %vm1010_vm2, %v2150_v41, %v2156_v61  ;;  %v5601_v41 = vld [vmem:[%s8609_s1 + $0x674] sm:$0xf] }
 0x130   : > { %v7668_v29 = vpop.f32.mrf.mxu3  ;;  %v1255_v45 = vpop.f32.mrf.mxu1  ;;  %2741 = vmatpush.bf16.msrb.mxu0 %v4949_v33  ;;  %2773 = vmatpush.bf16.msrb.mxu3 %v4937_v48 }
 0x131   : > { %v1256_v38 = vadd.f32 %v1255_v45, %v7560_v20  ;;  %4810 = vmatmul.msk.bf16.vlgmr.msra.gmra.mxu2 %vm562_vm1, %v7470_v32  ;;  %v2152_v20 = vrot.slane %v7261_v42, 1  ;;  %v4918_v42 = vld [vmem:[%s8609_s1 + $0x6a8] sm:$0xf0] }
 0x132   : > { %2791 = vmatpush.bf16.msra.mxu2 %v5009_v1  ;;  %v4921_v6 = vor.u32 %v5607_v58, %v4918_v42 }
 0x133   : > { %v7694_v19 = vadd.f32 %v1256_v38, %v7365_v24  ;;  %v2153_v4 = vsel %vm1010_vm2, %v2144_v50, %v2152_v20  ;;  %v4966_v20 = vld [vmem:[%s8609_s1 + $0x708] sm:$0xf0] }
 0x134   : > { %v1291_v53 = vpop.f32.mrf.mxu2  ;;  %2774 = vmatpush.bf16.msrb.mxu3 %v4929_v23  ;;  %v5619_v23 = vld [vmem:[%s8609_s1 + $0x704] sm:$0xf] }
 0x135   : > { %v1292_v24 = vadd.f32 %v1291_v53, %v7558_v14  ;;  %v5632_v14 = vld [vmem:[%s8609_s1 + $0x764] sm:$0xf0]  ;;  %v4969_v54 = vor.u32 %v5619_v23, %v4966_v20  ;;  %v5658_v23 = vld [vmem:[%s8609_s1 + $0x834] sm:$0xf0]  ;;  %v5645_v20 = vld [vmem:[%s8609_s1 + $0x7d4] sm:$0xf] }
 0x136   : > { %2792 = vmatpush.bf16.msra.mxu2 %v5001_v47  ;;  %v5013_v50 = vor.u32 %v5632_v14, %v5012_v9 }
 0x137   : > { %v7712_v60 = vpop.f32.mrf.mxu0  ;;  %v1311_v31 = vadd.f32 %v7608_v57, %v1292_v24  ;;  %v4990_v57 = vld [vmem:[%s8609_s1 + $0x738] sm:$0xf0] }
 0x138   : > { %v7710_v25 = vpop.f32.mrf.mxu3  ;;  %v1258_v7 = vpop.f32.mrf.mxu1  ;;  %2775 = vmatpush.bf16.msrb.mxu3 %v4921_v6  ;;  %v4993_v11 = vor.u32 %v5625_v34, %v4990_v57  ;;  %2760 = vmatpush.bf16.msra.mxu1 %v5013_v50  ;;  %v4860_v50 = vld [vmem:[%s6097_s23 + $0x78] sm:$0xf]  ;;  %v5594_v57 = vld [vmem:[%s6097_s23 + $0x80] sm:$0xf0] }
 0x139   : > { %v1259_v2 = vadd.f32 %v1258_v7, %v7604_v52  ;;  %v7738_v27 = vadd.f32 %v1311_v31, %v7368_v56  ;;  %v5017_v52 = vor.u32 %v5631_v49, %v5014_v62  ;;  %v4913_v56 = vor.u32 %v5605_v44, %v4910_v8  ;;  %v5617_v31 = vld [vmem:[%s8609_s1 + $0x6f4] sm:$0xf]  ;;  %v5178_v7 = vld [vmem:[%s8609_s1 + $0x860] sm:$0xf]  ;;  %v5615_v49 = vld [vmem:[%s8609_s1 + $0x6e4] sm:$0xf] }
 0x13a   : > { %2408 = vmatmul.bf16.gmra.mxu0 %v2153_v4  ;;  %2793 = vmatpush.bf16.msra.mxu2 %v4993_v11  ;;  %v5170_v62 = vld [vmem:[%s8609_s1 + $0x850] sm:$0xf]  ;;  %v7842_v8 = vor.u32 %v5594_v57, %v4860_v50 }
 0x13b   : > { %v7747_v17 = vadd.f32 %v1259_v2, %v7413_v36  ;;  %2351 = vmatmul.bf16.gmra.mxu1 %v2153_v4  ;;  %v5603_v36 = vld [vmem:[%s8609_s1 + $0x684] sm:$0xf]  ;;  %2817 = vmatpush.bf16.msra.mxu0 %v5017_v52  ;;  %v5662_v52 = vld [vmem:[%s8609_s1 + $0x854] sm:$0xf0] }
 0x13c   : > { %v1293_v26 = vpop.f32.mrf.mxu2  ;;  %2776 = vmatpush.bf16.msrb.mxu3 %v4913_v56  ;;  %v5171_v56 = vor.u32 %v5662_v52, %v5170_v62  ;;  %v5597_v62 = vld [vmem:[%s6097_s23 + $0x98] sm:$0xf0] }
 0x13d   : > { %4812 = vmatmul.msk.bf16.vlgmr.msra.gmra.mxu3 %vm562_vm1, %v7470_v32  ;;  %v4902_v32 = vld [vmem:[%s8609_s1 + $0x688] sm:$0xf0]  ;;  %v1294_v0 = vadd.f32 %v1293_v26, %v7606_v37  ;;  %v4974_v37 = vld [vmem:[%s8609_s1 + $0x718] sm:$0xf0]  ;;  %v5114_v26 = vld [vmem:[%s8609_s1 + $0x7e0] sm:$0xf] }
 0x13e   : > { %v4905_v33 = vor.u32 %v5603_v36, %v4902_v32  ;;  %2794 = vmatpush.bf16.msra.mxu2 %v4985_v51  ;;  %v4977_v30 = vor.u32 %v5621_v21, %v4974_v37  ;;  %v5162_v51 = vld [vmem:[%s8609_s1 + $0x840] sm:$0xf] }
 0x13f   : > { %v1317_v39 = vpop.f32.mrf.mxu0  ;;  %v1313_v48 = vadd.f32 %v7676_v40, %v1294_v0  ;;  %v4894_v40 = vld [vmem:[%s8609_s1 + $0x678] sm:$0xf0] }
 0x140   : > { %v1611_v35 = vpop.f32.mrf.mxu3  ;;  %v1260_v45 = vpop.f32.mrf.mxu1  ;;  %2777 = vmatpush.bf16.msrb.mxu3 %v4905_v33  ;;  %v4897_v1 = vor.u32 %v5601_v41, %v4894_v40  ;;  %v5647_v33 = vld [vmem:[%s8609_s1 + $0x7e4] sm:$0xf]  ;;  %v5646_v40 = vld [vmem:[%s8609_s1 + $0x7d4] sm:$0xf0] }
 0x141   : > { %v1261_v13 = vadd.f32 %v1260_v45, %v7666_v28  ;;  %v7783_v38 = vadd.f32 %v1313_v48, %v7421_v43  ;;  %4811 = vmatmul.msk.bf16.gmra.mxu2 %vm562_vm1, %v2157_v15  ;;  %v5593_v28 = vld [vmem:[%s6097_s23 + $0x7c] sm:$0xf]  ;;  %v5599_v43 = vld [vmem:[%s8609_s1 + $0x664] sm:$0xf]  ;;  %v5186_v48 = vld [vmem:[%s8609_s1 + $0x870] sm:$0xf] }
 0x142   : > { %2795 = vmatpush.bf16.msra.mxu2 %v4977_v30  ;;  %v7804_v53 = vor.u32 %v5593_v28, %v4862_v22  ;;  %v5666_v45 = vld [vmem:[%s8609_s1 + $0x874] sm:$0xf0]  ;;  %v4874_v30 = vld [vmem:[%s6097_s23 + $0x9c] sm:$0xf0] }
 0x143   : > { %v7787_v5 = vadd.f32 %v1261_v13, %v7449_v59  ;;  %v4886_v59 = vld [vmem:[%s8609_s1 + $0x668] sm:$0xf0]  ;;  %v5596_v13 = vld [vmem:[%s6097_s23 + $0x94] sm:$0xf]  ;;  %v5187_v41 = vor.u32 %v5666_v45, %v5186_v48  ;;  %v5130_v48 = vld [vmem:[%s8609_s1 + $0x800] sm:$0xf] }
 0x144   : > { %v1296_v16 = vpop.f32.mrf.mxu2  ;;  %2778 = vmatpush.bf16.msrb.mxu3 %v4897_v1  ;;  %v4889_v42 = vor.u32 %v5599_v43, %v4886_v59  ;;  %v5154_v1 = vld [vmem:[%s8609_s1 + $0x830] sm:$0xf]  ;;  %v5108_v43 = vld [vmem:[%s8609_s1 + $0x7d8] sm:$0xf0] }
 0x145   : > { %v1297_v58 = vadd.f32 %v1296_v16, %v7668_v29  ;;  %v4958_v29 = vld [vmem:[%s8609_s1 + $0x6f8] sm:$0xf0] }
 0x146   : > { %2796 = vmatpush.bf16.msra.mxu2 %v4969_v54  ;;  %v4961_v14 = vor.u32 %v5617_v31, %v4958_v29  ;;  %v7896_v54 = vor.u32 %v5596_v13, %v4874_v30  ;;  %v5656_v29 = vld [vmem:[%s8609_s1 + $0x824] sm:$0xf0]  ;;  %v5084_v13 = vld [vmem:[%s8609_s1 + $0x7a8] sm:$0xf0] }
 0x147   : > { %v7806_v24 = vpop.f32.mrf.mxu0  ;;  %v1316_v6 = vadd.f32 %v7712_v60, %v1297_v58  ;;  %v5664_v60 = vld [vmem:[%s8609_s1 + $0x864] sm:$0xf0]  ;;  %v5155_v58 = vor.u32 %v5658_v23, %v5154_v1  ;;  %v5074_v1 = vld [vmem:[%s8609_s1 + $0x790] sm:$0xf] }
 0x148   : > { %v1613_v47 = vpop.f32.mrf.mxu3  ;;  %v1592_v4 = vpop.f32.mrf.mxu1  ;;  %2779 = vmatpush.bf16.msrb.mxu3 %v4889_v42  ;;  %v5179_v2 = vor.u32 %v5664_v60, %v5178_v7  ;;  %v5098_v42 = vld [vmem:[%s8609_s1 + $0x7c0] sm:$0xf]  ;;  %v5643_v7 = vld [vmem:[%s8609_s1 + $0x7c4] sm:$0xf] }
 0x149   : > { %v1612_v9 = vadd.f32 %v1611_v35, %v1592_v4  ;;  %v7822_v34 = vadd.f32 %v1316_v6, %v7452_v12  ;;  %v4950_v12 = vld [vmem:[%s8609_s1 + $0x6e8] sm:$0xf0]  ;;  %v5660_v35 = vld [vmem:[%s8609_s1 + $0x844] sm:$0xf0]  ;;  %v5146_v4 = vld [vmem:[%s8609_s1 + $0x820] sm:$0xf] }
 0x14a   : > { %2742 = vmatmul.bf16.vlgmr.msrb.gmra.mxu0 %v7804_v53  ;;  %2797 = vmatpush.bf16.msra.mxu2 %v4961_v14  ;;  %v5163_v21 = vor.u32 %v5660_v35, %v5162_v51  ;;  %v5644_v6 = vld [vmem:[%s8609_s1 + $0x7c4] sm:$0xf0]  ;;  %v5147_v50 = vor.u32 %v5656_v29, %v5146_v4  ;;  %v5066_v29 = vld [vmem:[%s8609_s1 + $0x780] sm:$0xf] }
 0x14b   : > { %2422 = vmatmul.bf16.vlgmr.msrb.gmra.mxu1 %v7517_v55  ;;  %v4953_v55 = vor.u32 %v5615_v49, %v4950_v12  ;;  %v4872_v12 = vld [vmem:[%s6097_s23 + $0x90] sm:$0xf] }
 0x14c   : > { %3137 = vmatpush.bf16.msra.mxu3 %v5179_v2  ;;  %v1298_v11 = vpop.f32.mrf.mxu2  ;;  %v5099_v2 = vor.u32 %v5644_v6, %v5098_v42 }
 0x14d   : > { %4813 = vmatmul.msk.bf16.gmra.mxu3 %vm562_vm1, %v2157_v15  ;;  %v1299_v44 = vadd.f32 %v1298_v11, %v7710_v25  ;;  %v5648_v25 = vld [vmem:[%s8609_s1 + $0x7e4] sm:$0xf0]  ;;  %v5116_v15 = vld [vmem:[%s8609_s1 + $0x7e8] sm:$0xf0]  ;;  %v5642_v11 = vld [vmem:[%s8609_s1 + $0x7b4] sm:$0xf0] }
 0x14e   : > { %2798 = vmatpush.bf16.msra.mxu2 %v4953_v55  ;;  %v5115_v0 = vor.u32 %v5648_v25, %v5114_v26  ;;  %v5119_v37 = vor.u32 %v5647_v33, %v5116_v15  ;;  %v5138_v55 = vld [vmem:[%s8609_s1 + $0x810] sm:$0xf]  ;;  %v5082_v15 = vld [vmem:[%s8609_s1 + $0x7a0] sm:$0xf] }
 0x14f   : > { %v7844_v18 = vpop.f32.mrf.mxu0  ;;  %v1318_v3 = vadd.f32 %v1317_v39, %v1299_v44  ;;  %v5654_v44 = vld [vmem:[%s8609_s1 + $0x814] sm:$0xf0] }
 0x150   : > { %v1616_v61 = vpop.f32.mrf.mxu3  ;;  %v1594_v36 = vpop.f32.mrf.mxu1  ;;  %3138 = vmatpush.bf16.msra.mxu3 %v5171_v56  ;;  %3118 = vmatpush.bf16.msrb.mxu1 %v5115_v0  ;;  %v5092_v56 = vld [vmem:[%s8609_s1 + $0x7b8] sm:$0xf0]  ;;  %v5139_v25 = vor.u32 %v5654_v44, %v5138_v55  ;;  %v5633_v55 = vld [vmem:[%s8609_s1 + $0x774] sm:$0xf] }
 0x151   : > { %v7855_v32 = vadd.f32 %v1613_v47, %v1594_v36  ;;  %v7867_v39 = vadd.f32 %v1318_v3, %v7509_v46  ;;  %2723 = vmatmul.bf16.vlgmr.msrb.gmra.mxu2 %v7842_v8  ;;  %3175 = vmatpush.bf16.msrb.mxu0 %v5119_v37  ;;  %v5106_v46 = vld [vmem:[%s8609_s1 + $0x7d0] sm:$0xf]  ;;  %v5111_v47 = vor.u32 %v5645_v20, %v5108_v43  ;;  %v5639_v37 = vld [vmem:[%s8609_s1 + $0x7a4] sm:$0xf]  ;;  %v5650_v43 = vld [vmem:[%s8609_s1 + $0x7f4] sm:$0xf0] }
 0x152   : > { %3163 = vmatpush.bf16.msrb.mxu2 %v5187_v41  ;;  %v5107_v22 = vor.u32 %v5646_v40, %v5106_v46  ;;  %v7945_v36 = vor.u32 %v5597_v62, %v4872_v12  ;;  %v5087_v41 = vor.u32 %v5639_v37, %v5084_v13  ;;  %v4868_v46 = vld [vmem:[%s6097_s23 + $0x80] sm:$0xf]  ;;  %v5595_v40 = vld [vmem:[%s6097_s23 + $0x88] sm:$0xf0]  ;;  %v5598_v37 = vld [vmem:[%s6097_s23 + $0xa0] sm:$0xf0] }
 0x153   : > { %v5663_v13 = vld [vmem:[%s8609_s1 + $0x864] sm:$0xf] }
 0x154   : > { %3139 = vmatpush.bf16.msra.mxu3 %v5163_v21  ;;  %v1630_v28 = vpop.f32.mrf.mxu2  ;;  %3119 = vmatpush.bf16.msrb.mxu1 %v5107_v22  ;;  %v5652_v21 = vld [vmem:[%s8609_s1 + $0x804] sm:$0xf0]  ;;  %v5122_v22 = vld [vmem:[%s8609_s1 + $0x7f0] sm:$0xf] }
 0x155   : > { %v1631_v16 = vadd.f32 %v1630_v28, %v1612_v9  ;;  %v5100_v9 = vld [vmem:[%s8609_s1 + $0x7c8] sm:$0xf0]  ;;  %3176 = vmatpush.bf16.msrb.mxu0 %v5111_v47  ;;  %v5131_v30 = vor.u32 %v5652_v21, %v5130_v48  ;;  %v5638_v28 = vld [vmem:[%s8609_s1 + $0x794] sm:$0xf0]  ;;  %v7991_v47 = vor.u32 %v5595_v40, %v4868_v46  ;;  %v5123_v6 = vor.u32 %v5650_v43, %v5122_v22  ;;  %v5288_v48 = vld [vmem:[%s8609_s1 + $0x8f0] sm:$0xf] }
 0x156   : > { %v5103_v49 = vor.u32 %v5643_v7, %v5100_v9  ;;  %v5075_v20 = vor.u32 %v5638_v28, %v5074_v1  ;;  %v5636_v7 = vld [vmem:[%s8609_s1 + $0x784] sm:$0xf0]  ;;  %v4880_v21 = vld [vmem:[%s6097_s23 + $0x98] sm:$0xf]  ;;  %v5352_v40 = vld [vmem:[%s8609_s1 + $0x970] sm:$0xf] }
 0x157   : > { %v7907_v31 = vpop.f32.mrf.mxu0  ;;  %v7919_v14 = vadd.f32 %v1631_v16, %v7644_v10  ;;  %v5090_v10 = vld [vmem:[%s8609_s1 + $0x7b0] sm:$0xf]  ;;  %v5637_v16 = vld [vmem:[%s8609_s1 + $0x794] sm:$0xf] }
 0x158   : > { %v1618_v59 = vpop.f32.mrf.mxu3  ;;  %v1597_v60 = vpop.f32.mrf.mxu1  ;;  %3140 = vmatpush.bf16.msra.mxu3 %v5155_v58  ;;  %3120 = vmatpush.bf16.msrb.mxu1 %v5099_v2  ;;  %v5068_v2 = vld [vmem:[%s8609_s1 + $0x788] sm:$0xf0] }
 0x159   : > { %v1617_v57 = vadd.f32 %v1616_v61, %v1597_v60  ;;  %3177 = vmatpush.bf16.msrb.mxu0 %v5103_v49  ;;  %v5641_v61 = vld [vmem:[%s8609_s1 + $0x7b4] sm:$0xf]  ;;  %v5635_v60 = vld [vmem:[%s8609_s1 + $0x784] sm:$0xf]  ;;  %v5067_v49 = vor.u32 %v5636_v7, %v5066_v29  ;;  %v5172_v7 = vld [vmem:[%s8609_s1 + $0x858] sm:$0xf0] }
 0x15a   : > { %2747 = vmatmul.bf16.gmra.mxu0 %v7896_v54  ;;  %v5095_v51 = vor.u32 %v5641_v61, %v5092_v56  ;;  %v5071_v62 = vor.u32 %v5635_v60, %v5068_v2  ;;  %v5060_v61 = vld [vmem:[%s8609_s1 + $0x778] sm:$0xf0]  ;;  %v5344_v60 = vld [vmem:[%s8609_s1 + $0x960] sm:$0xf]  ;;  %v5696_v2 = vld [vmem:[%s8609_s1 + $0x964] sm:$0xf0] }
 0x15b   : > { %2427 = vmatmul.bf16.gmra.mxu1 %v7616_v63  ;;  %v5091_v63 = vor.u32 %v5642_v11, %v5090_v10  ;;  %v5058_v11 = vld [vmem:[%s8609_s1 + $0x770] sm:$0xf] }
 0x15c   : > { %3141 = vmatpush.bf16.msra.mxu3 %v5147_v50  ;;  %v1632_v52 = vpop.f32.mrf.mxu2 }
 0x15d   : > { %2780 = vmatmul.bf16.vlgmr.msrb.gmra.mxu3 %v7842_v8  ;;  %v1633_v3 = vadd.f32 %v1632_v52, %v7855_v32  ;;  %3121 = vmatpush.bf16.msrb.mxu1 %v5091_v63  ;;  %v5640_v32 = vld [vmem:[%s8609_s1 + $0x7a4] sm:$0xf0] }
 0x15e   : > { %3178 = vmatpush.bf16.msrb.mxu0 %v5095_v51  ;;  %v2900_v51 = vshll.u32 %v7896_v54, 16 }
 0x15f   : > { %v7947_v0 = vpop.f32.mrf.mxu0  ;;  %v7950_v35 = vadd.f32 %v1633_v3, %v7694_v19  ;;  %v5083_v19 = vor.u32 %v5640_v32, %v5082_v15  ;;  %v2893_v15 = vshrl.u32 %v7804_v53, 16 }
 0x160   : > { %v1687_v26 = vpop.f32.mrf.mxu3  ;;  %v1599_v33 = vpop.f32.mrf.mxu1  ;;  %3142 = vmatpush.bf16.msra.mxu3 %v5139_v25  ;;  %v8066_v28 = vrot.slane %v2900_v51, 1  ;;  %v2883_v51 = vshll.u32 %v7842_v8, 16 }
 0x161   : > { %v1619_v45 = vadd.f32 %v1618_v59, %v1599_v33  ;;  %2728 = vmatmul.bf16.gmra.mxu2 %v7945_v36  ;;  %3122 = vmatpush.bf16.msrb.mxu1 %v5083_v19  ;;  %v5076_v59 = vld [vmem:[%s8609_s1 + $0x798] sm:$0xf0] }
 0x162   : > { %3179 = vmatpush.bf16.msrb.mxu0 %v5087_v41  ;;  %v5079_v4 = vor.u32 %v5637_v16, %v5076_v59  ;;  %v5665_v41 = vld [vmem:[%s8609_s1 + $0x874] sm:$0xf]  ;;  %v5280_v59 = vld [vmem:[%s8609_s1 + $0x8e0] sm:$0xf] }
 0x164   : > { %3143 = vmatpush.bf16.msra.mxu3 %v5131_v30  ;;  %v1635_v23 = vpop.f32.mrf.mxu2  ;;  %v5180_v30 = vld [vmem:[%s8609_s1 + $0x868] sm:$0xf0] }
 0x165   : > { %v1636_v58 = vadd.f32 %v1635_v23, %v1617_v57  ;;  %3123 = vmatpush.bf16.msrb.mxu1 %v5075_v20  ;;  %v5183_v46 = vor.u32 %v5663_v13, %v5180_v30  ;;  %v5698_v23 = vld [vmem:[%s8609_s1 + $0x974] sm:$0xf0]  ;;  %v8072_v20 = vld [vmem:[%s6097_s23 + $0xa8] sm:$0x11]  ;;  %v5156_v30 = vld [vmem:[%s8609_s1 + $0x838] sm:$0xf0] }
 0x166   : > { %3180 = vmatpush.bf16.msrb.mxu0 %v5079_v4  ;;  %v5353_v16 = vor.u32 %v5698_v23, %v5352_v40 }
 0x167   : > { %v7999_v9 = vpop.f32.mrf.mxu0  ;;  %v8008_v50 = vadd.f32 %v1636_v58, %v7747_v17  ;;  %v2895_v17 = vshll.u32 %v7804_v53, 16  ;;  %v5680_v58 = vld [vmem:[%s8609_s1 + $0x8e4] sm:$0xf0] }
 0x168   : > { %v1689_v42 = vpop.f32.mrf.mxu3  ;;  %v1668_v57 = vpop.f32.mrf.mxu1  ;;  %3144 = vmatpush.bf16.msra.mxu3 %v5123_v6  ;;  %v5281_v29 = vor.u32 %v5680_v58, %v5280_v59 }
 0x169   : > { %v1669_v12 = vadd.f32 %v1668_v57, %v7806_v24  ;;  %3124 = vmatpush.bf16.msrb.mxu1 %v5067_v49  ;;  %v5634_v24 = vld [vmem:[%s8609_s1 + $0x774] sm:$0xf0]  ;;  %v2897_v32 = vrot.slane %v2895_v17, 1  ;;  %v8098_v49 = vor.u32 %v5598_v37, %v4880_v21  ;;  %v5657_v21 = vld [vmem:[%s8609_s1 + $0x834] sm:$0xf] }
 0x16a   : > { %5020 = vmatmul.msk.bf16.vlgmr.msra.gmra.mxu0 %vm562_vm1, %v7991_v47  ;;  %v5059_v44 = vor.u32 %v5634_v24, %v5058_v11  ;;  %v5345_v24 = vor.u32 %v5696_v2, %v5344_v60  ;;  %v2904_v60 = vshrl.u32 %v7991_v47, 16  ;;  %v5148_v2 = vld [vmem:[%s8609_s1 + $0x828] sm:$0xf0] }
 0x16b   : > { %v1688_v10 = vadd.f32 %v1687_v26, %v1669_v12  ;;  %5018 = vmatmul.msk.bf16.vlgmr.msra.gmra.mxu1 %vm562_vm1, %v7991_v47  ;;  %3181 = vmatpush.bf16.msrb.mxu0 %v5071_v62  ;;  %v5063_v26 = vor.u32 %v5633_v55, %v5060_v61  ;;  %v2898_v43 = vor.u32 %v2897_v32, %v2893_v15  ;;  %v5678_v55 = vld [vmem:[%s8609_s1 + $0x8d4] sm:$0xf0]  ;;  %v5659_v61 = vld [vmem:[%s8609_s1 + $0x844] sm:$0xf]  ;;  %v2906_v32 = vshll.u32 %v7991_v47, 16 }
 0x16c   : > { %v1637_v52 = vpop.f32.mrf.mxu2 }
 0x16d   : > { %2785 = vmatmul.bf16.gmra.mxu3 %v7945_v36  ;;  %v8027_v63 = vadd.f32 %v1688_v10, %v7738_v27  ;;  %v1638_v56 = vadd.f32 %v1637_v52, %v1619_v45  ;;  %3125 = vmatpush.bf16.msrb.mxu1 %v5059_v44  ;;  %v5682_v45 = vld [vmem:[%s8609_s1 + $0x8f4] sm:$0xf0]  ;;  %v2875_v10 = vunpack.c.h.b16 %v8072_v20  ;;  %v8107_v11 = vsel %vm327_vm0, %v2898_v43, %v8066_v28 }
 0x16e   : > { %v2888_v43 = vshll.u32 %v7945_v36, 16 }
 0x16f   : > { %v8034_v25 = vpop.f32.mrf.mxu0  ;;  %v8038_v33 = vadd.f32 %v1638_v56, %v7787_v5  ;;  %3182 = vmatpush.bf16.msrb.mxu0 %v5063_v26  ;;  %v5289_v5 = vor.u32 %v5682_v45, %v5288_v48  ;;  %v5164_v56 = vld [vmem:[%s8609_s1 + $0x848] sm:$0xf0]  ;;  %v5336_v26 = vld [vmem:[%s8609_s1 + $0x950] sm:$0xf]  ;;  %v8136_v48 = vpack.c.b16 %v2875_v10, %v2875_v10 }
 0x170   : > { %v8032_v3 = vpop.f32.mrf.mxu3  ;;  %v1670_v27 = vpop.f32.mrf.mxu1 }
 0x171   : > { %v1671_v19 = vadd.f32 %v1670_v27, %v7844_v18  ;;  %2799 = vmatmul.bf16.vlgmr.msra.gmra.mxu2 %v7804_v53  ;;  %v5188_v18 = vld [vmem:[%s8609_s1 + $0x878] sm:$0xf0]  ;;  %3194 = vmatpush.bf16.msra.mxu1 %v5183_v46  ;;  %v5167_v27 = vor.u32 %v5659_v61, %v5164_v56  ;;  %v2926_v59 = vshll.u32 %v8136_v48, 16 }
 0x172   : > { %v5191_v22 = vor.u32 %v5665_v41, %v5188_v18  ;;  %3470 = vmatpush.bf16.msra.mxu2 %v5289_v5  ;;  %v5328_v41 = vld [vmem:[%s8609_s1 + $0x940] sm:$0xf]  ;;  %v5692_v18 = vld [vmem:[%s8609_s1 + $0x944] sm:$0xf0] }
 0x173   : > { %v1690_v1 = vadd.f32 %v1689_v42, %v1671_v19  ;;  %v5661_v42 = vld [vmem:[%s8609_s1 + $0x854] sm:$0xf]  ;;  %3489 = vmatpush.bf16.msra.mxu0 %v5353_v16  ;;  %v5264_v19 = vld [vmem:[%s8609_s1 + $0x8c0] sm:$0xf]  ;;  %v2922_v16 = vshrl.u32 %v7896_v54, 16  ;;  %v2928_v61 = vrot.slane %v2926_v59, 1 }
 0x174   : > { %v1995_v6 = vpop.f32.mrf.mxu2  ;;  %3220 = vmatpush.bf16.msrb.mxu3 %v5191_v22  ;;  %v5175_v12 = vor.u32 %v5661_v42, %v5172_v7  ;;  %v5159_v22 = vor.u32 %v5657_v21, %v5156_v30  ;;  %v5329_v42 = vor.u32 %v5692_v18, %v5328_v41  ;;  %v2874_v41 = vunpack.c.l.b16 %v8072_v20 }
 0x175   : > { %v8084_v4 = vadd.f32 %v1690_v1, %v7783_v38  ;;  %v8096_v57 = vadd.f32 %v7999_v9, %v1995_v6  ;;  %v5272_v9 = vld [vmem:[%s8609_s1 + $0x8d0] sm:$0xf]  ;;  %v2885_v1 = vrot.slane %v2883_v51, 1  ;;  %v5674_v6 = vld [vmem:[%s8609_s1 + $0x8b4] sm:$0xf0]  ;;  %v2924_v56 = vor.u32 %v2922_v16, %v8066_v28 }
 0x176   : > { %3471 = vmatpush.bf16.msra.mxu2 %v5281_v29  ;;  %3195 = vmatpush.bf16.msra.mxu1 %v5175_v12  ;;  %v5273_v44 = vor.u32 %v5678_v55, %v5272_v9  ;;  %v5655_v29 = vld [vmem:[%s8609_s1 + $0x824] sm:$0xf]  ;;  %v5320_v12 = vld [vmem:[%s8609_s1 + $0x930] sm:$0xf]  ;;  %v5248_v51 = vld [vmem:[%s8609_s1 + $0x8a0] sm:$0xf] }
 0x177   : > { %v8102_v62 = vpop.f32.mrf.mxu0  ;;  %3490 = vmatpush.bf16.msra.mxu0 %v5345_v24  ;;  %v5151_v9 = vor.u32 %v5655_v29, %v5148_v2  ;;  %v5290_v29 = vld [vmem:[%s8609_s1 + $0x8f8] sm:$0xf0]  ;;  %v4823_v2 = vld [vmem:[%s6097_s23 + $0xb0] sm:$0x1] }
 0x178   : > { %v8100_v38 = vpop.f32.mrf.mxu3  ;;  %v1673_v17 = vpop.f32.mrf.mxu1 }
 0x179   : > { %v1674_v52 = vadd.f32 %v1673_v17, %v7907_v31  ;;  %v5694_v31 = vld [vmem:[%s8609_s1 + $0x954] sm:$0xf0]  ;;  %v2908_v17 = vrot.slane %v2906_v32, 1  ;;  %v5140_v32 = vld [vmem:[%s8609_s1 + $0x818] sm:$0xf0] }
 0x17a   : > { %5021 = vmatmul.msk.bf16.gmra.mxu0 %vm562_vm1, %v8098_v49  ;;  %3472 = vmatpush.bf16.msra.mxu2 %v5273_v44  ;;  %v5337_v45 = vor.u32 %v5694_v31, %v5336_v26  ;;  %v2910_v44 = vshll.u32 %v8098_v49, 16 }
 0x17b   : > { %v1693_v15 = vadd.f32 %v8032_v3, %v1674_v52  ;;  %5019 = vmatmul.msk.bf16.gmra.mxu1 %vm562_vm1, %v8098_v49  ;;  %v5676_v3 = vld [vmem:[%s8609_s1 + $0x8c4] sm:$0xf0]  ;;  %v8192_v52 = vrot.slane %v2888_v43, 1  ;;  %v5651_v43 = vld [vmem:[%s8609_s1 + $0x804] sm:$0xf]  ;;  %v2909_v16 = vor.u32 %v2908_v17, %v2904_v60  ;;  %v8261_v60 = vpack.c.b16 %v2874_v41, %v2874_v41 }
 0x17c   : > { %v1997_v37 = vpop.f32.mrf.mxu2  ;;  %3196 = vmatpush.bf16.msra.mxu1 %v5167_v27  ;;  %v5265_v13 = vor.u32 %v5676_v3, %v5264_v19  ;;  %3491 = vmatpush.bf16.msra.mxu0 %v5337_v45  ;;  %v5672_v27 = vld [vmem:[%s8609_s1 + $0x8a4] sm:$0xf0]  ;;  %v5312_v45 = vld [vmem:[%s8609_s1 + $0x920] sm:$0xf]  ;;  %v8226_v30 = vrot.slane %v2910_v44, 1 }
 0x17d   : > { %3145 = vmatmul.bf16.vlgmr.msra.gmra.mxu3 %v8107_v11  ;;  %v8148_v5 = vadd.f32 %v1693_v15, %v7822_v34  ;;  %v8160_v46 = vadd.f32 %v8034_v25, %v1997_v37  ;;  %v2881_v34 = vshrl.u32 %v7842_v8, 16  ;;  %v5256_v25 = vld [vmem:[%s8609_s1 + $0x8b0] sm:$0xf]  ;;  %v5249_v28 = vor.u32 %v5672_v27, %v5248_v51  ;;  %v5688_v19 = vld [vmem:[%s8609_s1 + $0x924] sm:$0xf0] }
 0x17e   : > { %3473 = vmatpush.bf16.msra.mxu2 %v5265_v13  ;;  %v5257_v24 = vor.u32 %v5674_v6, %v5256_v25  ;;  %v5686_v25 = vld [vmem:[%s8609_s1 + $0x914] sm:$0xf0]  ;;  %v5232_v17 = vld [vmem:[%s8609_s1 + $0x880] sm:$0xf]  ;;  %v5124_v44 = vld [vmem:[%s8609_s1 + $0x7f8] sm:$0xf0] }
 0x17f   : > { %v8165_v23 = vpop.f32.mrf.mxu0  ;;  %v2886_v10 = vor.u32 %v2885_v1, %v2881_v34  ;;  %v8230_v34 = vsel %vm327_vm0, %v2924_v56, %v2928_v61  ;;  %v5240_v1 = vld [vmem:[%s8609_s1 + $0x890] sm:$0xf]  ;;  %v5296_v61 = vld [vmem:[%s8609_s1 + $0x900] sm:$0xf]  ;;  %v5684_v56 = vld [vmem:[%s8609_s1 + $0x904] sm:$0xf0] }
 0x180   : > { %v8162_v40 = vpop.f32.mrf.mxu3  ;;  %v1675_v58 = vpop.f32.mrf.mxu1  ;;  %3197 = vmatpush.bf16.msra.mxu1 %v5159_v22  ;;  %3492 = vmatpush.bf16.msra.mxu0 %v5329_v42  ;;  %v5670_v22 = vld [vmem:[%s8609_s1 + $0x894] sm:$0xf0]  ;;  %v5304_v42 = vld [vmem:[%s8609_s1 + $0x910] sm:$0xf]  ;;  %v2914_v27 = vshrl.u32 %v7945_v36, 16 }
 0x181   : > { %v1676_v7 = vadd.f32 %v1675_v58, %v7947_v0  ;;  %2804 = vmatmul.bf16.gmra.mxu2 %v7896_v54  ;;  %v5690_v0 = vld [vmem:[%s8609_s1 + $0x934] sm:$0xf0]  ;;  %v2891_v13 = vsel %vm327_vm0, %v2886_v10, %v8192_v52  ;;  %v5241_v59 = vor.u32 %v5670_v22, %v5240_v1  ;;  %v5132_v58 = vld [vmem:[%s8609_s1 + $0x808] sm:$0xf0]  ;;  %v5305_v10 = vor.u32 %v5686_v25, %v5304_v42  ;;  %v5354_v1 = vld [vmem:[%s8609_s1 + $0x978] sm:$0xf0] }
 0x182   : > { %3474 = vmatpush.bf16.msra.mxu2 %v5257_v24  ;;  %v5321_v26 = vor.u32 %v5690_v0, %v5320_v12  ;;  %v5135_v6 = vor.u32 %v5651_v43, %v5132_v58  ;;  %v5668_v24 = vld [vmem:[%s8609_s1 + $0x884] sm:$0xf0]  ;;  %v8275_v0 = vsel %vm327_vm0, %v2909_v16, %v8226_v30  ;;  %v5274_v16 = vld [vmem:[%s8609_s1 + $0x8d8] sm:$0xf0]  ;;  %v2916_v58 = vor.u32 %v2914_v27, %v8192_v52  ;;  %v5693_v27 = vld [vmem:[%s8609_s1 + $0x954] sm:$0xf] }
 0x183   : > { %v1695_v55 = vadd.f32 %v8100_v38, %v1676_v7  ;;  %v5653_v38 = vld [vmem:[%s8609_s1 + $0x814] sm:$0xf] }
 0x184   : > { %v2000_v31 = vpop.f32.mrf.mxu2  ;;  %3198 = vmatpush.bf16.msra.mxu1 %v5151_v9  ;;  %3493 = vmatpush.bf16.msra.mxu0 %v5321_v26 }
 0x185   : > { %v8206_v15 = vadd.f32 %v1695_v55, %v7867_v39  ;;  %v8218_v3 = vadd.f32 %v8102_v62, %v2000_v31  ;;  %v5143_v39 = vor.u32 %v5653_v38, %v5140_v32  ;;  %v5313_v62 = vor.u32 %v5688_v19, %v5312_v45  ;;  %v5282_v32 = vld [vmem:[%s8609_s1 + $0x8e8] sm:$0xf0] }
 0x186   : > { %3475 = vmatpush.bf16.msra.mxu2 %v5249_v28  ;;  %v5233_v55 = vor.u32 %v5668_v24, %v5232_v17  ;;  %v2876_v38 = vunpack.c.l.b16 %v4823_v2  ;;  %v5679_v28 = vld [vmem:[%s8609_s1 + $0x8e4] sm:$0xf]  ;;  %v2918_v19 = vshll.u32 %v8261_v60, 16  ;;  %v5266_v2 = vld [vmem:[%s8609_s1 + $0x8c8] sm:$0xf0] }
 0x187   : > { %v8222_v37 = vpop.f32.mrf.mxu0 }
 0x188   : > { %v8220_v21 = vpop.f32.mrf.mxu3  ;;  %v2033_v18 = vpop.f32.mrf.mxu1  ;;  %3199 = vmatpush.bf16.msra.mxu1 %v5143_v39  ;;  %3494 = vmatpush.bf16.msra.mxu0 %v5313_v62  ;;  %v3275_v39 = vrot.slane %v7842_v8, 1  ;;  %v5697_v62 = vld [vmem:[%s8609_s1 + $0x974] sm:$0xf]  ;;  %v2920_v42 = vrot.slane %v2918_v19, 1  ;;  %v8327_v25 = vpack.c.b16 %v2876_v38, %v2876_v38 }
 0x189   : > { %v2034_v20 = vadd.f32 %v2033_v18, %v8096_v57  ;;  %v5681_v57 = vld [vmem:[%s8609_s1 + $0x8f4] sm:$0xf]  ;;  %v5297_v18 = vor.u32 %v5684_v56, %v5296_v61  ;;  %v5357_v43 = vor.u32 %v5697_v62, %v5354_v1  ;;  %v5360_v56 = vld [vmem:[%s8609_s1 + $0x980] sm:$0xf] }
 0x18a   : > { %3183 = vmatmul.bf16.vlgmr.msrb.gmra.mxu0 %v2891_v13  ;;  %v5293_v12 = vor.u32 %v5681_v57, %v5290_v29  ;;  %3476 = vmatpush.bf16.msra.mxu2 %v5241_v59  ;;  %v5346_v57 = vld [vmem:[%s8609_s1 + $0x968] sm:$0xf0] }
 0x18b   : > { %v8258_v7 = vadd.f32 %v2034_v20, %v7919_v14  ;;  %3126 = vmatmul.bf16.vlgmr.msrb.gmra.mxu1 %v2891_v13  ;;  %v5649_v14 = vld [vmem:[%s8609_s1 + $0x7f4] sm:$0xf]  ;;  %v3276_v13 = vrot.slane %v7945_v36, 1 }
 0x18c   : > { %v2002_v9 = vpop.f32.mrf.mxu2  ;;  %3200 = vmatpush.bf16.msra.mxu1 %v5135_v6  ;;  %3527 = vmatpush.bf16.msra.mxu3 %v5293_v12  ;;  %v5127_v31 = vor.u32 %v5649_v14, %v5124_v44  ;;  %v5677_v20 = vld [vmem:[%s8609_s1 + $0x8d4] sm:$0xf]  ;;  %v5695_v6 = vld [vmem:[%s8609_s1 + $0x964] sm:$0xf]  ;;  %v2921_v14 = vsel %vm327_vm0, %v2916_v58, %v2920_v42 }
 0x18d   : > { %3150 = vmatmul.bf16.gmra.mxu3 %v8230_v34  ;;  %v8287_v26 = vadd.f32 %v8165_v23, %v2002_v9  ;;  %v5285_v23 = vor.u32 %v5679_v28, %v5282_v32  ;;  %3495 = vmatpush.bf16.msra.mxu0 %v5305_v10  ;;  %v8313_v8 = vsel %vm1010_vm2, %v3275_v39, %v3276_v13  ;;  %v2930_v9 = vshrl.u32 %v8098_v49, 16  ;;  %v5699_v28 = vld [vmem:[%s8609_s1 + $0x984] sm:$0xf]  ;;  %v5362_v32 = vld [vmem:[%s8609_s1 + $0x988] sm:$0xf0] }
 0x18e   : > { %3477 = vmatpush.bf16.msra.mxu2 %v5233_v55  ;;  %v5349_v52 = vor.u32 %v5695_v6, %v5346_v57  ;;  %v2934_v55 = vshll.u32 %v8327_v25, 16  ;;  %v5673_v39 = vld [vmem:[%s8609_s1 + $0x8b4] sm:$0xf] }
 0x18f   : > { %v8298_v45 = vpop.f32.mrf.mxu0  ;;  %v2932_v62 = vor.u32 %v2930_v9, %v8226_v30 }
 0x190   : > { %v8289_v51 = vpop.f32.mrf.mxu3  ;;  %v2035_v41 = vpop.f32.mrf.mxu1  ;;  %3201 = vmatpush.bf16.msra.mxu1 %v5127_v31  ;;  %3528 = vmatpush.bf16.msra.mxu3 %v5285_v23  ;;  %v2936_v1 = vrot.slane %v2934_v55, 1  ;;  %v3278_v55 = vrot.slane %v7804_v53, 1  ;;  %v5234_v53 = vld [vmem:[%s8609_s1 + $0x888] sm:$0xf0] }
 0x191   : > { %v2036_v22 = vadd.f32 %v2035_v41, %v8160_v46  ;;  %5192 = vmatmul.msk.bf16.vlgmr.msrb.gmra.mxu2 %vm562_vm1, %v8275_v0  ;;  %v5277_v46 = vor.u32 %v5677_v20, %v5274_v16  ;;  %3496 = vmatpush.bf16.msra.mxu0 %v5297_v18  ;;  %v5258_v41 = vld [vmem:[%s8609_s1 + $0x8b8] sm:$0xf0] }
 0x192   : > { %3546 = vmatpush.bf16.msrb.mxu2 %v5357_v43  ;;  %v5330_v43 = vld [vmem:[%s8609_s1 + $0x948] sm:$0xf0]  ;;  %v2937_v42 = vsel %vm327_vm0, %v2932_v62, %v2936_v1 }
 0x193   : > { %v8324_v59 = vadd.f32 %v2036_v22, %v7950_v35  ;;  %v5675_v35 = vld [vmem:[%s8609_s1 + $0x8c4] sm:$0xf] }
 0x194   : > { %v2071_v29 = vpop.f32.mrf.mxu2  ;;  %3529 = vmatpush.bf16.msra.mxu3 %v5277_v46  ;;  %v5269_v17 = vor.u32 %v5675_v35, %v5266_v2  ;;  %v5691_v22 = vld [vmem:[%s8609_s1 + $0x944] sm:$0xf] }
 0x195   : > { %v2072_v12 = vadd.f32 %v2071_v29, %v8162_v40  ;;  %v5700_v40 = vld [vmem:[%s8609_s1 + $0x984] sm:$0xf0]  ;;  %v5333_v20 = vor.u32 %v5691_v22, %v5330_v43  ;;  %v5689_v29 = vld [vmem:[%s8609_s1 + $0x934] sm:$0xf] }
 0x196   : > { %3547 = vmatpush.bf16.msrb.mxu2 %v5349_v52  ;;  %v5361_v31 = vor.u32 %v5700_v40, %v5360_v56  ;;  %v5322_v52 = vld [vmem:[%s8609_s1 + $0x938] sm:$0xf0] }
 0x197   : > { %v8344_v24 = vpop.f32.mrf.mxu0  ;;  %v2091_v44 = vadd.f32 %v8222_v37, %v2072_v12  ;;  %v5338_v37 = vld [vmem:[%s8609_s1 + $0x958] sm:$0xf0]  ;;  %v5325_v12 = vor.u32 %v5689_v29, %v5322_v52 }
 0x198   : > { %v8342_v10 = vpop.f32.mrf.mxu3  ;;  %v2038_v61 = vpop.f32.mrf.mxu1  ;;  %3530 = vmatpush.bf16.msra.mxu3 %v5269_v17  ;;  %v5341_v23 = vor.u32 %v5693_v27, %v5338_v37  ;;  %3515 = vmatpush.bf16.msrb.mxu1 %v5361_v31 }
 0x199   : > { %v2039_v38 = vadd.f32 %v2038_v61, %v8218_v3  ;;  %v8370_v19 = vadd.f32 %v2091_v44, %v8027_v63  ;;  %v5365_v3 = vor.u32 %v5699_v28, %v5362_v32  ;;  %v5261_v63 = vor.u32 %v5673_v39, %v5258_v41  ;;  %v5667_v61 = vld [vmem:[%s8609_s1 + $0x884] sm:$0xf]  ;;  %v5685_v32 = vld [vmem:[%s8609_s1 + $0x914] sm:$0xf]  ;;  %v5298_v41 = vld [vmem:[%s8609_s1 + $0x908] sm:$0xf0] }
 0x19a   : > { %3188 = vmatmul.bf16.gmra.mxu0 %v2921_v14  ;;  %3548 = vmatpush.bf16.msrb.mxu2 %v5341_v23  ;;  %v3279_v44 = vrot.slane %v7896_v54, 1  ;;  %v5237_v27 = vor.u32 %v5667_v61, %v5234_v53  ;;  %v5306_v23 = vld [vmem:[%s8609_s1 + $0x918] sm:$0xf0] }
 0x19b   : > { %v8379_v18 = vadd.f32 %v2039_v38, %v8008_v50  ;;  %3131 = vmatmul.bf16.gmra.mxu1 %v2921_v14  ;;  %v5671_v50 = vld [vmem:[%s8609_s1 + $0x8a4] sm:$0xf]  ;;  %3572 = vmatpush.bf16.msrb.mxu0 %v5365_v3 }
 0x19c   : > { %v2073_v30 = vpop.f32.mrf.mxu2  ;;  %3531 = vmatpush.bf16.msra.mxu3 %v5261_v63  ;;  %v8435_v31 = vsel %vm1010_vm2, %v3278_v55, %v3279_v44 }
 0x19d   : > { %5194 = vmatmul.msk.bf16.vlgmr.msrb.gmra.mxu3 %vm562_vm1, %v8275_v0  ;;  %v5250_v0 = vld [vmem:[%s8609_s1 + $0x8a8] sm:$0xf0]  ;;  %v2074_v16 = vadd.f32 %v2073_v30, %v8220_v21  ;;  %v5669_v21 = vld [vmem:[%s8609_s1 + $0x894] sm:$0xf] }
 0x19e   : > { %v5253_v58 = vor.u32 %v5671_v50, %v5250_v0  ;;  %3549 = vmatpush.bf16.msrb.mxu2 %v5333_v20  ;;  %v3286_v20 = vrot.slane %v8136_v48, 1 }
 0x19f   : > { %v2097_v6 = vpop.f32.mrf.mxu0  ;;  %v2093_v57 = vadd.f32 %v8298_v45, %v2074_v16  ;;  %v5242_v45 = vld [vmem:[%s8609_s1 + $0x898] sm:$0xf0] }
 0x1a0   : > { %v2366_v46 = vpop.f32.mrf.mxu3  ;;  %v2040_v35 = vpop.f32.mrf.mxu1  ;;  %3532 = vmatpush.bf16.msra.mxu3 %v5253_v58  ;;  %v5245_v14 = vor.u32 %v5669_v21, %v5242_v45 }
 0x1a1   : > { %v2041_v2 = vadd.f32 %v2040_v35, %v8287_v26  ;;  %v8413_v17 = vadd.f32 %v2093_v57, %v8084_v4  ;;  %5193 = vmatmul.msk.bf16.gmra.mxu2 %vm562_vm1, %v2937_v42  ;;  %v5687_v26 = vld [vmem:[%s8609_s1 + $0x924] sm:$0xf]  ;;  %v5314_v4 = vld [vmem:[%s8609_s1 + $0x928] sm:$0xf0] }
 0x1a2   : > { %3550 = vmatpush.bf16.msrb.mxu2 %v5325_v12 }
 0x1a3   : > { %v8417_v9 = vadd.f32 %v2041_v2, %v8038_v33  ;;  %v5317_v33 = vor.u32 %v5687_v26, %v5314_v4 }
 0x1a4   : > { %v2076_v56 = vpop.f32.mrf.mxu2  ;;  %3533 = vmatpush.bf16.msra.mxu3 %v5245_v14 }
 0x1a5   : > { %v2077_v54 = vadd.f32 %v2076_v56, %v8289_v51  ;;  %v5309_v51 = vor.u32 %v5685_v32, %v5306_v23 }
 0x1a6   : > { %3551 = vmatpush.bf16.msrb.mxu2 %v5317_v33 }
 0x1a7   : > { %v2404_v38 = vpop.f32.mrf.mxu0  ;;  %v2096_v37 = vadd.f32 %v8344_v24, %v2077_v54  ;;  %v5683_v24 = vld [vmem:[%s8609_s1 + $0x904] sm:$0xf] }
 0x1a8   : > { %v2368_v40 = vpop.f32.mrf.mxu3  ;;  %v2347_v28 = vpop.f32.mrf.mxu1  ;;  %3534 = vmatpush.bf16.msra.mxu3 %v5237_v27  ;;  %v5301_v1 = vor.u32 %v5683_v24, %v5298_v41 }
 0x1a9   : > { %v2367_v3 = vadd.f32 %v2366_v46, %v2347_v28  ;;  %v8445_v39 = vadd.f32 %v2096_v37, %v8148_v5 }
 0x1aa   : > { %3497 = vmatmul.bf16.vlgmr.msra.gmra.mxu0 %v8435_v31  ;;  %3552 = vmatpush.bf16.msrb.mxu2 %v5309_v51 }
 0x1ab   : > { %3202 = vmatmul.bf16.vlgmr.msra.gmra.mxu1 %v8107_v11 }
 0x1ac   : > { %v2078_v62 = vpop.f32.mrf.mxu2 }
 0x1ad   : > { %5195 = vmatmul.msk.bf16.gmra.mxu3 %vm562_vm1, %v2937_v42  ;;  %v2079_v5 = vadd.f32 %v2078_v62, %v8342_v10  ;;  %v3287_v42 = vsel %vm1010_vm2, %v3279_v44, %v3286_v20 }
 0x1ae   : > { %3553 = vmatpush.bf16.msrb.mxu2 %v5301_v1 }
 0x1af   : > { %v2406_v22 = vpop.f32.mrf.mxu0  ;;  %v2098_v43 = vadd.f32 %v2097_v6, %v2079_v5 }
 0x1b0   : > { %v2371_v63 = vpop.f32.mrf.mxu3  ;;  %v2349_v50 = vpop.f32.mrf.mxu1 }
 0x1b1   : > { %v2369_v11 = vadd.f32 %v2368_v40, %v2349_v50  ;;  %v8458_v30 = vadd.f32 %v2098_v43, %v8206_v15  ;;  %3478 = vmatmul.bf16.vlgmr.msra.gmra.mxu2 %v8313_v8  ;;  %v3284_v15 = vrot.slane %v8261_v60, 1  ;;  %v3282_v60 = vrot.slane %v8098_v49, 1 }
 0x1b2   : > { %v3288_v40 = vrot.slane %v8327_v25, 1 }
 0x1b3   : > { %v3285_v52 = vsel %vm1010_vm2, %v3276_v13, %v3284_v15 }
 0x1b4   : > { %v2385_v0 = vpop.f32.mrf.mxu2 }
 0x1b5   : > { %v2386_v16 = vadd.f32 %v2385_v0, %v2367_v3 }
 0x1b7   : > { %v2409_v58 = vpop.f32.mrf.mxu0  ;;  %v8464_v10 = vadd.f32 %v2386_v16, %v8258_v7 }
 0x1b8   : > { %v2373_v46 = vpop.f32.mrf.mxu3  ;;  %v2352_v6 = vpop.f32.mrf.mxu1 }
 0x1b9   : > { %v2372_v57 = vadd.f32 %v2371_v63, %v2352_v6 }
 0x1ba   : > { %3502 = vmatmul.bf16.gmra.mxu0 %v3287_v42 }
 0x1bb   : > { %3207 = vmatmul.bf16.gmra.mxu1 %v8230_v34  ;;  %v3281_v34 = vrot.slane %v7991_v47, 1 }
 0x1bc   : > { %v2387_v35 = vpop.f32.mrf.mxu2 }
 0x1bd   : > { %3535 = vmatmul.bf16.vlgmr.msra.gmra.mxu3 %v8313_v8  ;;  %v2388_v48 = vadd.f32 %v2387_v35, %v2369_v11  ;;  %v3283_v44 = vsel %vm1010_vm2, %v3281_v34, %v3282_v60 }
 0x1bf   : > { %v2411_v21 = vpop.f32.mrf.mxu0  ;;  %v8473_v7 = vadd.f32 %v2388_v48, %v8324_v59 }
 0x1c0   : > { %v2442_v29 = vpop.f32.mrf.mxu3  ;;  %v2354_v2 = vpop.f32.mrf.mxu1 }
 0x1c1   : > { %v2374_v12 = vadd.f32 %v2373_v46, %v2354_v2  ;;  %3483 = vmatmul.bf16.gmra.mxu2 %v3285_v52 }
 0x1c4   : > { %v2390_v45 = vpop.f32.mrf.mxu2 }
 0x1c5   : > { %v2391_v8 = vadd.f32 %v2390_v45, %v2372_v57 }
 0x1c7   : > { %v2743_v55 = vpop.f32.mrf.mxu0  ;;  %v2456_v36 = vadd.f32 %v2391_v8, %v8379_v18 }
 0x1c8   : > { %v2444_v14 = vpop.f32.mrf.mxu3  ;;  %v2423_v13 = vpop.f32.mrf.mxu1 }
 0x1c9   : > { %v2424_v26 = vadd.f32 %v2423_v13, %v2404_v38 }
 0x1ca   : > { %5368 = vmatmul.msk.bf16.vlgmr.msrb.gmra.mxu0 %vm562_vm1, %v3283_v44 }
 0x1cb   : > { %v2443_v59 = vadd.f32 %v2442_v29, %v2424_v26  ;;  %5366 = vmatmul.msk.bf16.vlgmr.msrb.gmra.mxu1 %vm562_vm1, %v3283_v44 }
 0x1cc   : > { %v2392_v4 = vpop.f32.mrf.mxu2 }
 0x1cd   : > { %3540 = vmatmul.bf16.gmra.mxu3 %v3285_v52  ;;  %v2453_v47 = vadd.f32 %v2443_v59, %v8370_v19  ;;  %v2393_v49 = vadd.f32 %v2392_v4, %v2374_v12  ;;  %v3289_v19 = vsel %vm1010_vm2, %v3282_v60, %v3288_v40 }
 0x1cf   : > { %v2745_v56 = vpop.f32.mrf.mxu0  ;;  %v2458_v33 = vadd.f32 %v2393_v49, %v8417_v9 }
 0x1d0   : > { %v2447_v61 = vpop.f32.mrf.mxu3  ;;  %v2425_v53 = vpop.f32.mrf.mxu1 }
 0x1d1   : > { %v2426_v54 = vadd.f32 %v2425_v53, %v2406_v22  ;;  %3554 = vmatmul.bf16.vlgmr.msrb.gmra.mxu2 %v8435_v31 }
 0x1d3   : > { %v2445_v18 = vadd.f32 %v2444_v14, %v2426_v54 }
 0x1d4   : > { %v2724_v27 = vpop.f32.mrf.mxu2 }
 0x1d5   : > { %v2455_v38 = vadd.f32 %v2445_v18, %v8413_v17  ;;  %v2744_v37 = vadd.f32 %v2743_v55, %v2724_v27 }
 0x1d7   : > { %v2748_v32 = vpop.f32.mrf.mxu0 }
 0x1d8   : > { %v2449_v28 = vpop.f32.mrf.mxu3  ;;  %v2428_v23 = vpop.f32.mrf.mxu1 }
 0x1d9   : > { %v2429_v3 = vadd.f32 %v2428_v23, %v2409_v58 }
 0x1da   : > { %5369 = vmatmul.msk.bf16.gmra.mxu0 %vm562_vm1, %v3289_v19 }
 0x1db   : > { %v2448_v9 = vadd.f32 %v2447_v61, %v2429_v3  ;;  %5367 = vmatmul.msk.bf16.gmra.mxu1 %vm562_vm1, %v3289_v19 }
 0x1dc   : > { %v2726_v51 = vpop.f32.mrf.mxu2 }
 0x1dd   : > { %v2457_v31 = vadd.f32 %v2448_v9, %v8445_v39  ;;  %v2746_v24 = vadd.f32 %v2745_v56, %v2726_v51 }
 0x1df   : > { %v2750_v41 = vpop.f32.mrf.mxu0 }
 0x1e0   : > { %v2781_v25 = vpop.f32.mrf.mxu3  ;;  %v2430_v62 = vpop.f32.mrf.mxu1 }
 0x1e1   : > { %v2431_v17 = vadd.f32 %v2430_v62, %v2411_v21  ;;  %3559 = vmatmul.bf16.gmra.mxu2 %v3287_v42 }
 0x1e3   : > { %v2450_v1 = vadd.f32 %v2449_v28, %v2431_v17 }
 0x1e4   : > { %v2729_v5 = vpop.f32.mrf.mxu2 }
 0x1e5   : > { %v2459_v63 = vadd.f32 %v2450_v1, %v8458_v30  ;;  %v2749_v22 = vadd.f32 %v2748_v32, %v2729_v5 }
 0x1e7   : > { %v2819_v50 = vpop.f32.mrf.mxu0 }
 0x1e8   : > { %v2783_v43 = vpop.f32.mrf.mxu3  ;;  %v2762_v11 = vpop.f32.mrf.mxu1 }
 0x1e9   : > { %v2763_v20 = vadd.f32 %v2762_v11, %v2744_v37 }
 0x1eb   : > { %v2829_v0 = vadd.f32 %v2763_v20, %v8464_v10 }
 0x1ec   : > { %v2731_v16 = vpop.f32.mrf.mxu2 }
 0x1ed   : > { %v2751_v46 = vadd.f32 %v2750_v41, %v2731_v16 }
 0x1ef   : > { %v2821_v58 = vpop.f32.mrf.mxu0 }
 0x1f0   : > { %v2786_v39 = vpop.f32.mrf.mxu3  ;;  %v2764_v6 = vpop.f32.mrf.mxu1 }
 0x1f1   : > { %v2765_v57 = vadd.f32 %v2764_v6, %v2746_v24 }
 0x1f3   : > { %v2831_v15 = vadd.f32 %v2765_v57, %v8473_v7 }
 0x1f4   : > { %v2800_v42 = vpop.f32.mrf.mxu2 }
 0x1f5   : > { %v2801_v35 = vadd.f32 %v2800_v42, %v2781_v25 }
 0x1f7   : > { %v2824_v29 = vpop.f32.mrf.mxu0  ;;  %v2820_v30 = vadd.f32 %v2819_v50, %v2801_v35 }
 0x1f8   : > { %v2788_v48 = vpop.f32.mrf.mxu3  ;;  %v2767_v52 = vpop.f32.mrf.mxu1 }
 0x1f9   : > { %v2768_v21 = vadd.f32 %v2767_v52, %v2749_v22  ;;  %v8493_v2 = vadd.f32 %v2820_v30, %v2453_v47 }
 0x1fb   : > { %v2833_v12 = vadd.f32 %v2768_v21, %v2456_v36 }
 0x1fc   : > { %v2802_v34 = vpop.f32.mrf.mxu2 }
 0x1fd   : > { %v2803_v10 = vadd.f32 %v2802_v34, %v2783_v43 }
 0x1ff   : > { %v2826_v60 = vpop.f32.mrf.mxu0  ;;  %v2822_v8 = vadd.f32 %v2821_v58, %v2803_v10 }
 0x200   : > { %v3146_v45 = vpop.f32.mrf.mxu3  ;;  %v2769_v14 = vpop.f32.mrf.mxu1 }
 0x201   : > { %v2770_v55 = vadd.f32 %v2769_v14, %v2751_v46  ;;  %v8495_v44 = vadd.f32 %v2822_v8, %v2455_v38 }
 0x203   : > { %v2835_v7 = vadd.f32 %v2770_v55, %v2458_v33 }
 0x204   : > { %v2805_v13 = vpop.f32.mrf.mxu2 }
 0x205   : > { %v2806_v26 = vadd.f32 %v2805_v13, %v2786_v39 }
 0x207   : > { %v3184_v59 = vpop.f32.mrf.mxu0  ;;  %v2825_v4 = vadd.f32 %v2824_v29, %v2806_v26  ;;  %v3606_v26 = vld [vmem:[%s8611_s3] sm:$0x3] }
 0x208   : > { %v3127_v49 = vpop.f32.mrf.mxu1  ;;  %v3148_v61 = vpop.f32.mrf.mxu3 }
 0x209   : > { %v8497_v56 = vadd.f32 %v2825_v4, %v2457_v31  ;;  %v3147_v27 = vadd.f32 %v3146_v45, %v3127_v49  ;;  %v3592_v45 = vld [vmem:[%s8610_s2] sm:$0x3] }
 0x20c   : > { %v2807_v47 = vpop.f32.mrf.mxu2 }
 0x20d   : > { %v2808_v36 = vadd.f32 %v2807_v47, %v2788_v48 }
 0x20f   : > { %v3186_v53 = vpop.f32.mrf.mxu0  ;;  %v2827_v54 = vadd.f32 %v2826_v60, %v2808_v36 }
 0x210   : > { %v3129_v18 = vpop.f32.mrf.mxu1  ;;  %v3151_v37 = vpop.f32.mrf.mxu3 }
 0x211   : > { %v8499_v40 = vadd.f32 %v2827_v54, %v2459_v63  ;;  %v3149_v23 = vadd.f32 %v3148_v61, %v3129_v18  ;;  %v8523_v54 = vperm.slane %v3606_v26, 0 }
 0x214   : > { %v3165_v38 = vpop.f32.mrf.mxu2 }
 0x215   : > { %v3166_v28 = vadd.f32 %v3165_v38, %v3147_v27  ;;  %v8525_v27 = vperm.slane %v3592_v45, 1 }
 0x217   : > { %v8501_v33 = vpop.f32.mrf.mxu0  ;;  %v3232_v32 = vadd.f32 %v3166_v28, %v2829_v0  ;;  %v8527_v28 = vperm.slane %v3606_v26, 1 }
 0x218   : > { %v3132_v19 = vpop.f32.mrf.mxu1  ;;  %v3153_v9 = vpop.f32.mrf.mxu3 }
 0x219   : > { %v3152_v41 = vadd.f32 %v3151_v37, %v3132_v19 }
 0x21c   : > { %v3167_v3 = vpop.f32.mrf.mxu2 }
 0x21d   : > { %v3168_v51 = vadd.f32 %v3167_v3, %v3149_v23 }
 0x21f   : > { %v8503_v31 = vpop.f32.mrf.mxu0  ;;  %v3234_v24 = vadd.f32 %v3168_v51, %v2831_v15 }
 0x220   : > { %v3134_v25 = vpop.f32.mrf.mxu1  ;;  %v3222_v1 = vpop.f32.mrf.mxu3 }
 0x221   : > { %v3154_v43 = vadd.f32 %v3153_v9, %v3134_v25 }
 0x224   : > { %v3170_v62 = vpop.f32.mrf.mxu2 }
 0x225   : > { %v3171_v17 = vadd.f32 %v3170_v62, %v3152_v41 }
 0x227   : > { %v8505_v5 = vadd.f32 %v3171_v17, %v2833_v12  ;;  %v3498_v22 = vpop.f32.mrf.mxu0 }
 0x228   : > { %v3203_v63 = vpop.f32.mrf.mxu1  ;;  %v3224_v16 = vpop.f32.mrf.mxu3 }
 0x229   : > { %v3204_v12 = vadd.f32 %v3203_v63, %v3184_v59 }
 0x22b   : > { %v3223_v14 = vadd.f32 %v3222_v1, %v3204_v12 }
 0x22c   : > { %v3172_v50 = vpop.f32.mrf.mxu2 }
 0x22d   : > { %v3173_v11 = vadd.f32 %v3172_v50, %v3154_v43  ;;  %v3233_v49 = vadd.f32 %v3223_v14, %v8493_v2 }
 0x22f   : > { %v8507_v20 = vadd.f32 %v3173_v11, %v2835_v7  ;;  %v3500_v46 = vpop.f32.mrf.mxu0  ;;  %v8516_v7 = vperm.slane %v3592_v45, 0 }
 0x230   : > { %v3205_v0 = vpop.f32.mrf.mxu1  ;;  %v3227_v6 = vpop.f32.mrf.mxu3 }
 0x231   : > { %v3206_v61 = vadd.f32 %v3205_v0, %v3186_v53 }
 0x233   : > { %v3225_v19 = vadd.f32 %v3224_v16, %v3206_v61 }
 0x234   : > { %v3479_v39 = vpop.f32.mrf.mxu2 }
 0x235   : > { %v3499_v21 = vadd.f32 %v3498_v22, %v3479_v39  ;;  %v3235_v62 = vadd.f32 %v3225_v19, %v8495_v44 }
 0x237   : > { %v3503_v57 = vpop.f32.mrf.mxu0 }
 0x238   : > { %v3208_v58 = vpop.f32.mrf.mxu1  ;;  %v8511_v35 = vpop.f32.mrf.mxu3 }
 0x239   : > { %v3209_v17 = vadd.f32 %v3208_v58, %v8501_v33 }
 0x23b   : > { %v3228_v0 = vadd.f32 %v3227_v6, %v3209_v17 }
 0x23c   : > { %v3481_v15 = vpop.f32.mrf.mxu2 }
 0x23d   : > { %v3501_v13 = vadd.f32 %v3500_v46, %v3481_v15 }
 0x23f   : > { %v3505_v29 = vpop.f32.mrf.mxu0 }
 0x240   : > { %v8509_v42 = vpop.f32.mrf.mxu1  ;;  %v3536_v34 = vpop.f32.mrf.mxu3 }
 0x244   : > { %v3484_v48 = vpop.f32.mrf.mxu2 }
 0x245   : > { %v3504_v51 = vadd.f32 %v3503_v57, %v3484_v48 }
 0x247   : > { %v3574_v60 = vpop.f32.mrf.mxu0 }
 0x248   : > { %v3517_v30 = vpop.f32.mrf.mxu1  ;;  %v3538_v37 = vpop.f32.mrf.mxu3 }
 0x249   : > { %v3518_v10 = vadd.f32 %v3517_v30, %v3499_v21  ;;  %v3237_v30 = vadd.f32 %v3228_v0, %v8497_v56  ;;  %v3211_v21 = vadd.f32 %v8509_v42, %v8503_v31 }
 0x24b   : > { %v3584_v55 = vadd.f32 %v3518_v10, %v3232_v32 }
 0x24c   : > { %v3486_v52 = vpop.f32.mrf.mxu2 }
 0x24d   : > { %v3598_v36 = vmul.f32 %v8516_v7, %v3584_v55  ;;  %v3506_v15 = vadd.f32 %v3505_v29, %v3486_v52  ;;  %v3230_v29 = vadd.f32 %v8511_v35, %v3211_v21 }
 0x24f   : > { %v3576_v32 = vpop.f32.mrf.mxu0  ;;  %v3612_v2 = vadd.f32 %v8523_v54, %v3598_v36  ;;  %v3239_v26 = vadd.f32 %v3230_v29, %v8499_v40 }
 0x250   : > { %v3519_v8 = vpop.f32.mrf.mxu1  ;;  %v3541_v46 = vpop.f32.mrf.mxu3 }
 0x251   : > { %v3520_v47 = vadd.f32 %v3519_v8, %v3501_v13  ;;  %v3620_v63 = vmax.f32 %v3612_v2, 0.0 }
 0x253   : > { %v3586_v23 = vadd.f32 %v3520_v47, %v3234_v24 }
 0x254   : > { %v3555_v4 = vpop.f32.mrf.mxu2 }
 0x255   : > { %v3556_v59 = vadd.f32 %v3555_v4, %v3536_v34  ;;  %v3600_v1 = vmul.f32 %v8516_v7, %v3586_v23 }
 0x257   : > { %v3575_v18 = vadd.f32 %v3574_v60, %v3556_v59  ;;  %v3614_v16 = vadd.f32 %v8523_v54, %v3600_v1  ;;  %v3579_v39 = vpop.f32.mrf.mxu0 }
 0x258   : > { %v3522_v3 = vpop.f32.mrf.mxu1  ;;  %v3543_v31 = vpop.f32.mrf.mxu3 }
 0x259   : > { %v3585_v38 = vadd.f32 %v3575_v18, %v3233_v49  ;;  %v3523_v43 = vadd.f32 %v3522_v3, %v3504_v51  ;;  %v3622_v12 = vmax.f32 %v3614_v16, 0.0 }
 0x25b   : > { %v3599_v53 = vmul.f32 %v8525_v27, %v3585_v38  ;;  %v3588_v33 = vadd.f32 %v3523_v43, %v8505_v5 }
 0x25c   : > { %v3557_v9 = vpop.f32.mrf.mxu2 }
 0x25d   : > { %v3613_v25 = vadd.f32 %v8527_v28, %v3599_v53  ;;  %v3558_v41 = vadd.f32 %v3557_v9, %v3538_v37  ;;  %v3602_v10 = vmul.f32 %v8516_v7, %v3588_v33 }
 0x25f   : > { %v3621_v24 = vmax.f32 %v3613_v25, 0.0  ;;  %v3577_v22 = vadd.f32 %v3576_v32, %v3558_v41  ;;  %v3616_v52 = vadd.f32 %v8523_v54, %v3602_v10  ;;  %v3581_v4 = vpop.f32.mrf.mxu0 }
 0x260   : > { %v3524_v57 = vpop.f32.mrf.mxu1 }
 0x261   : > { %v3628_v50 = vpack.c.bf16 %v3621_v24, %v3620_v63  ;;  %v3587_v11 = vadd.f32 %v3577_v22, %v3235_v62  ;;  %v3525_v60 = vadd.f32 %v3524_v57, %v3506_v15  ;;  %v3624_v59 = vmax.f32 %v3616_v52, 0.0 }
 0x263   : > { %3632 = vst [vmem:[%s8539_s5] sm:$0xff] %v3628_v50  ;;  %v3601_v44 = vmul.f32 %v8525_v27, %v3587_v11  ;;  %v3590_v14 = vadd.f32 %v3525_v60, %v8507_v20 }
 0x264   : > { %v3560_v58 = vpop.f32.mrf.mxu2 }
 0x265   : > { %v3615_v6 = vadd.f32 %v8527_v28, %v3601_v44  ;;  %v3561_v48 = vadd.f32 %v3560_v58, %v3541_v46  ;;  %v3604_v49 = vmul.f32 %v8516_v7, %v3590_v14 }
 0x267   : > { %v3623_v34 = vmax.f32 %v3615_v6, 0.0  ;;  %v3580_v5 = vadd.f32 %v3579_v39, %v3561_v48  ;;  %v3618_v36 = vadd.f32 %v8523_v54, %v3604_v49 }
 0x269   : > { %v3629_v45 = vpack.c.bf16 %v3623_v34, %v3622_v12  ;;  %v3589_v8 = vadd.f32 %v3580_v5, %v3237_v30  ;;  %v3626_v7 = vmax.f32 %v3618_v36, 0.0 }
 0x26b   : > { %3633 = vst [vmem:[%s8539_s5 + $0x8] sm:$0xff] %v3629_v45  ;;  %v3603_v56 = vmul.f32 %v8525_v27, %v3589_v8 }
 0x26c   : > { %v3562_v42 = vpop.f32.mrf.mxu2 }
 0x26d   : > { %v3617_v55 = vadd.f32 %v8527_v28, %v3603_v56  ;;  %v3563_v13 = vadd.f32 %v3562_v42, %v3543_v31 }
 0x26f   : > { %v3625_v35 = vmax.f32 %v3617_v55, 0.0  ;;  %v3582_v61 = vadd.f32 %v3581_v4, %v3563_v13 }
 0x271   : > { %v3630_v20 = vpack.c.bf16 %v3625_v35, %v3624_v59  ;;  %v3591_v47 = vadd.f32 %v3582_v61, %v3239_v26 }
 0x273   : > { %3634 = vst [vmem:[%s8539_s5 + $0x10] sm:$0xff] %v3630_v20  ;;  %v3605_v40 = vmul.f32 %v8525_v27, %v3591_v47 }
 0x275   : > { %v3619_v18 = vadd.f32 %v8527_v28, %v3605_v40 }
 0x277   : > { %v3627_v37 = vmax.f32 %v3619_v18, 0.0 }
 0x279   : > { %v3631_v38 = vpack.c.bf16 %v3627_v37, %v3626_v7 }
 0x27b   : > { %3635 = vst [vmem:[%s8539_s5 + $0x18] sm:$0xff] %v3631_v38 }
 0x27c   : > { %5810 = shalt.err (!%p5807_p6)
}
 0x27d   : > { %s5879_s6 = smov 128   ;;  %s5880_s5 = smov 8  }
 0x27e   : > { %5710 = dma.vmem_to_hbm [thread:$0]  (%p5957_p3), %s3652_s10, 512, %s3654_s12, %s3637_s13, %s5879_s6, %s5879_s6, %s5880_s5  }
 0x27f PF: > { %p5716_p7 = scmp.ge.s32.totalorder %s5877_s22, 2  ;;  %s3668_s18 = sand.u32 1, %s5849_s15  }
 0x280   : > { %s3669_s19 = scalar_lea.sflag [#allocation3], %s3668_s18 }
 0x281   : > { %p5713_p9 = pnand %p5716_p7, %p5966_p8 }
 0x283   : > { %p5714_p10 = pneg %p5713_p9 }
 0x285   : > { %5844 = dma.done.wait (%p5714_p10), %s3669_s19, 512  }
 0x286   : > { %5846 = vsyncadd (%p5714_p10), %s3669_s19, 4294966784  ;;  %s17_s22 = sadd.s32 1, %s5877_s22   ;;  %s8617_s28 = sld [smem:[#allocation5_spill]] }
 0x287   : > { %p14_p11 = scmp.ge.s32.totalorder %s17_s22, 34   ;;  %s8618_s15 = smov %s5853_s16 }
 0x288   : > { %s8619_s16 = smov %s5857_s17  ;;  %s8620_s17 = smov %s5975_s7 }
 0x289   : > { %s8621_s18 = smov %s5869_s20  ;;  %s8622_s19 = smov %s5873_s21 }
 0x28a   : > { %s8623_s20 = smov %s8626_s25  ;;  %16 = sbr.rel (!%p14_p11) target bundleno = 5 (0x5), region = 82 }
 0x28c   : > { %s8624_s21 = smov %s8617_s28 }
 0x28f   :  { %3675 = vsyncpa [#allocation3], 1 }
 0x290   :  { %3677 = vsyncpa [#allocation3 + $0x1], 1 }

</bundles_post_ra>
